<compile_context>
chip_gen: v7x
topology: tpu7x:2x2x1
jax: 0.10.0
libtpu: 0.0.40
codegen_flags: <defaults>
</compile_context>

<pallas_src>
import functools

import jax
import jax.numpy as jnp
import numpy as np
from jax.experimental import pallas as pl
from jax.experimental.pallas import tpu as pltpu

LANE = 128  # per-batch padded feature block width (one lane tile)


# ----------------------------------------------------------------------------
# Pallas kernel: one batch tile of the full DCGRU cell update.
#   x0_ref : [1, N, Bt*128] f32   batch-on-lanes, per-batch 128-padded blocks
#   st_ref : [1, Bt*N, H]   f32   state with batch on sublanes (row = b*N + n)
#   out    : [1, H, Bt*N]   f32   lane-dense new state (transposed)
# ----------------------------------------------------------------------------
def _dcgru_kernel(x0_ref, st_ref, sup_ref, wg_ref, bg_ref, wc_ref, bc_ref,
                  out_ref, xrel_ref, y0_ref, *,
                  supports_len, max_diffusion_step, node_num, batch_tile,
                  num_units, input_dim):
    S, K = supports_len, max_diffusion_step
    N, Bt, H = node_num, batch_tile, num_units
    NB = N * Bt

    sups = [sup_ref[s] for s in range(S)]            # each [N, N] bf16

    def relayout_and_accumulate(x_m, m, w_ref, acc):
        # x_m: [N, Bt*128] f32 (batch-on-lanes).  Move batch onto sublanes with
        # Bt aligned [N, 128] block stores into VMEM scratch, then contract
        # against the ORIGINAL per-matrix weight block w_ref[m] ([128, out],
        # zero rows on the padding).  f32 accumulation.
        xb = x_m.astype(jnp.bfloat16)
        for b in range(Bt):
            xrel_ref[b * N:(b + 1) * N, :] = xb[:, b * LANE:(b + 1) * LANE]
        term = jnp.dot(xrel_ref[...], w_ref[m],
                       preferred_element_type=jnp.float32)
        return term if acc is None else acc + term

    def diffuse_contract(x0, w_ref):
        # Joint [state | input] Chebyshev-like recursion of DiffusionGraphConv,
        # keeping the reference's x0/x1 carry across the supports loop, with
        # each diffused matrix streamed straight into the weight contraction
        # (no concatenation / materialization of all M matrices).
        acc = relayout_and_accumulate(x0, 0, w_ref, None)
        if K > 0:
            m = 1
            x_prev = x0
            for s_mat in sups:
                x1 = jnp.dot(s_mat, x_prev.astype(jnp.bfloat16),
                             preferred_element_type=jnp.float32)
                acc = relayout_and_accumulate(x1, m, w_ref, acc)
                m += 1
                for _k in range(2, K + 1):
                    x2 = 2.0 * jnp.dot(s_mat, x1.astype(jnp.bfloat16),
                                       preferred_element_type=jnp.float32) - x_prev
                    acc = relayout_and_accumulate(x2, m, w_ref, acc)
                    m += 1
                    x1, x_prev = x2, x1
        return acc                                    # [NB, out] f32

    x0 = x0_ref[0]                                    # [N, Bt*128] f32
    st = st_ref[0]                                    # [NB, H]     f32

    # --- gate pass: fused r/u diffusion conv (2H wide), streamed ---
    zg = diffuse_contract(x0, wg_ref) + bg_ref[...]   # [NB, 2H] f32
    r = jax.nn.sigmoid(zg[:, :H])                     # [NB, H]
    u = jax.nn.sigmoid(zg[:, H:])                     # [NB, H]

    # --- candidate pass: re-diffuse [r*state | input] jointly ---
    y0_ref[...] = x0
    for b in range(Bt):
        # state occupies the first (128-aligned) H lanes of every batch block
        y0_ref[:, b * LANE:b * LANE + H] = (
            r[b * N:(b + 1) * N, :] * x0[:, b * LANE:b * LANE + H])
    zc = diffuse_contract(y0_ref[...], wc_ref) + bc_ref[...]     # [NB, H]
    c = jnp.tanh(zc)

    new_state = u * st + (1.0 - u) * c                # [NB, H] f32

    # Lane-dense store: pad to a full lane tile, aligned square-ish transpose,
    # write [H, NB] (NB = 128 lanes at the default tile).
    ns_pad = jnp.concatenate(
        [new_state, jnp.zeros((NB, LANE - H), jnp.float32)], axis=1)
    out_ref[0] = ns_pad.T[:H, :]


# ----------------------------------------------------------------------------
# One-time host-side parameter preparation (hoisted out of the per-step call).
# ----------------------------------------------------------------------------
def prepare_dcgru_params(supports, w_gate, b_gate, w_cand, b_cand, *,
                         input_dim, num_units, max_diffusion_step):
    """Re-blocks the DCGRU weights for the kernel.  Call ONCE per model."""
    S = supports.shape[0]
    M = S * max_diffusion_step + 1
    Din, H = input_dim, num_units
    F = Din + H
    assert F <= LANE, "feature block must fit one lane tile"
    # TODO(synk): tile the per-batch feature block if input_dim + num_units > 128.

    def prep_w(w, out_dim):
        # torch rows are (f, m) with f = [input | state]; re-block per m, put
        # the state rows first (so the in-kernel r*state update hits a
        # 128-aligned lane offset) and zero-pad every block to 128 rows.
        w = w.astype(jnp.float32).reshape(F, M, out_dim)
        w = jnp.transpose(w, (1, 0, 2))                               # [M, F, out]
        w = jnp.concatenate([w[:, Din:, :], w[:, :Din, :]], axis=1)   # [state|input]
        pad = jnp.zeros((M, LANE - F, out_dim), jnp.float32)
        return jnp.concatenate([w, pad], axis=1).astype(jnp.bfloat16)  # [M,128,out]

    return dict(
        supports=supports.astype(jnp.bfloat16),
        w_gate=prep_w(w_gate, 2 * H),
        b_gate=b_gate.astype(jnp.float32).reshape(1, 2 * H),
        w_cand=prep_w(w_cand, H),
        b_cand=b_cand.astype(jnp.float32).reshape(1, H),
    )


# ----------------------------------------------------------------------------
# Forward wrapper: activation layout, pallas_call, unfold of the output.
# ----------------------------------------------------------------------------
def dcgru_cell_forward(inputs, state, params, *, node_num, input_dim, num_units,
                       max_diffusion_step, batch_tile=None):
    """Matches DCGRUCell.forward (use_gc_for_ru=True, num_proj=None).

    inputs: [B, node_num*input_dim]; state: [B, node_num*num_units].
    Returns (output, new_state), both [B, node_num*num_units].
    """
    B = inputs.shape[0]
    N, Din, H, K = node_num, input_dim, num_units, max_diffusion_step
    F = Din + H
    S = params["supports"].shape[0]
    M = S * K + 1

    # >= 2 grid steps by default (v7x megacore sharding of the parallel axis).
    if batch_tile is None:
        batch_tile = B // 2 if (B % 2 == 0 and B >= 2) else B
    Bt = min(batch_tile, B)
    assert B % Bt == 0, "batch must be divisible by the batch tile"
    nb = B // Bt
    NB = Bt * N
    LB = Bt * LANE

    inp = inputs.astype(jnp.float32).reshape(nb, Bt, N, Din)
    st = state.astype(jnp.float32).reshape(nb, Bt, N, H)

    # Batch-on-lanes activations with one 128-padded feature block per batch
    # element: lane = b*128 + [state (H) | input (Din) | zeros].
    pad = jnp.zeros((nb, Bt, N, LANE - F), jnp.float32)
    x0 = jnp.concatenate([st, inp, pad], axis=-1)                # [nb,Bt,N,128]
    x0 = jnp.transpose(x0, (0, 2, 1, 3)).reshape(nb, N, LB)
    st_nb = st.reshape(nb, NB, H)                                # row = b*N + n

    kernel = functools.partial(
        _dcgru_kernel, supports_len=S, max_diffusion_step=K, node_num=N,
        batch_tile=Bt, num_units=H, input_dim=Din)

    # NOTE: the grid-invariant operands (supports/weights/biases) total only a
    # few hundred KiB here, so default double-buffering is harmless.
    # TODO(synk): add pipeline_mode=pl.Buffered(1) on them for v7x production
    # VMEM budgets (64 MiB physical) once tiles grow.
    out = pl.pallas_call(
        kernel,
        out_shape=jax.ShapeDtypeStruct((nb, H, NB), jnp.float32),
        grid=(nb,),
        in_specs=[
            pl.BlockSpec((1, N, LB), lambda t: (t, 0, 0)),         # x0 (padded lanes)
            pl.BlockSpec((1, NB, H), lambda t: (t, 0, 0)),         # state (sublanes)
            pl.BlockSpec((S, N, N), lambda t: (0, 0, 0)),          # supports
            pl.BlockSpec((M, LANE, 2 * H), lambda t: (0, 0, 0)),   # W_gate blocks
            pl.BlockSpec((1, 2 * H), lambda t: (0, 0)),            # b_gate
            pl.BlockSpec((M, LANE, H), lambda t: (0, 0, 0)),       # W_cand blocks
            pl.BlockSpec((1, H), lambda t: (0, 0)),                # b_cand
        ],
        out_specs=pl.BlockSpec((1, H, NB), lambda t: (t, 0, 0)),
        scratch_shapes=[
            pltpu.VMEM((NB, LANE), jnp.bfloat16),   # lane->sublane relayout buffer
            pltpu.VMEM((N, LB), jnp.float32),       # candidate x0 ([r*state | input])
        ],
        compiler_params=pltpu.CompilerParams(
            dimension_semantics=("parallel",),
            vmem_limit_bytes=64 * 1024 * 1024),
    )(x0, st_nb, params["supports"], params["w_gate"], params["b_gate"],
      params["w_cand"], params["b_cand"])

    # Un-fold: out[t, h, b*N + n] -> [B, N*H].
    new_state = jnp.transpose(out.reshape(nb, H, Bt, N),
                              (0, 2, 3, 1)).reshape(B, N * H)
    # num_proj is None -> output == new_state.  The forward()'s bias_start=1.0
    # argument is unused upstream (biases fixed at construction time).
    # TODO(synk): optional `num_proj` Linear projection head not implemented.
    return new_state, new_state


# ----------------------------------------------------------------------------
# Pure-JAX reference (literal f32 translation of the torch code) for validation.
# ----------------------------------------------------------------------------
def _dgconv_ref(inputs, supports, state, weight, biases,
                node_num, max_diffusion_step, num_matrices, output_dim):
    B = inputs.shape[0]
    inputs = inputs.reshape(B, node_num, -1)
    state = state.reshape(B, node_num, -1)
    ias = jnp.concatenate([inputs, state], axis=2)
    F = ias.shape[2]
    x0 = jnp.transpose(ias, (1, 2, 0)).reshape(node_num, F * B)
    x = x0[None]
    if max_diffusion_step > 0:
        for s in supports:
            x1 = s @ x0
            x = jnp.concatenate([x, x1[None]], axis=0)
            for _k in range(2, max_diffusion_step + 1):
                x2 = 2.0 * (s @ x1) - x0
                x = jnp.concatenate([x, x2[None]], axis=0)
                x1, x0 = x2, x1
    x = x.reshape(num_matrices, node_num, F, B)
    x = jnp.transpose(x, (3, 1, 2, 0))
    x = x.reshape(B * node_num, F * num_matrices)
    x = x @ weight + biases
    return x.reshape(B, node_num * output_dim)


def _dcgru_ref(inputs, state, supports, w_gate, b_gate, w_cand, b_cand,
               *, node_num, num_units, max_diffusion_step):
    S = supports.shape[0]
    M = S * max_diffusion_step + 1
    H = num_units
    value = jax.nn.sigmoid(_dgconv_ref(inputs, supports, state, w_gate, b_gate,
                                       node_num, max_diffusion_step, M, 2 * H))
    value = value.reshape(-1, node_num, 2 * H)
    r = value[..., :H].reshape(-1, node_num * H)
    u = value[..., H:].reshape(-1, node_num * H)
    c = _dgconv_ref(inputs, supports, r * state, w_cand, b_cand,
                    node_num, max_diffusion_step, M, H)
    c = jnp.tanh(c)
    return u * state + (1.0 - u) * c


# ----------------------------------------------------------------------------
if __name__ == "__main__":
    node_num = 16
    input_dim = 4
    num_units = 32
    max_diffusion_step = 2
    supports_len = 2            # filter_type == 'doubletransition'
    batch = 16                  # -> two batch tiles of 8 (parallel grid steps)

    N, Din, H, K, S = node_num, input_dim, num_units, max_diffusion_step, supports_len
    M = S * K + 1
    F = Din + H

    key = jax.random.PRNGKey(0)
    k_in, k_st, k_s1, k_s2, k_wg, k_wc = jax.random.split(key, 6)

    inputs = jax.random.normal(k_in, (batch, N * Din), dtype=jnp.float32)
    state = jax.random.normal(k_st, (batch, N * H), dtype=jnp.float32)

    # Dense row-stochastic "random walk" supports (stand-in for sparse P, P^T).
    a1 = jax.random.uniform(k_s1, (N, N), dtype=jnp.float32)
    a2 = jax.random.uniform(k_s2, (N, N), dtype=jnp.float32)
    s1 = a1 / jnp.sum(a1, axis=1, keepdims=True)
    s2 = a2 / jnp.sum(a2, axis=1, keepdims=True)
    supports = jnp.stack([s1, s2], axis=0)

    # Parameter init mirroring __init__: xavier_normal_(gain=1.414), bias 0.0.
    def xavier_normal(k, shape, gain=1.414):
        fan_in, fan_out = shape
        std = gain * np.sqrt(2.0 / (fan_in + fan_out))
        return std * jax.random.normal(k, shape, dtype=jnp.float32)

    w_gate = xavier_normal(k_wg, (F * M, 2 * H))
    b_gate = jnp.zeros((2 * H,), dtype=jnp.float32)
    w_cand = xavier_normal(k_wc, (F * M, H))
    b_cand = jnp.zeros((H,), dtype=jnp.float32)

    # Hoisted one-time weight preparation (reused across timesteps in an RNN).
    params = prepare_dcgru_params(
        supports, w_gate, b_gate, w_cand, b_cand,
        input_dim=Din, num_units=H, max_diffusion_step=K)

    output, new_state = dcgru_cell_forward(
        inputs, state, params, node_num=N, input_dim=Din, num_units=H,
        max_diffusion_step=K)
    new_state = jax.block_until_ready(new_state)

    ref = _dcgru_ref(inputs, state, supports, w_gate, b_gate, w_cand, b_cand,
                     node_num=N, num_units=H, max_diffusion_step=K)
    ref = jax.block_until_ready(ref)

    # Kernel uses bf16 MXU operands (f32 accumulation) -> compare at 2e-2.
    np.testing.assert_allclose(np.asarray(new_state), np.asarray(ref),
                               rtol=2e-2, atol=2e-2)
    assert new_state.shape == (batch, N * H)
    print("KERNEL_OK")
</pallas_src>

<mosaic_0001>
module attributes {stable_mosaic.version = 11 : i64} {
  func.func @_dcgru_kernel(%arg0: i32, %arg1: memref<1x16x1024xf32, #tpu.memory_space<vmem>>, %arg2: memref<1x128x32xf32, #tpu.memory_space<vmem>>, %arg3: memref<2x16x16xbf16, #tpu.memory_space<vmem>>, %arg4: memref<5x128x64xbf16, #tpu.memory_space<vmem>>, %arg5: memref<1x64xf32, #tpu.memory_space<vmem>>, %arg6: memref<5x128x32xbf16, #tpu.memory_space<vmem>>, %arg7: memref<1x32xf32, #tpu.memory_space<vmem>>, %arg8: memref<1x32x128xf32, #tpu.memory_space<vmem>>, %arg9: memref<128x128xbf16, #tpu.memory_space<vmem>>, %arg10: memref<16x1024xf32, #tpu.memory_space<vmem>>) attributes {dimension_semantics = [#tpu.dimension_semantics<parallel>], iteration_bounds = array<i64: 2>, scalar_prefetch = 0 : i64, scratch_operands = 2 : i64, tpu.core_type = #tpu.core_type<tc>, window_params = [{transform_indices = @transform_0, window_bounds = array<i64: 1, 16, 1024>}, {transform_indices = @transform_1, window_bounds = array<i64: 1, 128, 32>}, {pipeline_mode = #tpu.pipeline_mode<synchronous>, transform_indices = @transform_2, window_bounds = array<i64: 2, 16, 16>}, {pipeline_mode = #tpu.pipeline_mode<synchronous>, transform_indices = @transform_3, window_bounds = array<i64: 5, 128, 64>}, {pipeline_mode = #tpu.pipeline_mode<synchronous>, transform_indices = @transform_4, window_bounds = array<i64: 1, 64>}, {pipeline_mode = #tpu.pipeline_mode<synchronous>, transform_indices = @transform_5, window_bounds = array<i64: 5, 128, 32>}, {pipeline_mode = #tpu.pipeline_mode<synchronous>, transform_indices = @transform_6, window_bounds = array<i64: 1, 32>}, {transform_indices = @transform_7, window_bounds = array<i64: 1, 32, 128>}]} {
    %c0 = arith.constant 0 : index
    %c0_0 = arith.constant 0 : index
    %c0_1 = arith.constant 0 : index
    %0 = vector.load %arg3[%c0, %c0_0, %c0_1] : memref<2x16x16xbf16, #tpu.memory_space<vmem>>, vector<1x16x16xbf16>
    %1 = vector.shape_cast %0 : vector<1x16x16xbf16> to vector<16x16xbf16>
    %c1 = arith.constant 1 : index
    %c0_2 = arith.constant 0 : index
    %c0_3 = arith.constant 0 : index
    %2 = vector.load %arg3[%c1, %c0_2, %c0_3] : memref<2x16x16xbf16, #tpu.memory_space<vmem>>, vector<1x16x16xbf16>
    %3 = vector.shape_cast %2 : vector<1x16x16xbf16> to vector<16x16xbf16>
    %c0_4 = arith.constant 0 : index
    %c0_5 = arith.constant 0 : index
    %c0_6 = arith.constant 0 : index
    %4 = vector.load %arg1[%c0_4, %c0_5, %c0_6] : memref<1x16x1024xf32, #tpu.memory_space<vmem>>, vector<1x16x1024xf32>
    %5 = vector.shape_cast %4 : vector<1x16x1024xf32> to vector<16x1024xf32>
    %c0_7 = arith.constant 0 : index
    %c0_8 = arith.constant 0 : index
    %c0_9 = arith.constant 0 : index
    %6 = vector.load %arg2[%c0_7, %c0_8, %c0_9] : memref<1x128x32xf32, #tpu.memory_space<vmem>>, vector<1x128x32xf32>
    %7 = vector.shape_cast %6 : vector<1x128x32xf32> to vector<128x32xf32>
    %8 = arith.truncf %5 : vector<16x1024xf32> to vector<16x1024xbf16>
    %9 = vector.extract_strided_slice %8 {offsets = [0, 0], sizes = [16, 128], strides = [1, 1]} : vector<16x1024xbf16> to vector<16x128xbf16>
    %c0_10 = arith.constant 0 : index
    %c0_11 = arith.constant 0 : index
    %10 = vector.load %arg9[%c0_10, %c0_11] : memref<128x128xbf16, #tpu.memory_space<vmem>>, vector<16x128xbf16>
    tpu.vector_store %arg9[%c0_10, %c0_11], %9 {strides = array<i32>} : memref<128x128xbf16, #tpu.memory_space<vmem>>, vector<16x128xbf16>,
    %11 = vector.extract_strided_slice %8 {offsets = [0, 128], sizes = [16, 128], strides = [1, 1]} : vector<16x1024xbf16> to vector<16x128xbf16>
    %c16 = arith.constant 16 : index
    %c0_12 = arith.constant 0 : index
    %12 = vector.load %arg9[%c16, %c0_12] : memref<128x128xbf16, #tpu.memory_space<vmem>>, vector<16x128xbf16>
    tpu.vector_store %arg9[%c16, %c0_12], %11 {strides = array<i32>} : memref<128x128xbf16, #tpu.memory_space<vmem>>, vector<16x128xbf16>,
    %13 = vector.extract_strided_slice %8 {offsets = [0, 256], sizes = [16, 128], strides = [1, 1]} : vector<16x1024xbf16> to vector<16x128xbf16>
    %c32 = arith.constant 32 : index
    %c0_13 = arith.constant 0 : index
    %14 = vector.load %arg9[%c32, %c0_13] : memref<128x128xbf16, #tpu.memory_space<vmem>>, vector<16x128xbf16>
    tpu.vector_store %arg9[%c32, %c0_13], %13 {strides = array<i32>} : memref<128x128xbf16, #tpu.memory_space<vmem>>, vector<16x128xbf16>,
    %15 = vector.extract_strided_slice %8 {offsets = [0, 384], sizes = [16, 128], strides = [1, 1]} : vector<16x1024xbf16> to vector<16x128xbf16>
    %c48 = arith.constant 48 : index
    %c0_14 = arith.constant 0 : index
    %16 = vector.load %arg9[%c48, %c0_14] : memref<128x128xbf16, #tpu.memory_space<vmem>>, vector<16x128xbf16>
    tpu.vector_store %arg9[%c48, %c0_14], %15 {strides = array<i32>} : memref<128x128xbf16, #tpu.memory_space<vmem>>, vector<16x128xbf16>,
    %17 = vector.extract_strided_slice %8 {offsets = [0, 512], sizes = [16, 128], strides = [1, 1]} : vector<16x1024xbf16> to vector<16x128xbf16>
    %c64 = arith.constant 64 : index
    %c0_15 = arith.constant 0 : index
    %18 = vector.load %arg9[%c64, %c0_15] : memref<128x128xbf16, #tpu.memory_space<vmem>>, vector<16x128xbf16>
    tpu.vector_store %arg9[%c64, %c0_15], %17 {strides = array<i32>} : memref<128x128xbf16, #tpu.memory_space<vmem>>, vector<16x128xbf16>,
    %19 = vector.extract_strided_slice %8 {offsets = [0, 640], sizes = [16, 128], strides = [1, 1]} : vector<16x1024xbf16> to vector<16x128xbf16>
    %c80 = arith.constant 80 : index
    %c0_16 = arith.constant 0 : index
    %20 = vector.load %arg9[%c80, %c0_16] : memref<128x128xbf16, #tpu.memory_space<vmem>>, vector<16x128xbf16>
    tpu.vector_store %arg9[%c80, %c0_16], %19 {strides = array<i32>} : memref<128x128xbf16, #tpu.memory_space<vmem>>, vector<16x128xbf16>,
    %21 = vector.extract_strided_slice %8 {offsets = [0, 768], sizes = [16, 128], strides = [1, 1]} : vector<16x1024xbf16> to vector<16x128xbf16>
    %c96 = arith.constant 96 : index
    %c0_17 = arith.constant 0 : index
    %22 = vector.load %arg9[%c96, %c0_17] : memref<128x128xbf16, #tpu.memory_space<vmem>>, vector<16x128xbf16>
    tpu.vector_store %arg9[%c96, %c0_17], %21 {strides = array<i32>} : memref<128x128xbf16, #tpu.memory_space<vmem>>, vector<16x128xbf16>,
    %23 = vector.extract_strided_slice %8 {offsets = [0, 896], sizes = [16, 128], strides = [1, 1]} : vector<16x1024xbf16> to vector<16x128xbf16>
    %c112 = arith.constant 112 : index
    %c0_18 = arith.constant 0 : index
    %24 = vector.load %arg9[%c112, %c0_18] : memref<128x128xbf16, #tpu.memory_space<vmem>>, vector<16x128xbf16>
    tpu.vector_store %arg9[%c112, %c0_18], %23 {strides = array<i32>} : memref<128x128xbf16, #tpu.memory_space<vmem>>, vector<16x128xbf16>,
    %c0_19 = arith.constant 0 : index
    %c0_20 = arith.constant 0 : index
    %25 = vector.load %arg9[%c0_19, %c0_20] : memref<128x128xbf16, #tpu.memory_space<vmem>>, vector<128x128xbf16>
    %c0_21 = arith.constant 0 : index
    %c0_22 = arith.constant 0 : index
    %c0_23 = arith.constant 0 : index
    %26 = vector.load %arg4[%c0_21, %c0_22, %c0_23] : memref<5x128x64xbf16, #tpu.memory_space<vmem>>, vector<1x128x64xbf16>
    %27 = vector.shape_cast %26 : vector<1x128x64xbf16> to vector<128x64xbf16>
    %cst = arith.constant dense<0.000000e+00> : vector<128x64xf32>
    %28 = tpu.matmul %25, %27, %cst {dimension_numbers = #tpu.dot_dimension_numbers<[1], [0], [0], [1], [0, 0, 1, 1], [], []>} : vector<128x128xbf16>, vector<128x64xbf16>, vector<128x64xf32> -> vector<128x64xf32>
    %29 = arith.truncf %5 : vector<16x1024xf32> to vector<16x1024xbf16>
    %cst_24 = arith.constant dense<0.000000e+00> : vector<16x1024xf32>
    %30 = tpu.matmul %1, %29, %cst_24 {dimension_numbers = #tpu.dot_dimension_numbers<[1], [0], [0], [1], [0, 0, 1, 1], [], []>} : vector<16x16xbf16>, vector<16x1024xbf16>, vector<16x1024xf32> -> vector<16x1024xf32>
    %31 = arith.truncf %30 : vector<16x1024xf32> to vector<16x1024xbf16>
    %32 = vector.extract_strided_slice %31 {offsets = [0, 0], sizes = [16, 128], strides = [1, 1]} : vector<16x1024xbf16> to vector<16x128xbf16>
    %c0_25 = arith.constant 0 : index
    %c0_26 = arith.constant 0 : index
    %33 = vector.load %arg9[%c0_25, %c0_26] : memref<128x128xbf16, #tpu.memory_space<vmem>>, vector<16x128xbf16>
    tpu.vector_store %arg9[%c0_25, %c0_26], %32 {strides = array<i32>} : memref<128x128xbf16, #tpu.memory_space<vmem>>, vector<16x128xbf16>,
    %34 = vector.extract_strided_slice %31 {offsets = [0, 128], sizes = [16, 128], strides = [1, 1]} : vector<16x1024xbf16> to vector<16x128xbf16>
    %c16_27 = arith.constant 16 : index
    %c0_28 = arith.constant 0 : index
    %35 = vector.load %arg9[%c16_27, %c0_28] : memref<128x128xbf16, #tpu.memory_space<vmem>>, vector<16x128xbf16>
    tpu.vector_store %arg9[%c16_27, %c0_28], %34 {strides = array<i32>} : memref<128x128xbf16, #tpu.memory_space<vmem>>, vector<16x128xbf16>,
    %36 = vector.extract_strided_slice %31 {offsets = [0, 256], sizes = [16, 128], strides = [1, 1]} : vector<16x1024xbf16> to vector<16x128xbf16>
    %c32_29 = arith.constant 32 : index
    %c0_30 = arith.constant 0 : index
    %37 = vector.load %arg9[%c32_29, %c0_30] : memref<128x128xbf16, #tpu.memory_space<vmem>>, vector<16x128xbf16>
    tpu.vector_store %arg9[%c32_29, %c0_30], %36 {strides = array<i32>} : memref<128x128xbf16, #tpu.memory_space<vmem>>, vector<16x128xbf16>,
    %38 = vector.extract_strided_slice %31 {offsets = [0, 384], sizes = [16, 128], strides = [1, 1]} : vector<16x1024xbf16> to vector<16x128xbf16>
    %c48_31 = arith.constant 48 : index
    %c0_32 = arith.constant 0 : index
    %39 = vector.load %arg9[%c48_31, %c0_32] : memref<128x128xbf16, #tpu.memory_space<vmem>>, vector<16x128xbf16>
    tpu.vector_store %arg9[%c48_31, %c0_32], %38 {strides = array<i32>} : memref<128x128xbf16, #tpu.memory_space<vmem>>, vector<16x128xbf16>,
    %40 = vector.extract_strided_slice %31 {offsets = [0, 512], sizes = [16, 128], strides = [1, 1]} : vector<16x1024xbf16> to vector<16x128xbf16>
    %c64_33 = arith.constant 64 : index
    %c0_34 = arith.constant 0 : index
    %41 = vector.load %arg9[%c64_33, %c0_34] : memref<128x128xbf16, #tpu.memory_space<vmem>>, vector<16x128xbf16>
    tpu.vector_store %arg9[%c64_33, %c0_34], %40 {strides = array<i32>} : memref<128x128xbf16, #tpu.memory_space<vmem>>, vector<16x128xbf16>,
    %42 = vector.extract_strided_slice %31 {offsets = [0, 640], sizes = [16, 128], strides = [1, 1]} : vector<16x1024xbf16> to vector<16x128xbf16>
    %c80_35 = arith.constant 80 : index
    %c0_36 = arith.constant 0 : index
    %43 = vector.load %arg9[%c80_35, %c0_36] : memref<128x128xbf16, #tpu.memory_space<vmem>>, vector<16x128xbf16>
    tpu.vector_store %arg9[%c80_35, %c0_36], %42 {strides = array<i32>} : memref<128x128xbf16, #tpu.memory_space<vmem>>, vector<16x128xbf16>,
    %44 = vector.extract_strided_slice %31 {offsets = [0, 768], sizes = [16, 128], strides = [1, 1]} : vector<16x1024xbf16> to vector<16x128xbf16>
    %c96_37 = arith.constant 96 : index
    %c0_38 = arith.constant 0 : index
    %45 = vector.load %arg9[%c96_37, %c0_38] : memref<128x128xbf16, #tpu.memory_space<vmem>>, vector<16x128xbf16>
    tpu.vector_store %arg9[%c96_37, %c0_38], %44 {strides = array<i32>} : memref<128x128xbf16, #tpu.memory_space<vmem>>, vector<16x128xbf16>,
    %46 = vector.extract_strided_slice %31 {offsets = [0, 896], sizes = [16, 128], strides = [1, 1]} : vector<16x1024xbf16> to vector<16x128xbf16>
    %c112_39 = arith.constant 112 : index
    %c0_40 = arith.constant 0 : index
    %47 = vector.load %arg9[%c112_39, %c0_40] : memref<128x128xbf16, #tpu.memory_space<vmem>>, vector<16x128xbf16>
    tpu.vector_store %arg9[%c112_39, %c0_40], %46 {strides = array<i32>} : memref<128x128xbf16, #tpu.memory_space<vmem>>, vector<16x128xbf16>,
    %c0_41 = arith.constant 0 : index
    %c0_42 = arith.constant 0 : index
    %48 = vector.load %arg9[%c0_41, %c0_42] : memref<128x128xbf16, #tpu.memory_space<vmem>>, vector<128x128xbf16>
    %c1_43 = arith.constant 1 : index
    %c0_44 = arith.constant 0 : index
    %c0_45 = arith.constant 0 : index
    %49 = vector.load %arg4[%c1_43, %c0_44, %c0_45] : memref<5x128x64xbf16, #tpu.memory_space<vmem>>, vector<1x128x64xbf16>
    %50 = vector.shape_cast %49 : vector<1x128x64xbf16> to vector<128x64xbf16>
    %cst_46 = arith.constant dense<0.000000e+00> : vector<128x64xf32>
    %51 = tpu.matmul %48, %50, %cst_46 {dimension_numbers = #tpu.dot_dimension_numbers<[1], [0], [0], [1], [0, 0, 1, 1], [], []>} : vector<128x128xbf16>, vector<128x64xbf16>, vector<128x64xf32> -> vector<128x64xf32>
    %52 = arith.addf %28, %51 : vector<128x64xf32>
    %53 = arith.truncf %30 : vector<16x1024xf32> to vector<16x1024xbf16>
    %cst_47 = arith.constant dense<0.000000e+00> : vector<16x1024xf32>
    %54 = tpu.matmul %1, %53, %cst_47 {dimension_numbers = #tpu.dot_dimension_numbers<[1], [0], [0], [1], [0, 0, 1, 1], [], []>} : vector<16x16xbf16>, vector<16x1024xbf16>, vector<16x1024xf32> -> vector<16x1024xf32>
    %cst_48 = arith.constant 2.000000e+00 : f32
    %55 = vector.broadcast %cst_48 : f32 to vector<16x1024xf32>
    %56 = arith.mulf %55, %54 : vector<16x1024xf32>
    %57 = arith.subf %56, %5 : vector<16x1024xf32>
    %58 = arith.truncf %57 : vector<16x1024xf32> to vector<16x1024xbf16>
    %59 = vector.extract_strided_slice %58 {offsets = [0, 0], sizes = [16, 128], strides = [1, 1]} : vector<16x1024xbf16> to vector<16x128xbf16>
    %c0_49 = arith.constant 0 : index
    %c0_50 = arith.constant 0 : index
    %60 = vector.load %arg9[%c0_49, %c0_50] : memref<128x128xbf16, #tpu.memory_space<vmem>>, vector<16x128xbf16>
    tpu.vector_store %arg9[%c0_49, %c0_50], %59 {strides = array<i32>} : memref<128x128xbf16, #tpu.memory_space<vmem>>, vector<16x128xbf16>,
    %61 = vector.extract_strided_slice %58 {offsets = [0, 128], sizes = [16, 128], strides = [1, 1]} : vector<16x1024xbf16> to vector<16x128xbf16>
    %c16_51 = arith.constant 16 : index
    %c0_52 = arith.constant 0 : index
    %62 = vector.load %arg9[%c16_51, %c0_52] : memref<128x128xbf16, #tpu.memory_space<vmem>>, vector<16x128xbf16>
    tpu.vector_store %arg9[%c16_51, %c0_52], %61 {strides = array<i32>} : memref<128x128xbf16, #tpu.memory_space<vmem>>, vector<16x128xbf16>,
    %63 = vector.extract_strided_slice %58 {offsets = [0, 256], sizes = [16, 128], strides = [1, 1]} : vector<16x1024xbf16> to vector<16x128xbf16>
    %c32_53 = arith.constant 32 : index
    %c0_54 = arith.constant 0 : index
    %64 = vector.load %arg9[%c32_53, %c0_54] : memref<128x128xbf16, #tpu.memory_space<vmem>>, vector<16x128xbf16>
    tpu.vector_store %arg9[%c32_53, %c0_54], %63 {strides = array<i32>} : memref<128x128xbf16, #tpu.memory_space<vmem>>, vector<16x128xbf16>,
    %65 = vector.extract_strided_slice %58 {offsets = [0, 384], sizes = [16, 128], strides = [1, 1]} : vector<16x1024xbf16> to vector<16x128xbf16>
    %c48_55 = arith.constant 48 : index
    %c0_56 = arith.constant 0 : index
    %66 = vector.load %arg9[%c48_55, %c0_56] : memref<128x128xbf16, #tpu.memory_space<vmem>>, vector<16x128xbf16>
    tpu.vector_store %arg9[%c48_55, %c0_56], %65 {strides = array<i32>} : memref<128x128xbf16, #tpu.memory_space<vmem>>, vector<16x128xbf16>,
    %67 = vector.extract_strided_slice %58 {offsets = [0, 512], sizes = [16, 128], strides = [1, 1]} : vector<16x1024xbf16> to vector<16x128xbf16>
    %c64_57 = arith.constant 64 : index
    %c0_58 = arith.constant 0 : index
    %68 = vector.load %arg9[%c64_57, %c0_58] : memref<128x128xbf16, #tpu.memory_space<vmem>>, vector<16x128xbf16>
    tpu.vector_store %arg9[%c64_57, %c0_58], %67 {strides = array<i32>} : memref<128x128xbf16, #tpu.memory_space<vmem>>, vector<16x128xbf16>,
    %69 = vector.extract_strided_slice %58 {offsets = [0, 640], sizes = [16, 128], strides = [1, 1]} : vector<16x1024xbf16> to vector<16x128xbf16>
    %c80_59 = arith.constant 80 : index
    %c0_60 = arith.constant 0 : index
    %70 = vector.load %arg9[%c80_59, %c0_60] : memref<128x128xbf16, #tpu.memory_space<vmem>>, vector<16x128xbf16>
    tpu.vector_store %arg9[%c80_59, %c0_60], %69 {strides = array<i32>} : memref<128x128xbf16, #tpu.memory_space<vmem>>, vector<16x128xbf16>,
    %71 = vector.extract_strided_slice %58 {offsets = [0, 768], sizes = [16, 128], strides = [1, 1]} : vector<16x1024xbf16> to vector<16x128xbf16>
    %c96_61 = arith.constant 96 : index
    %c0_62 = arith.constant 0 : index
    %72 = vector.load %arg9[%c96_61, %c0_62] : memref<128x128xbf16, #tpu.memory_space<vmem>>, vector<16x128xbf16>
    tpu.vector_store %arg9[%c96_61, %c0_62], %71 {strides = array<i32>} : memref<128x128xbf16, #tpu.memory_space<vmem>>, vector<16x128xbf16>,
    %73 = vector.extract_strided_slice %58 {offsets = [0, 896], sizes = [16, 128], strides = [1, 1]} : vector<16x1024xbf16> to vector<16x128xbf16>
    %c112_63 = arith.constant 112 : index
    %c0_64 = arith.constant 0 : index
    %74 = vector.load %arg9[%c112_63, %c0_64] : memref<128x128xbf16, #tpu.memory_space<vmem>>, vector<16x128xbf16>
    tpu.vector_store %arg9[%c112_63, %c0_64], %73 {strides = array<i32>} : memref<128x128xbf16, #tpu.memory_space<vmem>>, vector<16x128xbf16>,
    %c0_65 = arith.constant 0 : index
    %c0_66 = arith.constant 0 : index
    %75 = vector.load %arg9[%c0_65, %c0_66] : memref<128x128xbf16, #tpu.memory_space<vmem>>, vector<128x128xbf16>
    %c2 = arith.constant 2 : index
    %c0_67 = arith.constant 0 : index
    %c0_68 = arith.constant 0 : index
    %76 = vector.load %arg4[%c2, %c0_67, %c0_68] : memref<5x128x64xbf16, #tpu.memory_space<vmem>>, vector<1x128x64xbf16>
    %77 = vector.shape_cast %76 : vector<1x128x64xbf16> to vector<128x64xbf16>
    %cst_69 = arith.constant dense<0.000000e+00> : vector<128x64xf32>
    %78 = tpu.matmul %75, %77, %cst_69 {dimension_numbers = #tpu.dot_dimension_numbers<[1], [0], [0], [1], [0, 0, 1, 1], [], []>} : vector<128x128xbf16>, vector<128x64xbf16>, vector<128x64xf32> -> vector<128x64xf32>
    %79 = arith.addf %52, %78 : vector<128x64xf32>
    %80 = arith.truncf %30 : vector<16x1024xf32> to vector<16x1024xbf16>
    %cst_70 = arith.constant dense<0.000000e+00> : vector<16x1024xf32>
    %81 = tpu.matmul %3, %80, %cst_70 {dimension_numbers = #tpu.dot_dimension_numbers<[1], [0], [0], [1], [0, 0, 1, 1], [], []>} : vector<16x16xbf16>, vector<16x1024xbf16>, vector<16x1024xf32> -> vector<16x1024xf32>
    %82 = arith.truncf %81 : vector<16x1024xf32> to vector<16x1024xbf16>
    %83 = vector.extract_strided_slice %82 {offsets = [0, 0], sizes = [16, 128], strides = [1, 1]} : vector<16x1024xbf16> to vector<16x128xbf16>
    %c0_71 = arith.constant 0 : index
    %c0_72 = arith.constant 0 : index
    %84 = vector.load %arg9[%c0_71, %c0_72] : memref<128x128xbf16, #tpu.memory_space<vmem>>, vector<16x128xbf16>
    tpu.vector_store %arg9[%c0_71, %c0_72], %83 {strides = array<i32>} : memref<128x128xbf16, #tpu.memory_space<vmem>>, vector<16x128xbf16>,
    %85 = vector.extract_strided_slice %82 {offsets = [0, 128], sizes = [16, 128], strides = [1, 1]} : vector<16x1024xbf16> to vector<16x128xbf16>
    %c16_73 = arith.constant 16 : index
    %c0_74 = arith.constant 0 : index
    %86 = vector.load %arg9[%c16_73, %c0_74] : memref<128x128xbf16, #tpu.memory_space<vmem>>, vector<16x128xbf16>
    tpu.vector_store %arg9[%c16_73, %c0_74], %85 {strides = array<i32>} : memref<128x128xbf16, #tpu.memory_space<vmem>>, vector<16x128xbf16>,
    %87 = vector.extract_strided_slice %82 {offsets = [0, 256], sizes = [16, 128], strides = [1, 1]} : vector<16x1024xbf16> to vector<16x128xbf16>
    %c32_75 = arith.constant 32 : index
    %c0_76 = arith.constant 0 : index
    %88 = vector.load %arg9[%c32_75, %c0_76] : memref<128x128xbf16, #tpu.memory_space<vmem>>, vector<16x128xbf16>
    tpu.vector_store %arg9[%c32_75, %c0_76], %87 {strides = array<i32>} : memref<128x128xbf16, #tpu.memory_space<vmem>>, vector<16x128xbf16>,
    %89 = vector.extract_strided_slice %82 {offsets = [0, 384], sizes = [16, 128], strides = [1, 1]} : vector<16x1024xbf16> to vector<16x128xbf16>
    %c48_77 = arith.constant 48 : index
    %c0_78 = arith.constant 0 : index
    %90 = vector.load %arg9[%c48_77, %c0_78] : memref<128x128xbf16, #tpu.memory_space<vmem>>, vector<16x128xbf16>
    tpu.vector_store %arg9[%c48_77, %c0_78], %89 {strides = array<i32>} : memref<128x128xbf16, #tpu.memory_space<vmem>>, vector<16x128xbf16>,
    %91 = vector.extract_strided_slice %82 {offsets = [0, 512], sizes = [16, 128], strides = [1, 1]} : vector<16x1024xbf16> to vector<16x128xbf16>
    %c64_79 = arith.constant 64 : index
    %c0_80 = arith.constant 0 : index
    %92 = vector.load %arg9[%c64_79, %c0_80] : memref<128x128xbf16, #tpu.memory_space<vmem>>, vector<16x128xbf16>
    tpu.vector_store %arg9[%c64_79, %c0_80], %91 {strides = array<i32>} : memref<128x128xbf16, #tpu.memory_space<vmem>>, vector<16x128xbf16>,
    %93 = vector.extract_strided_slice %82 {offsets = [0, 640], sizes = [16, 128], strides = [1, 1]} : vector<16x1024xbf16> to vector<16x128xbf16>
    %c80_81 = arith.constant 80 : index
    %c0_82 = arith.constant 0 : index
    %94 = vector.load %arg9[%c80_81, %c0_82] : memref<128x128xbf16, #tpu.memory_space<vmem>>, vector<16x128xbf16>
    tpu.vector_store %arg9[%c80_81, %c0_82], %93 {strides = array<i32>} : memref<128x128xbf16, #tpu.memory_space<vmem>>, vector<16x128xbf16>,
    %95 = vector.extract_strided_slice %82 {offsets = [0, 768], sizes = [16, 128], strides = [1, 1]} : vector<16x1024xbf16> to vector<16x128xbf16>
    %c96_83 = arith.constant 96 : index
    %c0_84 = arith.constant 0 : index
    %96 = vector.load %arg9[%c96_83, %c0_84] : memref<128x128xbf16, #tpu.memory_space<vmem>>, vector<16x128xbf16>
    tpu.vector_store %arg9[%c96_83, %c0_84], %95 {strides = array<i32>} : memref<128x128xbf16, #tpu.memory_space<vmem>>, vector<16x128xbf16>,
    %97 = vector.extract_strided_slice %82 {offsets = [0, 896], sizes = [16, 128], strides = [1, 1]} : vector<16x1024xbf16> to vector<16x128xbf16>
    %c112_85 = arith.constant 112 : index
    %c0_86 = arith.constant 0 : index
    %98 = vector.load %arg9[%c112_85, %c0_86] : memref<128x128xbf16, #tpu.memory_space<vmem>>, vector<16x128xbf16>
    tpu.vector_store %arg9[%c112_85, %c0_86], %97 {strides = array<i32>} : memref<128x128xbf16, #tpu.memory_space<vmem>>, vector<16x128xbf16>,
    %c0_87 = arith.constant 0 : index
    %c0_88 = arith.constant 0 : index
    %99 = vector.load %arg9[%c0_87, %c0_88] : memref<128x128xbf16, #tpu.memory_space<vmem>>, vector<128x128xbf16>
    %c3 = arith.constant 3 : index
    %c0_89 = arith.constant 0 : index
    %c0_90 = arith.constant 0 : index
    %100 = vector.load %arg4[%c3, %c0_89, %c0_90] : memref<5x128x64xbf16, #tpu.memory_space<vmem>>, vector<1x128x64xbf16>
    %101 = vector.shape_cast %100 : vector<1x128x64xbf16> to vector<128x64xbf16>
    %cst_91 = arith.constant dense<0.000000e+00> : vector<128x64xf32>
    %102 = tpu.matmul %99, %101, %cst_91 {dimension_numbers = #tpu.dot_dimension_numbers<[1], [0], [0], [1], [0, 0, 1, 1], [], []>} : vector<128x128xbf16>, vector<128x64xbf16>, vector<128x64xf32> -> vector<128x64xf32>
    %103 = arith.addf %79, %102 : vector<128x64xf32>
    %104 = arith.truncf %81 : vector<16x1024xf32> to vector<16x1024xbf16>
    %cst_92 = arith.constant dense<0.000000e+00> : vector<16x1024xf32>
    %105 = tpu.matmul %3, %104, %cst_92 {dimension_numbers = #tpu.dot_dimension_numbers<[1], [0], [0], [1], [0, 0, 1, 1], [], []>} : vector<16x16xbf16>, vector<16x1024xbf16>, vector<16x1024xf32> -> vector<16x1024xf32>
    %cst_93 = arith.constant 2.000000e+00 : f32
    %106 = vector.broadcast %cst_93 : f32 to vector<16x1024xf32>
    %107 = arith.mulf %106, %105 : vector<16x1024xf32>
    %108 = arith.subf %107, %30 : vector<16x1024xf32>
    %109 = arith.truncf %108 : vector<16x1024xf32> to vector<16x1024xbf16>
    %110 = vector.extract_strided_slice %109 {offsets = [0, 0], sizes = [16, 128], strides = [1, 1]} : vector<16x1024xbf16> to vector<16x128xbf16>
    %c0_94 = arith.constant 0 : index
    %c0_95 = arith.constant 0 : index
    %111 = vector.load %arg9[%c0_94, %c0_95] : memref<128x128xbf16, #tpu.memory_space<vmem>>, vector<16x128xbf16>
    tpu.vector_store %arg9[%c0_94, %c0_95], %110 {strides = array<i32>} : memref<128x128xbf16, #tpu.memory_space<vmem>>, vector<16x128xbf16>,
    %112 = vector.extract_strided_slice %109 {offsets = [0, 128], sizes = [16, 128], strides = [1, 1]} : vector<16x1024xbf16> to vector<16x128xbf16>
    %c16_96 = arith.constant 16 : index
    %c0_97 = arith.constant 0 : index
    %113 = vector.load %arg9[%c16_96, %c0_97] : memref<128x128xbf16, #tpu.memory_space<vmem>>, vector<16x128xbf16>
    tpu.vector_store %arg9[%c16_96, %c0_97], %112 {strides = array<i32>} : memref<128x128xbf16, #tpu.memory_space<vmem>>, vector<16x128xbf16>,
    %114 = vector.extract_strided_slice %109 {offsets = [0, 256], sizes = [16, 128], strides = [1, 1]} : vector<16x1024xbf16> to vector<16x128xbf16>
    %c32_98 = arith.constant 32 : index
    %c0_99 = arith.constant 0 : index
    %115 = vector.load %arg9[%c32_98, %c0_99] : memref<128x128xbf16, #tpu.memory_space<vmem>>, vector<16x128xbf16>
    tpu.vector_store %arg9[%c32_98, %c0_99], %114 {strides = array<i32>} : memref<128x128xbf16, #tpu.memory_space<vmem>>, vector<16x128xbf16>,
    %116 = vector.extract_strided_slice %109 {offsets = [0, 384], sizes = [16, 128], strides = [1, 1]} : vector<16x1024xbf16> to vector<16x128xbf16>
    %c48_100 = arith.constant 48 : index
    %c0_101 = arith.constant 0 : index
    %117 = vector.load %arg9[%c48_100, %c0_101] : memref<128x128xbf16, #tpu.memory_space<vmem>>, vector<16x128xbf16>
    tpu.vector_store %arg9[%c48_100, %c0_101], %116 {strides = array<i32>} : memref<128x128xbf16, #tpu.memory_space<vmem>>, vector<16x128xbf16>,
    %118 = vector.extract_strided_slice %109 {offsets = [0, 512], sizes = [16, 128], strides = [1, 1]} : vector<16x1024xbf16> to vector<16x128xbf16>
    %c64_102 = arith.constant 64 : index
    %c0_103 = arith.constant 0 : index
    %119 = vector.load %arg9[%c64_102, %c0_103] : memref<128x128xbf16, #tpu.memory_space<vmem>>, vector<16x128xbf16>
    tpu.vector_store %arg9[%c64_102, %c0_103], %118 {strides = array<i32>} : memref<128x128xbf16, #tpu.memory_space<vmem>>, vector<16x128xbf16>,
    %120 = vector.extract_strided_slice %109 {offsets = [0, 640], sizes = [16, 128], strides = [1, 1]} : vector<16x1024xbf16> to vector<16x128xbf16>
    %c80_104 = arith.constant 80 : index
    %c0_105 = arith.constant 0 : index
    %121 = vector.load %arg9[%c80_104, %c0_105] : memref<128x128xbf16, #tpu.memory_space<vmem>>, vector<16x128xbf16>
    tpu.vector_store %arg9[%c80_104, %c0_105], %120 {strides = array<i32>} : memref<128x128xbf16, #tpu.memory_space<vmem>>, vector<16x128xbf16>,
    %122 = vector.extract_strided_slice %109 {offsets = [0, 768], sizes = [16, 128], strides = [1, 1]} : vector<16x1024xbf16> to vector<16x128xbf16>
    %c96_106 = arith.constant 96 : index
    %c0_107 = arith.constant 0 : index
    %123 = vector.load %arg9[%c96_106, %c0_107] : memref<128x128xbf16, #tpu.memory_space<vmem>>, vector<16x128xbf16>
    tpu.vector_store %arg9[%c96_106, %c0_107], %122 {strides = array<i32>} : memref<128x128xbf16, #tpu.memory_space<vmem>>, vector<16x128xbf16>,
    %124 = vector.extract_strided_slice %109 {offsets = [0, 896], sizes = [16, 128], strides = [1, 1]} : vector<16x1024xbf16> to vector<16x128xbf16>
    %c112_108 = arith.constant 112 : index
    %c0_109 = arith.constant 0 : index
    %125 = vector.load %arg9[%c112_108, %c0_109] : memref<128x128xbf16, #tpu.memory_space<vmem>>, vector<16x128xbf16>
    tpu.vector_store %arg9[%c112_108, %c0_109], %124 {strides = array<i32>} : memref<128x128xbf16, #tpu.memory_space<vmem>>, vector<16x128xbf16>,
    %c0_110 = arith.constant 0 : index
    %c0_111 = arith.constant 0 : index
    %126 = vector.load %arg9[%c0_110, %c0_111] : memref<128x128xbf16, #tpu.memory_space<vmem>>, vector<128x128xbf16>
    %c4 = arith.constant 4 : index
    %c0_112 = arith.constant 0 : index
    %c0_113 = arith.constant 0 : index
    %127 = vector.load %arg4[%c4, %c0_112, %c0_113] : memref<5x128x64xbf16, #tpu.memory_space<vmem>>, vector<1x128x64xbf16>
    %128 = vector.shape_cast %127 : vector<1x128x64xbf16> to vector<128x64xbf16>
    %cst_114 = arith.constant dense<0.000000e+00> : vector<128x64xf32>
    %129 = tpu.matmul %126, %128, %cst_114 {dimension_numbers = #tpu.dot_dimension_numbers<[1], [0], [0], [1], [0, 0, 1, 1], [], []>} : vector<128x128xbf16>, vector<128x64xbf16>, vector<128x64xf32> -> vector<128x64xf32>
    %130 = arith.addf %103, %129 : vector<128x64xf32>
    %c0_115 = arith.constant 0 : index
    %c0_116 = arith.constant 0 : index
    %131 = vector.load %arg5[%c0_115, %c0_116] : memref<1x64xf32, #tpu.memory_space<vmem>>, vector<1x64xf32>
    %132 = vector.broadcast %131 : vector<1x64xf32> to vector<128x64xf32>
    %133 = arith.addf %130, %132 : vector<128x64xf32>
    %134 = vector.extract_strided_slice %133 {offsets = [0, 0], sizes = [128, 32], strides = [1, 1]} : vector<128x64xf32> to vector<128x32xf32>
    %135 = arith.negf %134 : vector<128x32xf32>
    %136 = math.exp %135 : vector<128x32xf32>
    %cst_117 = arith.constant 1.000000e+00 : f32
    %137 = vector.broadcast %cst_117 : f32 to vector<128x32xf32>
    %138 = arith.addf %137, %136 : vector<128x32xf32>
    %139 = arith.divf %137, %138 : vector<128x32xf32>
    %140 = vector.extract_strided_slice %133 {offsets = [0, 32], sizes = [128, 32], strides = [1, 1]} : vector<128x64xf32> to vector<128x32xf32>
    %141 = arith.negf %140 : vector<128x32xf32>
    %142 = math.exp %141 : vector<128x32xf32>
    %cst_118 = arith.constant 1.000000e+00 : f32
    %143 = vector.broadcast %cst_118 : f32 to vector<128x32xf32>
    %144 = arith.addf %143, %142 : vector<128x32xf32>
    %145 = arith.divf %143, %144 : vector<128x32xf32>
    %c0_119 = arith.constant 0 : index
    %c0_120 = arith.constant 0 : index
    %146 = vector.load %arg10[%c0_119, %c0_120] : memref<16x1024xf32, #tpu.memory_space<vmem>>, vector<16x1024xf32>
    tpu.vector_store %arg10[%c0_119, %c0_120], %5 {strides = array<i32>} : memref<16x1024xf32, #tpu.memory_space<vmem>>, vector<16x1024xf32>,
    %147 = vector.extract_strided_slice %139 {offsets = [0, 0], sizes = [16, 32], strides = [1, 1]} : vector<128x32xf32> to vector<16x32xf32>
    %148 = vector.extract_strided_slice %5 {offsets = [0, 0], sizes = [16, 32], strides = [1, 1]} : vector<16x1024xf32> to vector<16x32xf32>
    %149 = arith.mulf %147, %148 : vector<16x32xf32>
    %c0_121 = arith.constant 0 : index
    %c0_122 = arith.constant 0 : index
    %150 = vector.load %arg10[%c0_121, %c0_122] : memref<16x1024xf32, #tpu.memory_space<vmem>>, vector<16x32xf32>
    tpu.vector_store %arg10[%c0_121, %c0_122], %149 {strides = array<i32>} : memref<16x1024xf32, #tpu.memory_space<vmem>>, vector<16x32xf32>,
    %151 = vector.extract_strided_slice %139 {offsets = [16, 0], sizes = [16, 32], strides = [1, 1]} : vector<128x32xf32> to vector<16x32xf32>
    %152 = vector.extract_strided_slice %5 {offsets = [0, 128], sizes = [16, 32], strides = [1, 1]} : vector<16x1024xf32> to vector<16x32xf32>
    %153 = arith.mulf %151, %152 : vector<16x32xf32>
    %c0_123 = arith.constant 0 : index
    %c128 = arith.constant 128 : index
    %154 = vector.load %arg10[%c0_123, %c128] : memref<16x1024xf32, #tpu.memory_space<vmem>>, vector<16x32xf32>
    tpu.vector_store %arg10[%c0_123, %c128], %153 {strides = array<i32>} : memref<16x1024xf32, #tpu.memory_space<vmem>>, vector<16x32xf32>,
    %155 = vector.extract_strided_slice %139 {offsets = [32, 0], sizes = [16, 32], strides = [1, 1]} : vector<128x32xf32> to vector<16x32xf32>
    %156 = vector.extract_strided_slice %5 {offsets = [0, 256], sizes = [16, 32], strides = [1, 1]} : vector<16x1024xf32> to vector<16x32xf32>
    %157 = arith.mulf %155, %156 : vector<16x32xf32>
    %c0_124 = arith.constant 0 : index
    %c256 = arith.constant 256 : index
    %158 = vector.load %arg10[%c0_124, %c256] : memref<16x1024xf32, #tpu.memory_space<vmem>>, vector<16x32xf32>
    tpu.vector_store %arg10[%c0_124, %c256], %157 {strides = array<i32>} : memref<16x1024xf32, #tpu.memory_space<vmem>>, vector<16x32xf32>,
    %159 = vector.extract_strided_slice %139 {offsets = [48, 0], sizes = [16, 32], strides = [1, 1]} : vector<128x32xf32> to vector<16x32xf32>
    %160 = vector.extract_strided_slice %5 {offsets = [0, 384], sizes = [16, 32], strides = [1, 1]} : vector<16x1024xf32> to vector<16x32xf32>
    %161 = arith.mulf %159, %160 : vector<16x32xf32>
    %c0_125 = arith.constant 0 : index
    %c384 = arith.constant 384 : index
    %162 = vector.load %arg10[%c0_125, %c384] : memref<16x1024xf32, #tpu.memory_space<vmem>>, vector<16x32xf32>
    tpu.vector_store %arg10[%c0_125, %c384], %161 {strides = array<i32>} : memref<16x1024xf32, #tpu.memory_space<vmem>>, vector<16x32xf32>,
    %163 = vector.extract_strided_slice %139 {offsets = [64, 0], sizes = [16, 32], strides = [1, 1]} : vector<128x32xf32> to vector<16x32xf32>
    %164 = vector.extract_strided_slice %5 {offsets = [0, 512], sizes = [16, 32], strides = [1, 1]} : vector<16x1024xf32> to vector<16x32xf32>
    %165 = arith.mulf %163, %164 : vector<16x32xf32>
    %c0_126 = arith.constant 0 : index
    %c512 = arith.constant 512 : index
    %166 = vector.load %arg10[%c0_126, %c512] : memref<16x1024xf32, #tpu.memory_space<vmem>>, vector<16x32xf32>
    tpu.vector_store %arg10[%c0_126, %c512], %165 {strides = array<i32>} : memref<16x1024xf32, #tpu.memory_space<vmem>>, vector<16x32xf32>,
    %167 = vector.extract_strided_slice %139 {offsets = [80, 0], sizes = [16, 32], strides = [1, 1]} : vector<128x32xf32> to vector<16x32xf32>
    %168 = vector.extract_strided_slice %5 {offsets = [0, 640], sizes = [16, 32], strides = [1, 1]} : vector<16x1024xf32> to vector<16x32xf32>
    %169 = arith.mulf %167, %168 : vector<16x32xf32>
    %c0_127 = arith.constant 0 : index
    %c640 = arith.constant 640 : index
    %170 = vector.load %arg10[%c0_127, %c640] : memref<16x1024xf32, #tpu.memory_space<vmem>>, vector<16x32xf32>
    tpu.vector_store %arg10[%c0_127, %c640], %169 {strides = array<i32>} : memref<16x1024xf32, #tpu.memory_space<vmem>>, vector<16x32xf32>,
    %171 = vector.extract_strided_slice %139 {offsets = [96, 0], sizes = [16, 32], strides = [1, 1]} : vector<128x32xf32> to vector<16x32xf32>
    %172 = vector.extract_strided_slice %5 {offsets = [0, 768], sizes = [16, 32], strides = [1, 1]} : vector<16x1024xf32> to vector<16x32xf32>
    %173 = arith.mulf %171, %172 : vector<16x32xf32>
    %c0_128 = arith.constant 0 : index
    %c768 = arith.constant 768 : index
    %174 = vector.load %arg10[%c0_128, %c768] : memref<16x1024xf32, #tpu.memory_space<vmem>>, vector<16x32xf32>
    tpu.vector_store %arg10[%c0_128, %c768], %173 {strides = array<i32>} : memref<16x1024xf32, #tpu.memory_space<vmem>>, vector<16x32xf32>,
    %175 = vector.extract_strided_slice %139 {offsets = [112, 0], sizes = [16, 32], strides = [1, 1]} : vector<128x32xf32> to vector<16x32xf32>
    %176 = vector.extract_strided_slice %5 {offsets = [0, 896], sizes = [16, 32], strides = [1, 1]} : vector<16x1024xf32> to vector<16x32xf32>
    %177 = arith.mulf %175, %176 : vector<16x32xf32>
    %c0_129 = arith.constant 0 : index
    %c896 = arith.constant 896 : index
    %178 = vector.load %arg10[%c0_129, %c896] : memref<16x1024xf32, #tpu.memory_space<vmem>>, vector<16x32xf32>
    tpu.vector_store %arg10[%c0_129, %c896], %177 {strides = array<i32>} : memref<16x1024xf32, #tpu.memory_space<vmem>>, vector<16x32xf32>,
    %c0_130 = arith.constant 0 : index
    %c0_131 = arith.constant 0 : index
    %179 = vector.load %arg10[%c0_130, %c0_131] : memref<16x1024xf32, #tpu.memory_space<vmem>>, vector<16x1024xf32>
    %180 = arith.truncf %179 : vector<16x1024xf32> to vector<16x1024xbf16>
    %181 = vector.extract_strided_slice %180 {offsets = [0, 0], sizes = [16, 128], strides = [1, 1]} : vector<16x1024xbf16> to vector<16x128xbf16>
    %c0_132 = arith.constant 0 : index
    %c0_133 = arith.constant 0 : index
    %182 = vector.load %arg9[%c0_132, %c0_133] : memref<128x128xbf16, #tpu.memory_space<vmem>>, vector<16x128xbf16>
    tpu.vector_store %arg9[%c0_132, %c0_133], %181 {strides = array<i32>} : memref<128x128xbf16, #tpu.memory_space<vmem>>, vector<16x128xbf16>,
    %183 = vector.extract_strided_slice %180 {offsets = [0, 128], sizes = [16, 128], strides = [1, 1]} : vector<16x1024xbf16> to vector<16x128xbf16>
    %c16_134 = arith.constant 16 : index
    %c0_135 = arith.constant 0 : index
    %184 = vector.load %arg9[%c16_134, %c0_135] : memref<128x128xbf16, #tpu.memory_space<vmem>>, vector<16x128xbf16>
    tpu.vector_store %arg9[%c16_134, %c0_135], %183 {strides = array<i32>} : memref<128x128xbf16, #tpu.memory_space<vmem>>, vector<16x128xbf16>,
    %185 = vector.extract_strided_slice %180 {offsets = [0, 256], sizes = [16, 128], strides = [1, 1]} : vector<16x1024xbf16> to vector<16x128xbf16>
    %c32_136 = arith.constant 32 : index
    %c0_137 = arith.constant 0 : index
    %186 = vector.load %arg9[%c32_136, %c0_137] : memref<128x128xbf16, #tpu.memory_space<vmem>>, vector<16x128xbf16>
    tpu.vector_store %arg9[%c32_136, %c0_137], %185 {strides = array<i32>} : memref<128x128xbf16, #tpu.memory_space<vmem>>, vector<16x128xbf16>,
    %187 = vector.extract_strided_slice %180 {offsets = [0, 384], sizes = [16, 128], strides = [1, 1]} : vector<16x1024xbf16> to vector<16x128xbf16>
    %c48_138 = arith.constant 48 : index
    %c0_139 = arith.constant 0 : index
    %188 = vector.load %arg9[%c48_138, %c0_139] : memref<128x128xbf16, #tpu.memory_space<vmem>>, vector<16x128xbf16>
    tpu.vector_store %arg9[%c48_138, %c0_139], %187 {strides = array<i32>} : memref<128x128xbf16, #tpu.memory_space<vmem>>, vector<16x128xbf16>,
    %189 = vector.extract_strided_slice %180 {offsets = [0, 512], sizes = [16, 128], strides = [1, 1]} : vector<16x1024xbf16> to vector<16x128xbf16>
    %c64_140 = arith.constant 64 : index
    %c0_141 = arith.constant 0 : index
    %190 = vector.load %arg9[%c64_140, %c0_141] : memref<128x128xbf16, #tpu.memory_space<vmem>>, vector<16x128xbf16>
    tpu.vector_store %arg9[%c64_140, %c0_141], %189 {strides = array<i32>} : memref<128x128xbf16, #tpu.memory_space<vmem>>, vector<16x128xbf16>,
    %191 = vector.extract_strided_slice %180 {offsets = [0, 640], sizes = [16, 128], strides = [1, 1]} : vector<16x1024xbf16> to vector<16x128xbf16>
    %c80_142 = arith.constant 80 : index
    %c0_143 = arith.constant 0 : index
    %192 = vector.load %arg9[%c80_142, %c0_143] : memref<128x128xbf16, #tpu.memory_space<vmem>>, vector<16x128xbf16>
    tpu.vector_store %arg9[%c80_142, %c0_143], %191 {strides = array<i32>} : memref<128x128xbf16, #tpu.memory_space<vmem>>, vector<16x128xbf16>,
    %193 = vector.extract_strided_slice %180 {offsets = [0, 768], sizes = [16, 128], strides = [1, 1]} : vector<16x1024xbf16> to vector<16x128xbf16>
    %c96_144 = arith.constant 96 : index
    %c0_145 = arith.constant 0 : index
    %194 = vector.load %arg9[%c96_144, %c0_145] : memref<128x128xbf16, #tpu.memory_space<vmem>>, vector<16x128xbf16>
    tpu.vector_store %arg9[%c96_144, %c0_145], %193 {strides = array<i32>} : memref<128x128xbf16, #tpu.memory_space<vmem>>, vector<16x128xbf16>,
    %195 = vector.extract_strided_slice %180 {offsets = [0, 896], sizes = [16, 128], strides = [1, 1]} : vector<16x1024xbf16> to vector<16x128xbf16>
    %c112_146 = arith.constant 112 : index
    %c0_147 = arith.constant 0 : index
    %196 = vector.load %arg9[%c112_146, %c0_147] : memref<128x128xbf16, #tpu.memory_space<vmem>>, vector<16x128xbf16>
    tpu.vector_store %arg9[%c112_146, %c0_147], %195 {strides = array<i32>} : memref<128x128xbf16, #tpu.memory_space<vmem>>, vector<16x128xbf16>,
    %c0_148 = arith.constant 0 : index
    %c0_149 = arith.constant 0 : index
    %197 = vector.load %arg9[%c0_148, %c0_149] : memref<128x128xbf16, #tpu.memory_space<vmem>>, vector<128x128xbf16>
    %c0_150 = arith.constant 0 : index
    %c0_151 = arith.constant 0 : index
    %c0_152 = arith.constant 0 : index
    %198 = vector.load %arg6[%c0_150, %c0_151, %c0_152] : memref<5x128x32xbf16, #tpu.memory_space<vmem>>, vector<1x128x32xbf16>
    %199 = vector.shape_cast %198 : vector<1x128x32xbf16> to vector<128x32xbf16>
    %cst_153 = arith.constant dense<0.000000e+00> : vector<128x32xf32>
    %200 = tpu.matmul %197, %199, %cst_153 {dimension_numbers = #tpu.dot_dimension_numbers<[1], [0], [0], [1], [0, 0, 1, 1], [], []>} : vector<128x128xbf16>, vector<128x32xbf16>, vector<128x32xf32> -> vector<128x32xf32>
    %201 = arith.truncf %179 : vector<16x1024xf32> to vector<16x1024xbf16>
    %cst_154 = arith.constant dense<0.000000e+00> : vector<16x1024xf32>
    %202 = tpu.matmul %1, %201, %cst_154 {dimension_numbers = #tpu.dot_dimension_numbers<[1], [0], [0], [1], [0, 0, 1, 1], [], []>} : vector<16x16xbf16>, vector<16x1024xbf16>, vector<16x1024xf32> -> vector<16x1024xf32>
    %203 = arith.truncf %202 : vector<16x1024xf32> to vector<16x1024xbf16>
    %204 = vector.extract_strided_slice %203 {offsets = [0, 0], sizes = [16, 128], strides = [1, 1]} : vector<16x1024xbf16> to vector<16x128xbf16>
    %c0_155 = arith.constant 0 : index
    %c0_156 = arith.constant 0 : index
    %205 = vector.load %arg9[%c0_155, %c0_156] : memref<128x128xbf16, #tpu.memory_space<vmem>>, vector<16x128xbf16>
    tpu.vector_store %arg9[%c0_155, %c0_156], %204 {strides = array<i32>} : memref<128x128xbf16, #tpu.memory_space<vmem>>, vector<16x128xbf16>,
    %206 = vector.extract_strided_slice %203 {offsets = [0, 128], sizes = [16, 128], strides = [1, 1]} : vector<16x1024xbf16> to vector<16x128xbf16>
    %c16_157 = arith.constant 16 : index
    %c0_158 = arith.constant 0 : index
    %207 = vector.load %arg9[%c16_157, %c0_158] : memref<128x128xbf16, #tpu.memory_space<vmem>>, vector<16x128xbf16>
    tpu.vector_store %arg9[%c16_157, %c0_158], %206 {strides = array<i32>} : memref<128x128xbf16, #tpu.memory_space<vmem>>, vector<16x128xbf16>,
    %208 = vector.extract_strided_slice %203 {offsets = [0, 256], sizes = [16, 128], strides = [1, 1]} : vector<16x1024xbf16> to vector<16x128xbf16>
    %c32_159 = arith.constant 32 : index
    %c0_160 = arith.constant 0 : index
    %209 = vector.load %arg9[%c32_159, %c0_160] : memref<128x128xbf16, #tpu.memory_space<vmem>>, vector<16x128xbf16>
    tpu.vector_store %arg9[%c32_159, %c0_160], %208 {strides = array<i32>} : memref<128x128xbf16, #tpu.memory_space<vmem>>, vector<16x128xbf16>,
    %210 = vector.extract_strided_slice %203 {offsets = [0, 384], sizes = [16, 128], strides = [1, 1]} : vector<16x1024xbf16> to vector<16x128xbf16>
    %c48_161 = arith.constant 48 : index
    %c0_162 = arith.constant 0 : index
    %211 = vector.load %arg9[%c48_161, %c0_162] : memref<128x128xbf16, #tpu.memory_space<vmem>>, vector<16x128xbf16>
    tpu.vector_store %arg9[%c48_161, %c0_162], %210 {strides = array<i32>} : memref<128x128xbf16, #tpu.memory_space<vmem>>, vector<16x128xbf16>,
    %212 = vector.extract_strided_slice %203 {offsets = [0, 512], sizes = [16, 128], strides = [1, 1]} : vector<16x1024xbf16> to vector<16x128xbf16>
    %c64_163 = arith.constant 64 : index
    %c0_164 = arith.constant 0 : index
    %213 = vector.load %arg9[%c64_163, %c0_164] : memref<128x128xbf16, #tpu.memory_space<vmem>>, vector<16x128xbf16>
    tpu.vector_store %arg9[%c64_163, %c0_164], %212 {strides = array<i32>} : memref<128x128xbf16, #tpu.memory_space<vmem>>, vector<16x128xbf16>,
    %214 = vector.extract_strided_slice %203 {offsets = [0, 640], sizes = [16, 128], strides = [1, 1]} : vector<16x1024xbf16> to vector<16x128xbf16>
    %c80_165 = arith.constant 80 : index
    %c0_166 = arith.constant 0 : index
    %215 = vector.load %arg9[%c80_165, %c0_166] : memref<128x128xbf16, #tpu.memory_space<vmem>>, vector<16x128xbf16>
    tpu.vector_store %arg9[%c80_165, %c0_166], %214 {strides = array<i32>} : memref<128x128xbf16, #tpu.memory_space<vmem>>, vector<16x128xbf16>,
    %216 = vector.extract_strided_slice %203 {offsets = [0, 768], sizes = [16, 128], strides = [1, 1]} : vector<16x1024xbf16> to vector<16x128xbf16>
    %c96_167 = arith.constant 96 : index
    %c0_168 = arith.constant 0 : index
    %217 = vector.load %arg9[%c96_167, %c0_168] : memref<128x128xbf16, #tpu.memory_space<vmem>>, vector<16x128xbf16>
    tpu.vector_store %arg9[%c96_167, %c0_168], %216 {strides = array<i32>} : memref<128x128xbf16, #tpu.memory_space<vmem>>, vector<16x128xbf16>,
    %218 = vector.extract_strided_slice %203 {offsets = [0, 896], sizes = [16, 128], strides = [1, 1]} : vector<16x1024xbf16> to vector<16x128xbf16>
    %c112_169 = arith.constant 112 : index
    %c0_170 = arith.constant 0 : index
    %219 = vector.load %arg9[%c112_169, %c0_170] : memref<128x128xbf16, #tpu.memory_space<vmem>>, vector<16x128xbf16>
    tpu.vector_store %arg9[%c112_169, %c0_170], %218 {strides = array<i32>} : memref<128x128xbf16, #tpu.memory_space<vmem>>, vector<16x128xbf16>,
    %c0_171 = arith.constant 0 : index
    %c0_172 = arith.constant 0 : index
    %220 = vector.load %arg9[%c0_171, %c0_172] : memref<128x128xbf16, #tpu.memory_space<vmem>>, vector<128x128xbf16>
    %c1_173 = arith.constant 1 : index
    %c0_174 = arith.constant 0 : index
    %c0_175 = arith.constant 0 : index
    %221 = vector.load %arg6[%c1_173, %c0_174, %c0_175] : memref<5x128x32xbf16, #tpu.memory_space<vmem>>, vector<1x128x32xbf16>
    %222 = vector.shape_cast %221 : vector<1x128x32xbf16> to vector<128x32xbf16>
    %cst_176 = arith.constant dense<0.000000e+00> : vector<128x32xf32>
    %223 = tpu.matmul %220, %222, %cst_176 {dimension_numbers = #tpu.dot_dimension_numbers<[1], [0], [0], [1], [0, 0, 1, 1], [], []>} : vector<128x128xbf16>, vector<128x32xbf16>, vector<128x32xf32> -> vector<128x32xf32>
    %224 = arith.addf %200, %223 : vector<128x32xf32>
    %225 = arith.truncf %202 : vector<16x1024xf32> to vector<16x1024xbf16>
    %cst_177 = arith.constant dense<0.000000e+00> : vector<16x1024xf32>
    %226 = tpu.matmul %1, %225, %cst_177 {dimension_numbers = #tpu.dot_dimension_numbers<[1], [0], [0], [1], [0, 0, 1, 1], [], []>} : vector<16x16xbf16>, vector<16x1024xbf16>, vector<16x1024xf32> -> vector<16x1024xf32>
    %cst_178 = arith.constant 2.000000e+00 : f32
    %227 = vector.broadcast %cst_178 : f32 to vector<16x1024xf32>
    %228 = arith.mulf %227, %226 : vector<16x1024xf32>
    %229 = arith.subf %228, %179 : vector<16x1024xf32>
    %230 = arith.truncf %229 : vector<16x1024xf32> to vector<16x1024xbf16>
    %231 = vector.extract_strided_slice %230 {offsets = [0, 0], sizes = [16, 128], strides = [1, 1]} : vector<16x1024xbf16> to vector<16x128xbf16>
    %c0_179 = arith.constant 0 : index
    %c0_180 = arith.constant 0 : index
    %232 = vector.load %arg9[%c0_179, %c0_180] : memref<128x128xbf16, #tpu.memory_space<vmem>>, vector<16x128xbf16>
    tpu.vector_store %arg9[%c0_179, %c0_180], %231 {strides = array<i32>} : memref<128x128xbf16, #tpu.memory_space<vmem>>, vector<16x128xbf16>,
    %233 = vector.extract_strided_slice %230 {offsets = [0, 128], sizes = [16, 128], strides = [1, 1]} : vector<16x1024xbf16> to vector<16x128xbf16>
    %c16_181 = arith.constant 16 : index
    %c0_182 = arith.constant 0 : index
    %234 = vector.load %arg9[%c16_181, %c0_182] : memref<128x128xbf16, #tpu.memory_space<vmem>>, vector<16x128xbf16>
    tpu.vector_store %arg9[%c16_181, %c0_182], %233 {strides = array<i32>} : memref<128x128xbf16, #tpu.memory_space<vmem>>, vector<16x128xbf16>,
    %235 = vector.extract_strided_slice %230 {offsets = [0, 256], sizes = [16, 128], strides = [1, 1]} : vector<16x1024xbf16> to vector<16x128xbf16>
    %c32_183 = arith.constant 32 : index
    %c0_184 = arith.constant 0 : index
    %236 = vector.load %arg9[%c32_183, %c0_184] : memref<128x128xbf16, #tpu.memory_space<vmem>>, vector<16x128xbf16>
    tpu.vector_store %arg9[%c32_183, %c0_184], %235 {strides = array<i32>} : memref<128x128xbf16, #tpu.memory_space<vmem>>, vector<16x128xbf16>,
    %237 = vector.extract_strided_slice %230 {offsets = [0, 384], sizes = [16, 128], strides = [1, 1]} : vector<16x1024xbf16> to vector<16x128xbf16>
    %c48_185 = arith.constant 48 : index
    %c0_186 = arith.constant 0 : index
    %238 = vector.load %arg9[%c48_185, %c0_186] : memref<128x128xbf16, #tpu.memory_space<vmem>>, vector<16x128xbf16>
    tpu.vector_store %arg9[%c48_185, %c0_186], %237 {strides = array<i32>} : memref<128x128xbf16, #tpu.memory_space<vmem>>, vector<16x128xbf16>,
    %239 = vector.extract_strided_slice %230 {offsets = [0, 512], sizes = [16, 128], strides = [1, 1]} : vector<16x1024xbf16> to vector<16x128xbf16>
    %c64_187 = arith.constant 64 : index
    %c0_188 = arith.constant 0 : index
    %240 = vector.load %arg9[%c64_187, %c0_188] : memref<128x128xbf16, #tpu.memory_space<vmem>>, vector<16x128xbf16>
    tpu.vector_store %arg9[%c64_187, %c0_188], %239 {strides = array<i32>} : memref<128x128xbf16, #tpu.memory_space<vmem>>, vector<16x128xbf16>,
    %241 = vector.extract_strided_slice %230 {offsets = [0, 640], sizes = [16, 128], strides = [1, 1]} : vector<16x1024xbf16> to vector<16x128xbf16>
    %c80_189 = arith.constant 80 : index
    %c0_190 = arith.constant 0 : index
    %242 = vector.load %arg9[%c80_189, %c0_190] : memref<128x128xbf16, #tpu.memory_space<vmem>>, vector<16x128xbf16>
    tpu.vector_store %arg9[%c80_189, %c0_190], %241 {strides = array<i32>} : memref<128x128xbf16, #tpu.memory_space<vmem>>, vector<16x128xbf16>,
    %243 = vector.extract_strided_slice %230 {offsets = [0, 768], sizes = [16, 128], strides = [1, 1]} : vector<16x1024xbf16> to vector<16x128xbf16>
    %c96_191 = arith.constant 96 : index
    %c0_192 = arith.constant 0 : index
    %244 = vector.load %arg9[%c96_191, %c0_192] : memref<128x128xbf16, #tpu.memory_space<vmem>>, vector<16x128xbf16>
    tpu.vector_store %arg9[%c96_191, %c0_192], %243 {strides = array<i32>} : memref<128x128xbf16, #tpu.memory_space<vmem>>, vector<16x128xbf16>,
    %245 = vector.extract_strided_slice %230 {offsets = [0, 896], sizes = [16, 128], strides = [1, 1]} : vector<16x1024xbf16> to vector<16x128xbf16>
    %c112_193 = arith.constant 112 : index
    %c0_194 = arith.constant 0 : index
    %246 = vector.load %arg9[%c112_193, %c0_194] : memref<128x128xbf16, #tpu.memory_space<vmem>>, vector<16x128xbf16>
    tpu.vector_store %arg9[%c112_193, %c0_194], %245 {strides = array<i32>} : memref<128x128xbf16, #tpu.memory_space<vmem>>, vector<16x128xbf16>,
    %c0_195 = arith.constant 0 : index
    %c0_196 = arith.constant 0 : index
    %247 = vector.load %arg9[%c0_195, %c0_196] : memref<128x128xbf16, #tpu.memory_space<vmem>>, vector<128x128xbf16>
    %c2_197 = arith.constant 2 : index
    %c0_198 = arith.constant 0 : index
    %c0_199 = arith.constant 0 : index
    %248 = vector.load %arg6[%c2_197, %c0_198, %c0_199] : memref<5x128x32xbf16, #tpu.memory_space<vmem>>, vector<1x128x32xbf16>
    %249 = vector.shape_cast %248 : vector<1x128x32xbf16> to vector<128x32xbf16>
    %cst_200 = arith.constant dense<0.000000e+00> : vector<128x32xf32>
    %250 = tpu.matmul %247, %249, %cst_200 {dimension_numbers = #tpu.dot_dimension_numbers<[1], [0], [0], [1], [0, 0, 1, 1], [], []>} : vector<128x128xbf16>, vector<128x32xbf16>, vector<128x32xf32> -> vector<128x32xf32>
    %251 = arith.addf %224, %250 : vector<128x32xf32>
    %252 = arith.truncf %202 : vector<16x1024xf32> to vector<16x1024xbf16>
    %cst_201 = arith.constant dense<0.000000e+00> : vector<16x1024xf32>
    %253 = tpu.matmul %3, %252, %cst_201 {dimension_numbers = #tpu.dot_dimension_numbers<[1], [0], [0], [1], [0, 0, 1, 1], [], []>} : vector<16x16xbf16>, vector<16x1024xbf16>, vector<16x1024xf32> -> vector<16x1024xf32>
    %254 = arith.truncf %253 : vector<16x1024xf32> to vector<16x1024xbf16>
    %255 = vector.extract_strided_slice %254 {offsets = [0, 0], sizes = [16, 128], strides = [1, 1]} : vector<16x1024xbf16> to vector<16x128xbf16>
    %c0_202 = arith.constant 0 : index
    %c0_203 = arith.constant 0 : index
    %256 = vector.load %arg9[%c0_202, %c0_203] : memref<128x128xbf16, #tpu.memory_space<vmem>>, vector<16x128xbf16>
    tpu.vector_store %arg9[%c0_202, %c0_203], %255 {strides = array<i32>} : memref<128x128xbf16, #tpu.memory_space<vmem>>, vector<16x128xbf16>,
    %257 = vector.extract_strided_slice %254 {offsets = [0, 128], sizes = [16, 128], strides = [1, 1]} : vector<16x1024xbf16> to vector<16x128xbf16>
    %c16_204 = arith.constant 16 : index
    %c0_205 = arith.constant 0 : index
    %258 = vector.load %arg9[%c16_204, %c0_205] : memref<128x128xbf16, #tpu.memory_space<vmem>>, vector<16x128xbf16>
    tpu.vector_store %arg9[%c16_204, %c0_205], %257 {strides = array<i32>} : memref<128x128xbf16, #tpu.memory_space<vmem>>, vector<16x128xbf16>,
    %259 = vector.extract_strided_slice %254 {offsets = [0, 256], sizes = [16, 128], strides = [1, 1]} : vector<16x1024xbf16> to vector<16x128xbf16>
    %c32_206 = arith.constant 32 : index
    %c0_207 = arith.constant 0 : index
    %260 = vector.load %arg9[%c32_206, %c0_207] : memref<128x128xbf16, #tpu.memory_space<vmem>>, vector<16x128xbf16>
    tpu.vector_store %arg9[%c32_206, %c0_207], %259 {strides = array<i32>} : memref<128x128xbf16, #tpu.memory_space<vmem>>, vector<16x128xbf16>,
    %261 = vector.extract_strided_slice %254 {offsets = [0, 384], sizes = [16, 128], strides = [1, 1]} : vector<16x1024xbf16> to vector<16x128xbf16>
    %c48_208 = arith.constant 48 : index
    %c0_209 = arith.constant 0 : index
    %262 = vector.load %arg9[%c48_208, %c0_209] : memref<128x128xbf16, #tpu.memory_space<vmem>>, vector<16x128xbf16>
    tpu.vector_store %arg9[%c48_208, %c0_209], %261 {strides = array<i32>} : memref<128x128xbf16, #tpu.memory_space<vmem>>, vector<16x128xbf16>,
    %263 = vector.extract_strided_slice %254 {offsets = [0, 512], sizes = [16, 128], strides = [1, 1]} : vector<16x1024xbf16> to vector<16x128xbf16>
    %c64_210 = arith.constant 64 : index
    %c0_211 = arith.constant 0 : index
    %264 = vector.load %arg9[%c64_210, %c0_211] : memref<128x128xbf16, #tpu.memory_space<vmem>>, vector<16x128xbf16>
    tpu.vector_store %arg9[%c64_210, %c0_211], %263 {strides = array<i32>} : memref<128x128xbf16, #tpu.memory_space<vmem>>, vector<16x128xbf16>,
    %265 = vector.extract_strided_slice %254 {offsets = [0, 640], sizes = [16, 128], strides = [1, 1]} : vector<16x1024xbf16> to vector<16x128xbf16>
    %c80_212 = arith.constant 80 : index
    %c0_213 = arith.constant 0 : index
    %266 = vector.load %arg9[%c80_212, %c0_213] : memref<128x128xbf16, #tpu.memory_space<vmem>>, vector<16x128xbf16>
    tpu.vector_store %arg9[%c80_212, %c0_213], %265 {strides = array<i32>} : memref<128x128xbf16, #tpu.memory_space<vmem>>, vector<16x128xbf16>,
    %267 = vector.extract_strided_slice %254 {offsets = [0, 768], sizes = [16, 128], strides = [1, 1]} : vector<16x1024xbf16> to vector<16x128xbf16>
    %c96_214 = arith.constant 96 : index
    %c0_215 = arith.constant 0 : index
    %268 = vector.load %arg9[%c96_214, %c0_215] : memref<128x128xbf16, #tpu.memory_space<vmem>>, vector<16x128xbf16>
    tpu.vector_store %arg9[%c96_214, %c0_215], %267 {strides = array<i32>} : memref<128x128xbf16, #tpu.memory_space<vmem>>, vector<16x128xbf16>,
    %269 = vector.extract_strided_slice %254 {offsets = [0, 896], sizes = [16, 128], strides = [1, 1]} : vector<16x1024xbf16> to vector<16x128xbf16>
    %c112_216 = arith.constant 112 : index
    %c0_217 = arith.constant 0 : index
    %270 = vector.load %arg9[%c112_216, %c0_217] : memref<128x128xbf16, #tpu.memory_space<vmem>>, vector<16x128xbf16>
    tpu.vector_store %arg9[%c112_216, %c0_217], %269 {strides = array<i32>} : memref<128x128xbf16, #tpu.memory_space<vmem>>, vector<16x128xbf16>,
    %c0_218 = arith.constant 0 : index
    %c0_219 = arith.constant 0 : index
    %271 = vector.load %arg9[%c0_218, %c0_219] : memref<128x128xbf16, #tpu.memory_space<vmem>>, vector<128x128xbf16>
    %c3_220 = arith.constant 3 : index
    %c0_221 = arith.constant 0 : index
    %c0_222 = arith.constant 0 : index
    %272 = vector.load %arg6[%c3_220, %c0_221, %c0_222] : memref<5x128x32xbf16, #tpu.memory_space<vmem>>, vector<1x128x32xbf16>
    %273 = vector.shape_cast %272 : vector<1x128x32xbf16> to vector<128x32xbf16>
    %cst_223 = arith.constant dense<0.000000e+00> : vector<128x32xf32>
    %274 = tpu.matmul %271, %273, %cst_223 {dimension_numbers = #tpu.dot_dimension_numbers<[1], [0], [0], [1], [0, 0, 1, 1], [], []>} : vector<128x128xbf16>, vector<128x32xbf16>, vector<128x32xf32> -> vector<128x32xf32>
    %275 = arith.addf %251, %274 : vector<128x32xf32>
    %276 = arith.truncf %253 : vector<16x1024xf32> to vector<16x1024xbf16>
    %cst_224 = arith.constant dense<0.000000e+00> : vector<16x1024xf32>
    %277 = tpu.matmul %3, %276, %cst_224 {dimension_numbers = #tpu.dot_dimension_numbers<[1], [0], [0], [1], [0, 0, 1, 1], [], []>} : vector<16x16xbf16>, vector<16x1024xbf16>, vector<16x1024xf32> -> vector<16x1024xf32>
    %cst_225 = arith.constant 2.000000e+00 : f32
    %278 = vector.broadcast %cst_225 : f32 to vector<16x1024xf32>
    %279 = arith.mulf %278, %277 : vector<16x1024xf32>
    %280 = arith.subf %279, %202 : vector<16x1024xf32>
    %281 = arith.truncf %280 : vector<16x1024xf32> to vector<16x1024xbf16>
    %282 = vector.extract_strided_slice %281 {offsets = [0, 0], sizes = [16, 128], strides = [1, 1]} : vector<16x1024xbf16> to vector<16x128xbf16>
    %c0_226 = arith.constant 0 : index
    %c0_227 = arith.constant 0 : index
    %283 = vector.load %arg9[%c0_226, %c0_227] : memref<128x128xbf16, #tpu.memory_space<vmem>>, vector<16x128xbf16>
    tpu.vector_store %arg9[%c0_226, %c0_227], %282 {strides = array<i32>} : memref<128x128xbf16, #tpu.memory_space<vmem>>, vector<16x128xbf16>,
    %284 = vector.extract_strided_slice %281 {offsets = [0, 128], sizes = [16, 128], strides = [1, 1]} : vector<16x1024xbf16> to vector<16x128xbf16>
    %c16_228 = arith.constant 16 : index
    %c0_229 = arith.constant 0 : index
    %285 = vector.load %arg9[%c16_228, %c0_229] : memref<128x128xbf16, #tpu.memory_space<vmem>>, vector<16x128xbf16>
    tpu.vector_store %arg9[%c16_228, %c0_229], %284 {strides = array<i32>} : memref<128x128xbf16, #tpu.memory_space<vmem>>, vector<16x128xbf16>,
    %286 = vector.extract_strided_slice %281 {offsets = [0, 256], sizes = [16, 128], strides = [1, 1]} : vector<16x1024xbf16> to vector<16x128xbf16>
    %c32_230 = arith.constant 32 : index
    %c0_231 = arith.constant 0 : index
    %287 = vector.load %arg9[%c32_230, %c0_231] : memref<128x128xbf16, #tpu.memory_space<vmem>>, vector<16x128xbf16>
    tpu.vector_store %arg9[%c32_230, %c0_231], %286 {strides = array<i32>} : memref<128x128xbf16, #tpu.memory_space<vmem>>, vector<16x128xbf16>,
    %288 = vector.extract_strided_slice %281 {offsets = [0, 384], sizes = [16, 128], strides = [1, 1]} : vector<16x1024xbf16> to vector<16x128xbf16>
    %c48_232 = arith.constant 48 : index
    %c0_233 = arith.constant 0 : index
    %289 = vector.load %arg9[%c48_232, %c0_233] : memref<128x128xbf16, #tpu.memory_space<vmem>>, vector<16x128xbf16>
    tpu.vector_store %arg9[%c48_232, %c0_233], %288 {strides = array<i32>} : memref<128x128xbf16, #tpu.memory_space<vmem>>, vector<16x128xbf16>,
    %290 = vector.extract_strided_slice %281 {offsets = [0, 512], sizes = [16, 128], strides = [1, 1]} : vector<16x1024xbf16> to vector<16x128xbf16>
    %c64_234 = arith.constant 64 : index
    %c0_235 = arith.constant 0 : index
    %291 = vector.load %arg9[%c64_234, %c0_235] : memref<128x128xbf16, #tpu.memory_space<vmem>>, vector<16x128xbf16>
    tpu.vector_store %arg9[%c64_234, %c0_235], %290 {strides = array<i32>} : memref<128x128xbf16, #tpu.memory_space<vmem>>, vector<16x128xbf16>,
    %292 = vector.extract_strided_slice %281 {offsets = [0, 640], sizes = [16, 128], strides = [1, 1]} : vector<16x1024xbf16> to vector<16x128xbf16>
    %c80_236 = arith.constant 80 : index
    %c0_237 = arith.constant 0 : index
    %293 = vector.load %arg9[%c80_236, %c0_237] : memref<128x128xbf16, #tpu.memory_space<vmem>>, vector<16x128xbf16>
    tpu.vector_store %arg9[%c80_236, %c0_237], %292 {strides = array<i32>} : memref<128x128xbf16, #tpu.memory_space<vmem>>, vector<16x128xbf16>,
    %294 = vector.extract_strided_slice %281 {offsets = [0, 768], sizes = [16, 128], strides = [1, 1]} : vector<16x1024xbf16> to vector<16x128xbf16>
    %c96_238 = arith.constant 96 : index
    %c0_239 = arith.constant 0 : index
    %295 = vector.load %arg9[%c96_238, %c0_239] : memref<128x128xbf16, #tpu.memory_space<vmem>>, vector<16x128xbf16>
    tpu.vector_store %arg9[%c96_238, %c0_239], %294 {strides = array<i32>} : memref<128x128xbf16, #tpu.memory_space<vmem>>, vector<16x128xbf16>,
    %296 = vector.extract_strided_slice %281 {offsets = [0, 896], sizes = [16, 128], strides = [1, 1]} : vector<16x1024xbf16> to vector<16x128xbf16>
    %c112_240 = arith.constant 112 : index
    %c0_241 = arith.constant 0 : index
    %297 = vector.load %arg9[%c112_240, %c0_241] : memref<128x128xbf16, #tpu.memory_space<vmem>>, vector<16x128xbf16>
    tpu.vector_store %arg9[%c112_240, %c0_241], %296 {strides = array<i32>} : memref<128x128xbf16, #tpu.memory_space<vmem>>, vector<16x128xbf16>,
    %c0_242 = arith.constant 0 : index
    %c0_243 = arith.constant 0 : index
    %298 = vector.load %arg9[%c0_242, %c0_243] : memref<128x128xbf16, #tpu.memory_space<vmem>>, vector<128x128xbf16>
    %c4_244 = arith.constant 4 : index
    %c0_245 = arith.constant 0 : index
    %c0_246 = arith.constant 0 : index
    %299 = vector.load %arg6[%c4_244, %c0_245, %c0_246] : memref<5x128x32xbf16, #tpu.memory_space<vmem>>, vector<1x128x32xbf16>
    %300 = vector.shape_cast %299 : vector<1x128x32xbf16> to vector<128x32xbf16>
    %cst_247 = arith.constant dense<0.000000e+00> : vector<128x32xf32>
    %301 = tpu.matmul %298, %300, %cst_247 {dimension_numbers = #tpu.dot_dimension_numbers<[1], [0], [0], [1], [0, 0, 1, 1], [], []>} : vector<128x128xbf16>, vector<128x32xbf16>, vector<128x32xf32> -> vector<128x32xf32>
    %302 = arith.addf %275, %301 : vector<128x32xf32>
    %c0_248 = arith.constant 0 : index
    %c0_249 = arith.constant 0 : index
    %303 = vector.load %arg7[%c0_248, %c0_249] : memref<1x32xf32, #tpu.memory_space<vmem>>, vector<1x32xf32>
    %304 = vector.broadcast %303 : vector<1x32xf32> to vector<128x32xf32>
    %305 = arith.addf %302, %304 : vector<128x32xf32>
    %306 = math.tanh %305 : vector<128x32xf32>
    %307 = arith.mulf %145, %7 : vector<128x32xf32>
    %cst_250 = arith.constant 1.000000e+00 : f32
    %308 = vector.broadcast %cst_250 : f32 to vector<128x32xf32>
    %309 = arith.subf %308, %145 : vector<128x32xf32>
    %310 = arith.mulf %309, %306 : vector<128x32xf32>
    %311 = arith.addf %307, %310 : vector<128x32xf32>
    %cst_251 = arith.constant 0.000000e+00 : f32
    %312 = vector.broadcast %cst_251 : f32 to vector<128x96xf32>
    %313 = tpu.concatenate %311, %312 in 1 : vector<128x32xf32>, vector<128x96xf32> -> vector<128x128xf32>
    %314 = tpu.transpose %313, [1, 0] : vector<128x128xf32> -> vector<128x128xf32>
    %315 = vector.extract_strided_slice %314 {offsets = [0, 0], sizes = [32, 128], strides = [1, 1]} : vector<128x128xf32> to vector<32x128xf32>
    %c0_252 = arith.constant 0 : index
    %c0_253 = arith.constant 0 : index
    %c0_254 = arith.constant 0 : index
    %316 = vector.load %arg8[%c0_252, %c0_253, %c0_254] : memref<1x32x128xf32, #tpu.memory_space<vmem>>, vector<1x32x128xf32>
    %317 = vector.shape_cast %316 : vector<1x32x128xf32> to vector<32x128xf32>
    %318 = vector.shape_cast %315 : vector<32x128xf32> to vector<1x32x128xf32>
    tpu.vector_store %arg8[%c0_252, %c0_253, %c0_254], %318 {strides = array<i32>} : memref<1x32x128xf32, #tpu.memory_space<vmem>>, vector<1x32x128xf32>,
    return
  }
  func.func @transform_0(%arg0: i32) -> (i32, i32, i32) {
    %c0_i32 = arith.constant 0 : i32
    %c0_i32_0 = arith.constant 0 : i32
    %c0_i32_1 = arith.constant 0 : i32
    return %arg0, %c0_i32, %c0_i32_0 : i32, i32, i32
  }
  func.func @transform_1(%arg0: i32) -> (i32, i32, i32) {
    %c0_i32 = arith.constant 0 : i32
    %c0_i32_0 = arith.constant 0 : i32
    %c0_i32_1 = arith.constant 0 : i32
    return %arg0, %c0_i32, %c0_i32_0 : i32, i32, i32
  }
  func.func @transform_2(%arg0: i32) -> (i32, i32, i32) {
    %c0_i32 = arith.constant 0 : i32
    %c0_i32_0 = arith.constant 0 : i32
    %c0_i32_1 = arith.constant 0 : i32
    %c0_i32_2 = arith.constant 0 : i32
    return %c0_i32, %c0_i32_0, %c0_i32_1 : i32, i32, i32
  }
  func.func @transform_3(%arg0: i32) -> (i32, i32, i32) {
    %c0_i32 = arith.constant 0 : i32
    %c0_i32_0 = arith.constant 0 : i32
    %c0_i32_1 = arith.constant 0 : i32
    %c0_i32_2 = arith.constant 0 : i32
    return %c0_i32, %c0_i32_0, %c0_i32_1 : i32, i32, i32
  }
  func.func @transform_4(%arg0: i32) -> (i32, i32) {
    %c0_i32 = arith.constant 0 : i32
    %c0_i32_0 = arith.constant 0 : i32
    %c0_i32_1 = arith.constant 0 : i32
    return %c0_i32, %c0_i32_0 : i32, i32
  }
  func.func @transform_5(%arg0: i32) -> (i32, i32, i32) {
    %c0_i32 = arith.constant 0 : i32
    %c0_i32_0 = arith.constant 0 : i32
    %c0_i32_1 = arith.constant 0 : i32
    %c0_i32_2 = arith.constant 0 : i32
    return %c0_i32, %c0_i32_0, %c0_i32_1 : i32, i32, i32
  }
  func.func @transform_6(%arg0: i32) -> (i32, i32) {
    %c0_i32 = arith.constant 0 : i32
    %c0_i32_0 = arith.constant 0 : i32
    %c0_i32_1 = arith.constant 0 : i32
    return %c0_i32, %c0_i32_0 : i32, i32
  }
  func.func @transform_7(%arg0: i32) -> (i32, i32, i32) {
    %c0_i32 = arith.constant 0 : i32
    %c0_i32_0 = arith.constant 0 : i32
    %c0_i32_1 = arith.constant 0 : i32
    return %arg0, %c0_i32, %c0_i32_0 : i32, i32, i32
  }
}

</mosaic_0001>

<bundles_post_ra>
// kernel: tpu_custom_call.1
= control target key start
LH: loop header
LB: loop body
LE: loop exit
PB: predicated region body
PF: predicated region fallthrough
CT: control target
= control target key end

     0   :  { %s7078_s0 = inlined_call_operand.hbm [shape: f32[2,16,1024], index: 0, kind: input, shape index: {}]   ;;  %s7079_s1 = inlined_call_operand.hbm [shape: f32[2,128,32], index: 1, kind: input, shape index: {}]   ;;  %s7080_s2 = inlined_call_operand.hbm [shape: bf16[2,16,16], index: 2, kind: input, shape index: {}]   ;;  %s7081_s3 = inlined_call_operand.hbm [shape: bf16[5,128,64], index: 3, kind: input, shape index: {}]   ;;  %s7082_s4 = inlined_call_operand.hbm [shape: f32[1,64], index: 4, kind: input, shape index: {}]   ;;  %s7083_s5 = inlined_call_operand.hbm [shape: bf16[5,128,32], index: 5, kind: input, shape index: {}]   ;;  %s7084_s6 = inlined_call_operand.hbm [shape: f32[1,32], index: 6, kind: input, shape index: {}]   ;;  %s7085_s7 = inlined_call_operand.hbm [shape: f32[2,32,128], index: 7, kind: output, shape index: {}]  }
   0x1   :  { %7105 = sst [smem:[#allocation29_spill]] %s7078_s0 }
   0x2   :  { %7106 = sst [smem:[#allocation30_spill]] %s7080_s2 }
   0x3   :  { %7107 = sst [smem:[#allocation31_spill]] %s7081_s3 }
   0x4   :  { %7108 = sst [smem:[#allocation32_spill]] %s7082_s4 }
   0x5   :  { %12 = vsyncpa [#allocation5], 0 }
   0x6   :  { %14 = vsyncpa [#allocation5 + $0x1], 0 }
   0x7   :  { %15 = vsyncpa [#allocation8], 0 }
   0x8   :  { %17 = vsyncpa [#allocation8 + $0x1], 0 }
   0x9   :  { %18 = vsyncpa [#allocation11], 0 }
   0xa   :  { %19 = vsyncpa [#allocation14], 0 }
   0xb   :  { %20 = vsyncpa [#allocation6], 0 }
   0xc   :  { %22 = vsyncpa [#allocation6 + $0x1], 0  ;;  %s6027_s24 = smov 0   ;;  %s6029_s25 = smov 0  }
   0xd   :  { %s6031_s26 = smov 0   ;;  %s6033_s27 = smov 0  }
   0xe LB: > { %s5969_s28 = smov [#allocation9]   ;;  %s6048_s30 = sadd.s32 4294967295, %s5967_s27   ;;  %s5967_s27 = sphi %s6033_s27, %s7149_s27   ;;  %s5963_s26 = sphi %s6031_s26, %s7148_s26   ;;  %s5959_s25 = sphi %s6029_s25, %s7147_s25   ;;  %s5955_s24 = sphi %s6027_s24, %s7146_s24  }
   0xf   : > { %s228_s29 = sshll.u32 %s5969_s28, 4  ;;  %p4607_p0 = scmp.ge.s32.totalorder %s5967_s27, 1  ;;  %s6053_s29 = int_to_ptr.vmem [resolvable:$true] %s228_s29 }
  0x10   : > { %p7086_p1 = scmp.eq.s32.totalorder %s6048_s30, 0  ;;  %p216_p2 = scmp.lt.s32.totalorder %s5967_s27, 3 }
  0x11   : > { %s5970_s9 = smov [#allocation10]   ;;  %s5971_s12 = smov [#allocation13]  }
  0x12   : > { %p6055_p3 = pnand %p4607_p0, %p216_p2  ;;  %s241_s10 = sshll.u32 %s5970_s9, 4  ;;  %s6068_s10 = int_to_ptr.vmem [resolvable:$true] %s241_s10 }
  0x13   : > { %s265_s13 = sshll.u32 %s5971_s12, 4  ;;  %s7111_s2 = sld [smem:[#allocation30_spill]]  ;;  %s6070_s13 = int_to_ptr.vmem [resolvable:$true] %s265_s13 }
  0x14   : > { %s7109_s8 = scalar_select %p6055_p3, 1, 0 }
  0x15   : > { %p5403_p5 = pneg %p6055_p3 }
  0x17   : > { %p6064_p6 = pnand %p5403_p5, %p7086_p1 }
  0x19   : > { %s5685_s16 = scalar_lea.hbm %s7111_s2, 256  ;;  %p6080_p8 = pneg %p6064_p6 }
  0x1a   : > { %p5686_p7 = scmp.ne.s32.totalorder %s7111_s2, %s5685_s16  ;;  %p5692_p11 = scmp.lt.u32.totalorder %s5685_s16, %s7111_s2 }
  0x1c   : > { %p5688_p9 = pnand %p6080_p8, %p5686_p7 }
  0x1e   : > { %p5689_p10 = pneg %p5688_p9 }
  0x20   : > { %p5694_p12 = pnand %p5692_p11, %p5689_p10 }
  0x22   : > { %5697 = shalt.err (!%p5694_p12)
}
  0x23   : > { %s5698_s22 = scalar_lea.vmem %s6053_s29, 256  ;;  %p5706_p5 = scmp.lt.s32.totalorder %s6053_s29, %s6053_s29 }
  0x24   : > { %p5699_p13 = scmp.ne.s32.totalorder %s6053_s29, %s5698_s22  ;;  %p5707_p4 = scmp.lt.s32.totalorder %s5698_s22, %s5698_s22 }
  0x26   : > { %p5701_p0 = pnand %p5699_p13, %p6080_p8  ;;  %p5708_p7 = por %p5707_p4, %p5706_p5 }
  0x28   : > { %p5702_p2 = pneg %p5701_p0 }
  0x2a   : > { %p5709_p9 = pnand %p5708_p7, %p5702_p2 }
  0x2c   : > { %5712 = shalt.err (!%p5709_p9)
}
  0x2d   : > { %s7089_s23 = smov 64   ;;  %s5973_s28 = smov 4  }
  0x2e   : > { %5406 = dma.hbm_to_vmem [thread:$0]  (!%p6064_p6), %s7111_s2, 256, %s6053_s29, [#allocation8], %s7089_s23, %s7089_s23, %s5973_s28  }
  0x2f   : > { %s7113_s3 = sld [smem:[#allocation31_spill]] }
  0x35   : > { %s5713_s16 = scalar_lea.hbm %s7113_s3, 5120 }
  0x36   : > { %p5714_p4 = scmp.ne.s32.totalorder %s7113_s3, %s5713_s16  ;;  %p5720_p12 = scmp.lt.u32.totalorder %s5713_s16, %s7113_s3 }
  0x38   : > { %p5716_p10 = pnand %p5714_p4, %p6080_p8 }
  0x3a   : > { %p5717_p11 = pneg %p5716_p10 }
  0x3c   : > { %p5722_p13 = pnand %p5720_p12, %p5717_p11 }
  0x3e   : > { %5725 = shalt.err (!%p5722_p13)
}
  0x3f   : > { %s5726_s29 = scalar_lea.vmem %s6068_s10, 5120  ;;  %p5734_p7 = scmp.lt.s32.totalorder %s6068_s10, %s6068_s10 }
  0x40   : > { %p5727_p0 = scmp.ne.s32.totalorder %s6068_s10, %s5726_s29  ;;  %p5735_p9 = scmp.lt.s32.totalorder %s5726_s29, %s5726_s29 }
  0x42   : > { %p5729_p2 = pnand %p5727_p0, %p6080_p8  ;;  %p5736_p4 = por %p5735_p9, %p5734_p7 }
  0x44   : > { %p5730_p5 = pneg %p5729_p2 }
  0x46   : > { %p5737_p10 = pnand %p5736_p4, %p5730_p5 }
  0x48   : > { %5740 = shalt.err (!%p5737_p10)
}
  0x49   : > { %5409 = dma.hbm_to_vmem [thread:$0]  (!%p6064_p6), %s7113_s3, 5120, %s6068_s10, [#allocation11], %s7089_s23, %s7089_s23, %s5973_s28  }
  0x4a   : > { %s5741_s15 = scalar_lea.hbm %s7083_s5, 5120 }
  0x4b   : > { %p5742_p11 = scmp.ne.s32.totalorder %s7083_s5, %s5741_s15  ;;  %p5748_p0 = scmp.lt.u32.totalorder %s5741_s15, %s7083_s5 }
  0x4d   : > { %p5744_p12 = pnand %p5742_p11, %p6080_p8 }
  0x4f   : > { %p5745_p13 = pneg %p5744_p12 }
  0x51   : > { %p5750_p2 = pnand %p5748_p0, %p5745_p13 }
  0x53   : > { %5753 = shalt.err (!%p5750_p2)
}
  0x54   : > { %s5754_s10 = scalar_lea.vmem %s6070_s13, 5120  ;;  %p5762_p4 = scmp.lt.s32.totalorder %s6070_s13, %s6070_s13 }
  0x55   : > { %p5755_p5 = scmp.ne.s32.totalorder %s6070_s13, %s5754_s10  ;;  %p5763_p10 = scmp.lt.s32.totalorder %s5754_s10, %s5754_s10 }
  0x57   : > { %p5757_p7 = pnand %p5755_p5, %p6080_p8  ;;  %p5764_p11 = por %p5763_p10, %p5762_p4 }
  0x59   : > { %p5758_p9 = pneg %p5757_p7 }
  0x5b   : > { %p5765_p12 = pnand %p5764_p11, %p5758_p9 }
  0x5d   : > { %5768 = shalt.err (!%p5765_p12)
}
  0x5e   : > { %5415 = dma.hbm_to_vmem [thread:$0]  (!%p6064_p6), %s7083_s5, 5120, %s6070_s13, [#allocation14], %s7089_s23, %s7089_s23, %s5973_s28  }
  0x5f   : > { %s5974_s22 = smov [#allocation12]   ;;  %s5975_s12 = smov [#allocation15]  }
  0x60   : > { %s255_s9 = sshll.u32 %s5974_s22, 4  ;;  %s279_s14 = sshll.u32 %s5975_s12, 4  ;;  %s256_s9 = int_to_ptr.vmem [resolvable:$true] %s255_s9  ;;  %s280_s14 = int_to_ptr.vmem [resolvable:$true] %s279_s14 }
  0x61   : > { %s7114_s4 = sld [smem:[#allocation32_spill]] }
  0x67   : > { %s5769_s17 = scalar_lea.hbm %s7114_s4, 16 }
  0x68   : > { %p5770_p13 = scmp.ne.s32.totalorder %s7114_s4, %s5769_s17  ;;  %p5776_p5 = scmp.lt.u32.totalorder %s5769_s17, %s7114_s4 }
  0x6a   : > { %p5772_p0 = pnand %p5770_p13, %p6080_p8 }
  0x6c   : > { %p5773_p2 = pneg %p5772_p0 }
  0x6e   : > { %p5778_p7 = pnand %p5776_p5, %p5773_p2 }
  0x70   : > { %5781 = shalt.err (!%p5778_p7)
}
  0x71   : > { %s5782_s13 = scalar_lea.vmem %s256_s9, 16  ;;  %s5789_s28 = scalar_lea.vmem %s256_s9, 32 }
  0x72   : > { %p5783_p9 = scmp.ne.s32.totalorder %s256_s9, %s5782_s13  ;;  %p5790_p11 = scmp.lt.s32.totalorder %s256_s9, %s256_s9 }
  0x73   : > { %p5791_p12 = scmp.lt.s32.totalorder %s5789_s28, %s5782_s13 }
  0x74   : > { %p5785_p4 = pnand %p5783_p9, %p6080_p8 }
  0x75   : > { %p5792_p1 = por %p5791_p12, %p5790_p11 }
  0x76   : > { %p5786_p10 = pneg %p5785_p4 }
  0x78   : > { %p5793_p3 = pnand %p5792_p1, %p5786_p10 }
  0x7a   : > { %5796 = shalt.err (!%p5793_p3)
}
  0x7b   : > { %5412 = dma.hbm_to_vmem [thread:$0]  (!%p6064_p6), %s7114_s4, 16, %s256_s9, [#allocation11]  }
  0x7c   : > { %s5797_s16 = scalar_lea.hbm %s7084_s6, 16 }
  0x7d   : > { %p5798_p13 = scmp.ne.s32.totalorder %s7084_s6, %s5797_s16  ;;  %p5804_p3 = scmp.lt.u32.totalorder %s5797_s16, %s7084_s6 }
  0x7f   : > { %p5800_p0 = pnand %p5798_p13, %p6080_p8 }
  0x81   : > { %p5801_p1 = pneg %p5800_p0 }
  0x83   : > { %p5806_p2 = pnand %p5804_p3, %p5801_p1 }
  0x85   : > { %5809 = shalt.err (!%p5806_p2)
}
  0x86   : > { %s5810_s21 = scalar_lea.vmem %s280_s14, 16  ;;  %s5817_s9 = scalar_lea.vmem %s280_s14, 32 }
  0x87   : > { %p5811_p5 = scmp.ne.s32.totalorder %s280_s14, %s5810_s21  ;;  %p5818_p4 = scmp.lt.s32.totalorder %s280_s14, %s280_s14 }
  0x88   : > { %p5819_p10 = scmp.lt.s32.totalorder %s5817_s9, %s5810_s21 }
  0x89   : > { %p5813_p7 = pnand %p5811_p5, %p6080_p8 }
  0x8a   : > { %p5820_p11 = por %p5819_p10, %p5818_p4 }
  0x8b   : > { %p5814_p9 = pneg %p5813_p7 }
  0x8d   : > { %p5821_p12 = pnand %p5820_p11, %p5814_p9 }
  0x8f   : > { %5824 = shalt.err (!%p5821_p12)
}
  0x90   : > { %5418 = dma.hbm_to_vmem [thread:$0]  (!%p6064_p6), %s7084_s6, 16, %s280_s14, [#allocation14]  }
  0x91   : > { %s4606_s19 = sadd.s32 4294967294, %s5967_s27   ;;  %s6194_s11 = sadd.s32 1, %s5967_s27  }
  0x92   : > { %s35_s29 = sadd.s32 1, %s5963_s26  ;;  %s32_s22 = ssub.s32 %s5967_s27, %s6194_s11 }
  0x93   : > { %p42_p8 = scmp.ne.s32.totalorder %s5963_s26, %s5959_s25  ;;  %p33_p13 = scmp.eq.s32.totalorder %s32_s22, 0 }
  0x94   : > { %p43_p0 = scmp.eq.s32.totalorder %s5967_s27, 0  ;;  %p48_p1 = scmp.ne.s32.totalorder %s5959_s25, %s5955_s24 }
  0x95   : > { %p203_p3 = scmp.eq.s32.totalorder %s6048_s30, 1  ;;  %p7115_p5 = scmp.eq.s32.totalorder %s6048_s30, 0 }
  0x96   : > { %s6206_s12 = scalar_select %p33_p13, %s5963_s26, %s35_s29  }
  0x97   : > { %p44_p2 = por %p43_p0, %p42_p8  ;;  %p6210_p7 = por %p7115_p5, %p48_p1 }
  0x98   : > { %p6214_p6 = por %p203_p3, %p42_p8  ;;  %p209_p9 = scmp.eq.s32.totalorder %s4606_s19, 1 }
  0x99   : > { %p5435_p4 = scmp.lt.s32.totalorder %s5967_s27, 2  ;;  %s290_s16 = sand.u32 1, %s5963_s26  }
  0x9a   : > { %s7117_s15 = scalar_select %p6214_p6, 1, 0 }
  0x9b   : > { %p6220_p10 = por %p209_p9, %p48_p1  ;;  %s6224_s18 = sshll.u32 %s290_s16, 7 }
  0x9c   : > { %s7088_s20 = sshll.u32 %s5967_s27, 11  ;;  %s7119_s0 = sld [smem:[#allocation29_spill]] }
  0x9d   : > { %s7118_s17 = scalar_select %p6220_p10, 1, 0 }
  0x9e   : > { %s294_s13 = scalar_lea.vmem [#allocation4], %s6224_s18  ;;  %p6235_p11 = pnand %p5435_p4, %p44_p2 }
  0x9f   : > { %s301_s28 = sshll.u32 %s294_s13, 4  ;;  %s6241_s29 = scalar_lea.sflag [#allocation5], %s290_s16  ;;  %s6239_s28 = int_to_ptr.vmem [resolvable:$true] %s301_s28 }
  0xa0   : > { %p5827_p8 = pneg %p6235_p11 }
  0xa2   : > { %s6232_s9 = scalar_lea.hbm %s7119_s0, %s7088_s20  ;;  %s5830_s13 = scalar_lea.hbm %s7119_s0, 4096 }
  0xa3   : > { %s5825_s22 = scalar_lea.hbm %s6232_s9, 2048  ;;  %p5831_p1 = scmp.lt.u32.totalorder %s6232_s9, %s7119_s0 }
  0xa4   : > { %p5826_p12 = scmp.ne.s32.totalorder %s6232_s9, %s5825_s22  ;;  %p5832_p3 = scmp.lt.u32.totalorder %s5830_s13, %s5825_s22 }
  0xa5   : > { %p5834_p5 = scmp.lt.u32.totalorder %s5825_s22, %s6232_s9 }
  0xa6   : > { %p5828_p13 = pnand %p5827_p8, %p5826_p12  ;;  %p5833_p2 = por %p5832_p3, %p5831_p1 }
  0xa8   : > { %p5829_p0 = pneg %p5828_p13  ;;  %p5835_p9 = por %p5834_p5, %p5833_p2 }
  0xaa   : > { %p5836_p4 = pnand %p5835_p9, %p5829_p0 }
  0xac   : > { %5839 = shalt.err (!%p5836_p4)
}
  0xad   : > { %s5840_s16 = scalar_lea.vmem %s6239_s28, 2048  ;;  %s5976_s10 = smov [#allocation4]  }
  0xae   : > { %p5841_p12 = scmp.ne.s32.totalorder %s6239_s28, %s5840_s16  ;;  %s5845_s21 = sshll.u32 %s5976_s10, 4  ;;  %s5846_s21 = int_to_ptr.vmem [resolvable:$false] %s5845_s21 }
  0xaf   : > { %s5847_s23 = scalar_lea.vmem %s5846_s21, 4096  ;;  %p5848_p6 = scmp.lt.s32.totalorder %s6239_s28, %s5846_s21 }
  0xb0   : > { %p5843_p13 = pnand %p5841_p12, %p5827_p8  ;;  %p5849_p1 = scmp.lt.s32.totalorder %s5847_s23, %s5840_s16 }
  0xb2   : > { %p5844_p10 = pneg %p5843_p13  ;;  %p5850_p3 = por %p5849_p1, %p5848_p6 }
  0xb4   : > { %p5851_p2 = pnand %p5850_p3, %p5844_p10 }
  0xb6   : > { %5854 = shalt.err (!%p5851_p2)
}
  0xb7   : > { %s5977_s20 = smov 1024   ;;  %s7121_s22 = smov 64  }
  0xb8   : > { %5422 = dma.hbm_to_vmem [thread:$0]  (!%p6235_p11), %s6232_s9, 2048, %s6239_s28, %s6241_s29, %s5977_s20, %s5977_s20, %s7121_s22  }
  0xb9   : > { %s7122_s13 = sshll.u32 %s5967_s27, 11  ;;  %s315_s21 = scalar_lea.vmem [#allocation7], %s6224_s18 }
  0xba   : > { %s6275_s16 = scalar_lea.hbm %s7079_s1, %s7122_s13  ;;  %s322_s23 = sshll.u32 %s315_s21, 4  ;;  %s6278_s23 = int_to_ptr.vmem [resolvable:$true] %s322_s23 }
  0xbb   : > { %s311_s2 = sand.u32 1, %s5967_s27   ;;  %s5855_s4 = scalar_lea.hbm %s6275_s16, 2048 }
  0xbc   : > { %s6281_s3 = scalar_lea.sflag [#allocation8], %s311_s2  ;;  %p5856_p6 = scmp.ne.s32.totalorder %s6275_s16, %s5855_s4 }
  0xbd   : > { %s5860_s28 = scalar_lea.hbm %s7079_s1, 4096  ;;  %p5861_p5 = scmp.lt.u32.totalorder %s6275_s16, %s7079_s1 }
  0xbe   : > { %p5858_p10 = pnand %p5856_p6, %p5827_p8  ;;  %p5862_p9 = scmp.lt.u32.totalorder %s5860_s28, %s5855_s4 }
  0xbf   : > { %p5864_p12 = scmp.lt.u32.totalorder %s5855_s4, %s6275_s16 }
  0xc0   : > { %p5859_p0 = pneg %p5858_p10  ;;  %p5863_p4 = por %p5862_p9, %p5861_p5 }
  0xc2   : > { %p5865_p13 = por %p5864_p12, %p5863_p4 }
  0xc4   : > { %p5866_p1 = pnand %p5865_p13, %p5859_p0 }
  0xc6   : > { %5869 = shalt.err (!%p5866_p1)
}
  0xc7   : > { %s5870_s2 = scalar_lea.vmem %s6278_s23, 2048  ;;  %s5978_s18 = smov [#allocation7]  }
  0xc8   : > { %p5871_p3 = scmp.ne.s32.totalorder %s6278_s23, %s5870_s2  ;;  %s5875_s22 = sshll.u32 %s5978_s18, 4  ;;  %s5876_s22 = int_to_ptr.vmem [resolvable:$false] %s5875_s22 }
  0xc9   : > { %s5877_s13 = scalar_lea.vmem %s5876_s22, 4096  ;;  %p5878_p10 = scmp.lt.s32.totalorder %s6278_s23, %s5876_s22 }
  0xca   : > { %p5873_p2 = pnand %p5871_p3, %p5827_p8  ;;  %p5879_p5 = scmp.lt.s32.totalorder %s5877_s13, %s5870_s2 }
  0xcc   : > { %p5874_p6 = pneg %p5873_p2  ;;  %p5880_p9 = por %p5879_p5, %p5878_p10 }
  0xce   : > { %p5881_p4 = pnand %p5880_p9, %p5874_p6 }
  0xd0   : > { %5884 = shalt.err (!%p5881_p4)
}
  0xd1   : > { %s5979_s4 = smov 128   ;;  %s5980_s10 = smov 8  }
  0xd2   : > { %5425 = dma.hbm_to_vmem [thread:$0]  (!%p6235_p11), %s6275_s16, 2048, %s6278_s23, %s6281_s3, %s5979_s4, %s5979_s4, %s5980_s10  }
  0xd3   : > { %p7123_p8 = scmp.ne.s32.totalorder %s7109_s8, 0 }
  0xd5   : > { %334 = sbr.rel (%p7123_p8) target bundleno = 2515 (0x9d3), region = 48 }
  0xdc   : > { %s6310_s21 = sand.u32 1, %s5959_s25  }
  0xdd   : > { %s4621_s0 = sshll.u32 %s6310_s21, 7  ;;  %s337_s9 = scalar_lea.sflag [#allocation5], %s6310_s21 }
  0xde   : > { %s6314_s28 = scalar_lea.vmem [#allocation4], %s4621_s0 }
  0xdf   : > { %5930 = dma.done.wait (%p6210_p7), %s337_s9, 2048  }
  0xe0   : > { %5932 = vsyncadd (%p6210_p7), %s337_s9, 4294965248  ;;  %s345_s3 = sand.u32 1, %s6048_s30   ;;  %s6321_s19 = scalar_lea.vmem [#allocation7], %s4621_s0 }
  0xe1   : > { %s346_s8 = scalar_lea.sflag [#allocation8], %s345_s3 }
  0xe2   : > { %5934 = dma.done.wait (%p6210_p7), %s346_s8, 2048  }
  0xe3   : > { %5936 = vsyncadd (%p6210_p7), %s346_s8, 4294965248  ;;  %p7124_p11 = scmp.eq.s32.totalorder %s6048_s30, 0 }
  0xe5   : > { %5938 = dma.done.wait (%p7124_p11), [#allocation8], 256   ;;  %p7125_p0 = pmov %p7124_p11 }
  0xe7   : > { %5940 = vsyncadd (%p7125_p0), [#allocation8], 4294967040  ;;  %p7126_p12 = pmov %p7125_p0 }
  0xe8   : > { %p7127_p13 = pmov %p7125_p0 }
  0xe9   : > { %5942 = dma.done.wait (%p7126_p12), [#allocation11], 5136  }
  0xea   : > { %5944 = vsyncadd (%p7127_p13), [#allocation11], 4294962160  ;;  %p7128_p1 = pmov %p7125_p0 }
  0xeb   : > { %p7129_p3 = pmov %p7125_p0 }
  0xec   : > { %5946 = dma.done.wait (%p7128_p1), [#allocation14], 5136  }
  0xed   : > { %5948 = vsyncadd (%p7129_p3), [#allocation14], 4294962160  ;;  %v7091_v0 = vmov 0   ;;  %v6342_v1 = vld [vmem:[%s6314_s28 + $0x8] sm:$0xff]  ;;  %v6348_v3 = vld [vmem:[%s6314_s28] sm:$0xff]  ;;  %vm488_vm0 = vcmask 130048  }
  0xee   : > { %524 = vmatprep.mubr.bf16.mxu0 %v7091_v0  ;;  %1027 = vmatprep.mubr.bf16.mxu1 %v7091_v0  ;;  %v6345_v2 = vld [vmem:[%s6314_s28 + $0x48] sm:$0xff]  ;;  %2309 = vst [vmem:[#allocation3 + $0x8] sm:$0xff] %v6342_v1  ;;  %v6357_v5 = vld [vmem:[%s6314_s28 + $0x40] sm:$0xff]  ;;  %2308 = vst [vmem:[#allocation3] sm:$0xff] %v6348_v3  ;;  %s5982_s14 = smov 32   ;;  %vm2326_vm1 = vcmask 261120  }
  0xef   : > { %v6352_v4 = vpack.c.bf16 %v6345_v2, %v6342_v1  ;;  %2317 = vst [vmem:[#allocation3 + $0x48] sm:$0xff] %v6345_v2  ;;  %v6362_v6 = vpack.c.bf16 %v6357_v5, %v6348_v3  ;;  %2316 = vst [vmem:[#allocation3 + $0x40] sm:$0xff] %v6357_v5  ;;  %v6365_v7 = vld [vmem:[#allocation9] sm:$0xff]   ;;  %v6368_v8 = vld [vmem:[%s6314_s28 + $0x18] sm:$0xff]  ;;  %s5983_s16 = smov 96   ;;  %s4628_s23 = sshll.u32 %s6310_s21, 5 }
  0xf0   : > { %v6371_v9 = vld [vmem:[%s6314_s28 + $0x58] sm:$0xff]  ;;  %2311 = vst [vmem:[#allocation3 + $0x18] sm:$0xff] %v6368_v8  ;;  %v6381_v11 = vld [vmem:[%s6314_s28 + $0x10] sm:$0xff]  ;;  %v6387_v13 = vld [vmem:[%s6314_s28 + $0x28] sm:$0xff]  ;;  %s404_s29 = scalar_lea.vmem [#allocation16], %s4628_s23  ;;  %s4768_s2 = sshll.u32 %s6048_s30, 9 }
  0xf1   : > { %492 = vmatprep.subr.bf16.mxu0 %v6352_v4  ;;  %v6376_v10 = vpack.c.bf16 %v6371_v9, %v6368_v8  ;;  %2319 = vst [vmem:[#allocation3 + $0x58] sm:$0xff] %v6371_v9  ;;  %v6384_v12 = vld [vmem:[%s6314_s28 + $0x50] sm:$0xff]  ;;  %2310 = vst [vmem:[#allocation3 + $0x10] sm:$0xff] %v6381_v11  ;;  %v6397_v15 = vld [vmem:[%s6314_s28 + $0x68] sm:$0xff]  ;;  %s4463_s20 = sshll.u32 %s404_s29, 4  ;;  %s7034_s13 = scalar_lea.hbm %s7085_s7, %s4768_s2  ;;  %s7029_s20 = int_to_ptr.vmem [resolvable:$true] %s4463_s20 }
  0xf2   : > { %493 = vmatpush1.bf16.msra.mxu0 %v6362_v6  ;;  %v6392_v14 = vpack.c.bf16 %v6384_v12, %v6381_v11  ;;  %2318 = vst [vmem:[#allocation3 + $0x50] sm:$0xff] %v6384_v12  ;;  %2313 = vst [vmem:[#allocation3 + $0x28] sm:$0xff] %v6387_v13  ;;  %v6401_v16 = vld [vmem:[%s6314_s28 + $0x20] sm:$0xff]  ;;  %v6409_v18 = vpack.c.bf16 %v6397_v15, %v6387_v13  ;;  %v6415_v19 = vld [vmem:[%s6314_s28 + $0x38] sm:$0xff]  ;;  %s4450_s4 = scalar_lea.sflag [#allocation6], %s6310_s21  ;;  %s5885_s10 = scalar_lea.vmem %s7029_s20, 512 }
  0xf3   : > { %v6404_v17 = vld [vmem:[%s6314_s28 + $0x60] sm:$0xff]  ;;  %535 = vmatprep.subr.bf16.mxu0 %v6376_v10  ;;  %2321 = vst [vmem:[#allocation3 + $0x68] sm:$0xff] %v6397_v15  ;;  %2312 = vst [vmem:[#allocation3 + $0x20] sm:$0xff] %v6401_v16  ;;  %v6418_v20 = vld [vmem:[%s6314_s28 + $0x78] sm:$0xff]  ;;  %p5886_p7 = scmp.ne.s32.totalorder %s7029_s20, %s5885_s10  ;;  %p7143_p2 = scmp.ne.s32.totalorder %s7117_s15, 0 }
  0xf4   : > { %2320 = vst [vmem:[#allocation3 + $0x60] sm:$0xff] %v6404_v17  ;;  %v6421_v21 = vld [vmem:[%s6314_s28 + $0x30] sm:$0xff]  ;;  %2315 = vst [vmem:[#allocation3 + $0x38] sm:$0xff] %v6415_v19  ;;  %v6437_v23 = vpack.c.bf16 %v6404_v17, %v6401_v16  ;;  %v6441_v24 = vpack.c.bf16 %v6418_v20, %v6415_v19  ;;  %v5491_v27 = vld [vmem:[#allocation10 + $0x48] sm:$0xff]   ;;  %s5984_s30 = smov [#allocation16]  }
  0xf5   : > { %2323 = vst [vmem:[#allocation3 + $0x78] sm:$0xff] %v6418_v20  ;;  %v6426_v22 = vld [vmem:[%s6314_s28 + $0x70] sm:$0xff]  ;;  %2314 = vst [vmem:[#allocation3 + $0x30] sm:$0xff] %v6421_v21  ;;  %4630 = vmatmul.mubr.msk.bf16.vlgmr.msra.gmra.mrb[0].mxu0 %vm488_vm0, %v6365_v7  ;;  %v5492_v28 = vld [vmem:[#allocation10 + $0x50] sm:$0xff]   ;;  %p5887_p6 = pnand %p5886_p7, %p7143_p2  ;;  %s5889_s0 = sshll.u32 %s5984_s30, 4  ;;  %s5890_s0 = int_to_ptr.vmem [resolvable:$false] %s5889_s0 }
  0xf6   : > { %2322 = vst [vmem:[#allocation3 + $0x70] sm:$0xff] %v6426_v22  ;;  %536 = vmatpush1.bf16.msra.mxu0 %v6392_v14  ;;  %567 = vmatprep.mubr.bf16.mxu0 %v7091_v0  ;;  %v5490_v25 = vld [vmem:[#allocation10 + $0x40] sm:$0xff]   ;;  %v6450_v26 = vpack.c.bf16 %v6426_v22, %v6421_v21  ;;  %v5493_v29 = vld [vmem:[#allocation10 + $0x58] sm:$0xff]   ;;  %v5495_v31 = vld [vmem:[#allocation10 + $0x68] sm:$0xff]   ;;  %s5891_s9 = scalar_lea.vmem %s5890_s0, 1024  ;;  %p5892_p5 = scmp.lt.s32.totalorder %s7029_s20, %s5890_s0 }
  0xf7   : > { %578 = vmatprep.subr.bf16.mxu0 %v6409_v18  ;;  %v5494_v30 = vld [vmem:[#allocation10 + $0x60] sm:$0xff]   ;;  %v5496_v32 = vld [vmem:[#allocation10 + $0x70] sm:$0xff]   ;;  %v5497_v33 = vld [vmem:[#allocation10 + $0x78] sm:$0xff]   ;;  %p5888_p10 = pneg %p5887_p6  ;;  %p5893_p9 = scmp.lt.s32.totalorder %s5891_s9, %s5885_s10 }
  0xf8   : > { %v5499_v34 = vld [vmem:[#allocation10] sm:$0xff]   ;;  %v5500_v41 = vld [vmem:[#allocation10 + $0x8] sm:$0xff]   ;;  %v5501_v43 = vld [vmem:[#allocation10 + $0x10] sm:$0xff]  }
  0xf9   : > { %v5502_v49 = vld [vmem:[#allocation10 + $0x18] sm:$0xff]   ;;  %v5503_v51 = vld [vmem:[#allocation10 + $0x20] sm:$0xff]   ;;  %v5504_v57 = vld [vmem:[#allocation10 + $0x28] sm:$0xff]   ;;  %p5894_p4 = por %p5893_p9, %p5892_p5 }
  0xfa   : > { %v5505_v59 = vld [vmem:[#allocation10 + $0x30] sm:$0xff]  }
  0xfb   : > { %p5895_p8 = pnand %p5894_p4, %p5888_p10 }
  0xfd   : > { %4631 = vmatmul.mubr.msk.bf16.vlgmr.msra.gmra.mrb[4].mxu0 %vm488_vm0, %v6365_v7 }
  0xfe   : > { %579 = vmatpush1.bf16.msra.mxu0 %v6437_v23  ;;  %610 = vmatprep.mubr.bf16.mxu0 %v7091_v0 }
  0xff   : > { %621 = vmatprep.subr.bf16.mxu0 %v6441_v24 }
 0x105   : > { %4632 = vmatmul.mubr.msk.bf16.vlgmr.msra.gmra.mrb[8].mxu0 %vm488_vm0, %v6365_v7 }
 0x106   : > { %622 = vmatpush1.bf16.msra.mxu0 %v6450_v26  ;;  %653 = vmatprep.mubr.bf16.mxu0 %v7091_v0 }
 0x107   : > { %4929 = vmatprep.subr.bf16.mxu0 %v5490_v25 }
 0x10d   : > { %4633 = vmatmul.mubr.msk.bf16.vlgmr.msra.gmra.mrb[12].mxu0 %vm488_vm0, %v6365_v7 }
 0x10e   : > { %4930 = vmatpush3.bf16.msra.mxu0 %v5490_v25 }
 0x10f   : > { %4931 = vmatprep.subr.bf16.mxu0 %v5491_v27 }
 0x112   : > { %4932 = vmatpush3.bf16.msra.mxu0 %v5491_v27  ;;  %v5506_v27 = vld [vmem:[#allocation10 + $0x38] sm:$0xff]  }
 0x113   : > { %4933 = vmatprep.subr.bf16.mxu0 %v5492_v28 }
 0x116   : > { %4934 = vmatpush3.bf16.msra.mxu0 %v5492_v28  ;;  %v5507_v28 = vld [vmem:[#allocation10 + $0x80] sm:$0xff]  }
 0x117   : > { %4935 = vmatprep.subr.bf16.mxu0 %v5493_v29 }
 0x11a   : > { %4936 = vmatpush3.bf16.msra.mxu0 %v5493_v29  ;;  %v5508_v29 = vld [vmem:[#allocation10 + $0x88] sm:$0xff]  }
 0x11b   : > { %4937 = vmatprep.subr.bf16.mxu0 %v5494_v30 }
 0x11e   : > { %4938 = vmatpush3.bf16.msra.mxu0 %v5494_v30  ;;  %v6528_v30 = vld [vmem:[#allocation9 + $0x8] sm:$0xff]  }
 0x11f   : > { %4939 = vmatprep.subr.bf16.mxu0 %v5495_v31 }
 0x122   : > { %4940 = vmatpush3.bf16.msra.mxu0 %v5495_v31 }
 0x123   : > { %4941 = vmatprep.subr.bf16.mxu0 %v5496_v32 }
 0x126   : > { %4942 = vmatpush3.bf16.msra.mxu0 %v5496_v32 }
 0x127   : > { %4943 = vmatprep.subr.bf16.mxu0 %v5497_v33 }
 0x12a   : > { %4944 = vmatpush3.bf16.msra.mxu0 %v5497_v33 }
 0x12b   : > { %4961 = vmatprep.subr.bf16.mxu0 %v5499_v34 }
 0x1c8   : > { %v6458_v35 = vpop.f32.mrb[0].mxu0 }
 0x1c9   : > { %v6460_v36 = vpop.f32.mrb[1].mxu0 }
 0x1ca   : > { %v6462_v37 = vpop.f32.mrb[2].mxu0 }
 0x1cb   : > { %v6466_v38 = vpack.c.bf16 %v6462_v37, %v6458_v35  ;;  %v6468_v39 = vpop.f32.mrb[3].mxu0 }
 0x1cc   : > { %v665_v40 = vpack.c.bf16 %v6468_v39, %v6460_v36 }
 0x1cd   : > { %4945 = vmatprep.mubr.bf16.mxu0 %v6466_v38 }
 0x1ce   : > { %4946 = vmatmul.mubr.bf16.vlgmr.msra.gmra.mrb[16].mxu0 %v665_v40  ;;  %995 = vmatprep.subr.bf16.mxu1 %v665_v40 }
 0x1cf   : > { %996 = vmatpush1.bf16.msra.mxu1 %v6466_v38  ;;  %4962 = vmatpush3.bf16.msra.mxu0 %v5499_v34 }
 0x1d0   : > { %v6474_v42 = vpop.f32.mrb[4].mxu0  ;;  %4963 = vmatprep.subr.bf16.mxu0 %v5500_v41 }
 0x1d1   : > { %v6476_v44 = vpop.f32.mrb[5].mxu0 }
 0x1d2   : > { %v6478_v45 = vpop.f32.mrb[6].mxu0  ;;  %4650 = vmatmul.mubr.msk.bf16.vlgmr.msra.gmra.mrb[0].mxu1 %vm488_vm0, %v6365_v7 }
 0x1d3   : > { %v6484_v46 = vpack.c.bf16 %v6478_v45, %v6474_v42  ;;  %v6486_v47 = vpop.f32.mrb[7].mxu0  ;;  %1070 = vmatprep.mubr.bf16.mxu1 %v7091_v0  ;;  %4964 = vmatpush3.bf16.msra.mxu0 %v5500_v41 }
 0x1d4   : > { %v667_v48 = vpack.c.bf16 %v6486_v47, %v6476_v44  ;;  %4965 = vmatprep.subr.bf16.mxu0 %v5501_v43 }
 0x1d5   : > { %4949 = vmatprep.mubr.bf16.mxu0 %v6484_v46 }
 0x1d6   : > { %4950 = vmatmul.mubr.bf16.gmra.mrb[20].mxu0 %v667_v48  ;;  %1038 = vmatprep.subr.bf16.mxu1 %v667_v48 }
 0x1d7   : > { %1039 = vmatpush1.bf16.msra.mxu1 %v6484_v46  ;;  %4966 = vmatpush3.bf16.msra.mxu0 %v5501_v43 }
 0x1d8   : > { %v6493_v50 = vpop.f32.mrb[8].mxu0  ;;  %4967 = vmatprep.subr.bf16.mxu0 %v5502_v49 }
 0x1d9   : > { %v6495_v52 = vpop.f32.mrb[9].mxu0 }
 0x1da   : > { %v6497_v53 = vpop.f32.mrb[10].mxu0  ;;  %4651 = vmatmul.mubr.msk.bf16.vlgmr.msra.gmra.mrb[4].mxu1 %vm488_vm0, %v6365_v7 }
 0x1db   : > { %v668_v54 = vpack.c.bf16 %v6497_v53, %v6493_v50  ;;  %v6503_v55 = vpop.f32.mrb[11].mxu0  ;;  %1113 = vmatprep.mubr.bf16.mxu1 %v7091_v0  ;;  %4968 = vmatpush3.bf16.msra.mxu0 %v5502_v49 }
 0x1dc   : > { %v669_v56 = vpack.c.bf16 %v6503_v55, %v6495_v52  ;;  %4969 = vmatprep.subr.bf16.mxu0 %v5503_v51 }
 0x1dd   : > { %4953 = vmatprep.mubr.bf16.mxu0 %v668_v54 }
 0x1de   : > { %4954 = vmatmul.mubr.bf16.gmra.mrb[24].mxu0 %v669_v56  ;;  %1081 = vmatprep.subr.bf16.mxu1 %v669_v56 }
 0x1df   : > { %1082 = vmatpush1.bf16.msra.mxu1 %v668_v54  ;;  %4970 = vmatpush3.bf16.msra.mxu0 %v5503_v51 }
 0x1e0   : > { %v6508_v58 = vpop.f32.mrb[12].mxu0  ;;  %4971 = vmatprep.subr.bf16.mxu0 %v5504_v57 }
 0x1e1   : > { %v6510_v60 = vpop.f32.mrb[13].mxu0 }
 0x1e2   : > { %v6512_v61 = vpop.f32.mrb[14].mxu0  ;;  %4652 = vmatmul.mubr.msk.bf16.vlgmr.msra.gmra.mrb[8].mxu1 %vm488_vm0, %v6365_v7 }
 0x1e3   : > { %v670_v62 = vpack.c.bf16 %v6512_v61, %v6508_v58  ;;  %v6518_v63 = vpop.f32.mrb[15].mxu0  ;;  %1156 = vmatprep.mubr.bf16.mxu1 %v7091_v0  ;;  %4972 = vmatpush3.bf16.msra.mxu0 %v5504_v57 }
 0x1e4   : > { %v671_v25 = vpack.c.bf16 %v6518_v63, %v6510_v60  ;;  %4973 = vmatprep.subr.bf16.mxu0 %v5505_v59 }
 0x1e5   : > { %4957 = vmatprep.mubr.bf16.mxu0 %v670_v62 }
 0x1e6   : > { %4958 = vmatmul.mubr.bf16.gmra.mrb[28].mxu0 %v671_v25  ;;  %1124 = vmatprep.subr.bf16.mxu1 %v671_v25 }
 0x1e7   : > { %1125 = vmatpush1.bf16.msra.mxu1 %v670_v62  ;;  %4974 = vmatpush3.bf16.msra.mxu0 %v5505_v59 }
 0x1e8   : > { %1409 = vmatprep.subr.bf16.mxu1 %v665_v40  ;;  %4975 = vmatprep.subr.bf16.mxu0 %v5506_v27 }
 0x1e9   : > { %4977 = vmatprep.mubr.bf16.mxu0 %v6362_v6  ;;  %v5509_v6 = vld [vmem:[#allocation10 + $0x90] sm:$0xff]  }
 0x1ea   : > { %4653 = vmatmul.mubr.msk.bf16.vlgmr.msra.gmra.mrb[12].mxu1 %vm488_vm0, %v6365_v7  ;;  %v5510_v7 = vld [vmem:[#allocation10 + $0x98] sm:$0xff]  }
 0x1eb   : > { %1410 = vmatpush1.bf16.msra.mxu1 %v6466_v38  ;;  %1441 = vmatprep.mubr.bf16.mxu1 %v7091_v0 }
 0x1ec   : > { %1452 = vmatprep.subr.bf16.mxu1 %v667_v48  ;;  %4976 = vmatpush3.bf16.msra.mxu0 %v5506_v27 }
 0x1ed   : > { %4993 = vmatprep.subr.bf16.mxu0 %v5507_v28 }
 0x1ef   : > { %4978 = vmatmul.mubr.bf16.vlgmr.msra.gmra.mrb[16].mxu0 %v6352_v4  ;;  %v5511_v4 = vld [vmem:[#allocation10 + $0xa0] sm:$0xff]  }
 0x1f0   : > { %4994 = vmatpush3.bf16.msra.mxu0 %v5507_v28  ;;  %4981 = vmatprep.mubr.bf16.mxu0 %v6392_v14  ;;  %v5512_v14 = vld [vmem:[#allocation10 + $0xa8] sm:$0xff]  }
 0x1f1   : > { %4995 = vmatprep.subr.bf16.mxu0 %v5508_v29 }
 0x1f2   : > { %4663 = vmatmul.mubr.msk.bf16.vlgmr.msra.gmra.mrb[16].mxu1 %vm488_vm0, %v6528_v30 }
 0x1f3   : > { %1453 = vmatpush1.bf16.msra.mxu1 %v6484_v46  ;;  %1484 = vmatprep.mubr.bf16.mxu1 %v7091_v0 }
 0x1f4   : > { %1495 = vmatprep.subr.bf16.mxu1 %v669_v56  ;;  %4996 = vmatpush3.bf16.msra.mxu0 %v5508_v29  ;;  %v5516_v56 = vld [vmem:[#allocation10 + $0xc8] sm:$0xff]  }
 0x1f5   : > { %4997 = vmatprep.subr.bf16.mxu0 %v5509_v6 }
 0x1f7   : > { %4982 = vmatmul.mubr.bf16.gmra.mrb[20].mxu0 %v6376_v10  ;;  %v5513_v10 = vld [vmem:[#allocation10 + $0xb0] sm:$0xff]  }
 0x1f8   : > { %4998 = vmatpush3.bf16.msra.mxu0 %v5509_v6  ;;  %4985 = vmatprep.mubr.bf16.mxu0 %v6437_v23  ;;  %v5515_v23 = vld [vmem:[#allocation10 + $0xc0] sm:$0xff]  }
 0x1f9   : > { %4999 = vmatprep.subr.bf16.mxu0 %v5510_v7 }
 0x1fa   : > { %4664 = vmatmul.mubr.msk.bf16.vlgmr.msra.gmra.mrb[20].mxu1 %vm488_vm0, %v6528_v30 }
 0x1fb   : > { %1496 = vmatpush1.bf16.msra.mxu1 %v668_v54  ;;  %1527 = vmatprep.mubr.bf16.mxu1 %v7091_v0 }
 0x1fc   : > { %1538 = vmatprep.subr.bf16.mxu1 %v671_v25  ;;  %5000 = vmatpush3.bf16.msra.mxu0 %v5510_v7 }
 0x1fd   : > { %5001 = vmatprep.subr.bf16.mxu0 %v5511_v4 }
 0x1ff   : > { %4986 = vmatmul.mubr.bf16.gmra.mrb[24].mxu0 %v6409_v18  ;;  %v5514_v18 = vld [vmem:[#allocation10 + $0xb8] sm:$0xff]  }
 0x200   : > { %5002 = vmatpush3.bf16.msra.mxu0 %v5511_v4  ;;  %4989 = vmatprep.mubr.bf16.mxu0 %v6450_v26 }
 0x201   : > { %5003 = vmatprep.subr.bf16.mxu0 %v5512_v14 }
 0x202   : > { %4665 = vmatmul.mubr.msk.bf16.vlgmr.msra.gmra.mrb[24].mxu1 %vm488_vm0, %v6528_v30 }
 0x203   : > { %1539 = vmatpush1.bf16.msra.mxu1 %v670_v62  ;;  %1570 = vmatprep.mubr.bf16.mxu1 %v7091_v0 }
 0x204   : > { %5004 = vmatpush3.bf16.msra.mxu0 %v5512_v14 }
 0x205   : > { %5005 = vmatprep.subr.bf16.mxu0 %v5513_v10 }
 0x207   : > { %4990 = vmatmul.mubr.bf16.gmra.mrb[28].mxu0 %v6441_v24 }
 0x208   : > { %5006 = vmatpush3.bf16.msra.mxu0 %v5513_v10  ;;  %v5518_v10 = vld [vmem:[#allocation10 + $0xd8] sm:$0xff]  }
 0x209   : > { %5007 = vmatprep.subr.bf16.mxu0 %v5514_v18 }
 0x20a   : > { %4666 = vmatmul.mubr.msk.bf16.vlgmr.msra.gmra.mrb[28].mxu1 %vm488_vm0, %v6528_v30 }
 0x20b   : > { %1815 = vmatprep.mubr.bf16.mxu1 %v7091_v0 }
 0x20c   : > { %5008 = vmatpush3.bf16.msra.mxu0 %v5514_v18 }
 0x20d   : > { %5025 = vmatprep.subr.bf16.mxu0 %v5515_v23 }
 0x2a5   : > { %v1029_v26 = vpop.f32.mrb[0].mxu1 }
 0x2a6   : > { %v1167_v31 = vmul.f32 2.0, %v1029_v26  ;;  %v1031_v32 = vpop.f32.mrb[1].mxu1 }
 0x2a7   : > { %v1168_v33 = vmul.f32 2.0, %v1031_v32  ;;  %v1033_v34 = vpop.f32.mrb[2].mxu1 }
 0x2a8   : > { %v1175_v38 = vmul.f32 2.0, %v1033_v34  ;;  %v1035_v24 = vpop.f32.mrb[3].mxu1  ;;  %v1183_v41 = vsub.f32 %v1167_v31, %v6348_v3 }
 0x2a9   : > { %v1176_v40 = vmul.f32 2.0, %v1035_v24  ;;  %v1184_v46 = vsub.f32 %v1168_v33, %v6342_v1 }
 0x2aa   : > { %v1191_v43 = vsub.f32 %v1175_v38, %v6357_v5  ;;  %v5517_v5 = vld [vmem:[#allocation10 + $0xd0] sm:$0xff]  }
 0x2ab   : > { %v1192_v48 = vsub.f32 %v1176_v40, %v6345_v2 }
 0x2ac   : > { %v1199_v49 = vpack.c.bf16 %v1191_v43, %v1183_v41  ;;  %v5520_v43 = vld [vmem:[#allocation10 + $0xe8] sm:$0xff]  }
 0x2ad   : > { %v1200_v51 = vpack.c.bf16 %v1192_v48, %v1184_v46  ;;  %v1072_v54 = vpop.f32.mrb[4].mxu1 }
 0x2ae   : > { %v1169_v57 = vmul.f32 2.0, %v1072_v54  ;;  %v1074_v59 = vpop.f32.mrb[5].mxu1  ;;  %5009 = vmatprep.mubr.bf16.mxu0 %v1199_v49 }
 0x2af   : > { %v1170_v62 = vmul.f32 2.0, %v1074_v59  ;;  %v1076_v25 = vpop.f32.mrb[6].mxu1  ;;  %5010 = vmatmul.mubr.bf16.vlgmr.msra.gmra.mrb[16].mxu0 %v1200_v51 }
 0x2b0   : > { %v1177_v27 = vmul.f32 2.0, %v1076_v25  ;;  %v1078_v28 = vpop.f32.mrb[7].mxu1  ;;  %5026 = vmatpush3.bf16.msra.mxu0 %v5515_v23  ;;  %v1185_v1 = vsub.f32 %v1169_v57, %v6381_v11 }
 0x2b1   : > { %v1178_v3 = vmul.f32 2.0, %v1078_v28  ;;  %5027 = vmatprep.subr.bf16.mxu0 %v5516_v56  ;;  %v1186_v29 = vsub.f32 %v1170_v62, %v6368_v8  ;;  %v5519_v8 = vld [vmem:[#allocation10 + $0xe0] sm:$0xff]   ;;  %v5522_v28 = vld [vmem:[#allocation10 + $0xf8] sm:$0xff]  }
 0x2b2   : > { %v1193_v2 = vsub.f32 %v1177_v27, %v6384_v12 }
 0x2b3   : > { %v1194_v6 = vsub.f32 %v1178_v3, %v6371_v9 }
 0x2b4   : > { %5028 = vmatpush3.bf16.msra.mxu0 %v5516_v56  ;;  %v1201_v7 = vpack.c.bf16 %v1193_v2, %v1185_v1 }
 0x2b5   : > { %v1115_v4 = vpop.f32.mrb[8].mxu1  ;;  %v1202_v14 = vpack.c.bf16 %v1194_v6, %v1186_v29  ;;  %5029 = vmatprep.subr.bf16.mxu0 %v5517_v5 }
 0x2b6   : > { %v1171_v18 = vmul.f32 2.0, %v1115_v4  ;;  %v1117_v26 = vpop.f32.mrb[9].mxu1  ;;  %5013 = vmatprep.mubr.bf16.mxu0 %v1201_v7 }
 0x2b7   : > { %v1172_v23 = vmul.f32 2.0, %v1117_v26  ;;  %v1119_v31 = vpop.f32.mrb[10].mxu1  ;;  %5014 = vmatmul.mubr.bf16.gmra.mrb[20].mxu0 %v1202_v14  ;;  %v5526_v26 = vld [vmem:[#allocation10 + $0x118] sm:$0xff]  }
 0x2b8   : > { %v1179_v32 = vmul.f32 2.0, %v1119_v31  ;;  %v1121_v11 = vpop.f32.mrb[11].mxu1  ;;  %5030 = vmatpush3.bf16.msra.mxu0 %v5517_v5  ;;  %v1187_v9 = vsub.f32 %v1171_v18, %v6401_v16 }
 0x2b9   : > { %v1180_v12 = vmul.f32 2.0, %v1121_v11  ;;  %5031 = vmatprep.subr.bf16.mxu0 %v5518_v10  ;;  %v1188_v34 = vsub.f32 %v1172_v23, %v6387_v13  ;;  %v5521_v13 = vld [vmem:[#allocation10 + $0xf0] sm:$0xff]  }
 0x2ba   : > { %v1195_v33 = vsub.f32 %v1179_v32, %v6404_v17 }
 0x2bb   : > { %v1196_v38 = vsub.f32 %v1180_v12, %v6397_v15 }
 0x2bc   : > { %5032 = vmatpush3.bf16.msra.mxu0 %v5518_v10  ;;  %v1203_v24 = vpack.c.bf16 %v1195_v33, %v1187_v9  ;;  %v5525_v10 = vld [vmem:[#allocation10 + $0x110] sm:$0xff]   ;;  %v5528_v33 = vld [vmem:[#allocation10 + $0x128] sm:$0xff]  }
 0x2bd   : > { %v1158_v40 = vpop.f32.mrb[12].mxu1  ;;  %v1204_v41 = vpack.c.bf16 %v1196_v38, %v1188_v34  ;;  %5033 = vmatprep.subr.bf16.mxu0 %v5519_v8 }
 0x2be   : > { %v1173_v46 = vmul.f32 2.0, %v1158_v40  ;;  %v1160_v48 = vpop.f32.mrb[13].mxu1  ;;  %5017 = vmatprep.mubr.bf16.mxu0 %v1203_v24 }
 0x2bf   : > { %v1174_v49 = vmul.f32 2.0, %v1160_v48  ;;  %v1162_v51 = vpop.f32.mrb[14].mxu1  ;;  %5018 = vmatmul.mubr.bf16.gmra.mrb[24].mxu0 %v1204_v41  ;;  %v427_v48 = vld [vmem:[%s6321_s19] sm:$0xff] }
 0x2c0   : > { %v1181_v54 = vmul.f32 2.0, %v1162_v51  ;;  %v1164_v16 = vpop.f32.mrb[15].mxu1  ;;  %5034 = vmatpush3.bf16.msra.mxu0 %v5519_v8  ;;  %v1189_v15 = vsub.f32 %v1173_v46, %v6421_v21  ;;  %v5527_v8 = vld [vmem:[#allocation10 + $0x120] sm:$0xff]   ;;  %v5530_v46 = vld [vmem:[#allocation10 + $0x138] sm:$0xff]   ;;  %4157 = vrot.lane.b32.xlu0 %v427_v48, %s5982_s14  ;;  %v430_v51 = vld [vmem:[%s6321_s19 + $0x18] sm:$0xff] }
 0x2c1   : > { %v1182_v17 = vmul.f32 2.0, %v1164_v16  ;;  %5035 = vmatprep.subr.bf16.mxu0 %v5520_v43  ;;  %v1190_v57 = vsub.f32 %v1174_v49, %v6415_v19  ;;  %v428_v49 = vld [vmem:[%s6321_s19 + $0x8] sm:$0xff] }
 0x2c2   : > { %v1197_v56 = vsub.f32 %v1181_v54, %v6426_v22  ;;  %v5523_v22 = vld [vmem:[#allocation10 + $0x100] sm:$0xff]   ;;  %4159 = vrot.lane.b32.xlu1 %v428_v49, %s5982_s14  ;;  %v431_v54 = vld [vmem:[%s6321_s19 + $0x20] sm:$0xff]  ;;  %v432_v16 = vld [vmem:[%s6321_s19 + $0x28] sm:$0xff] }
 0x2c3   : > { %v1198_v59 = vsub.f32 %v1182_v17, %v6418_v20  ;;  %v5524_v20 = vld [vmem:[#allocation10 + $0x108] sm:$0xff]   ;;  %v433_v17 = vld [vmem:[%s6321_s19 + $0x30] sm:$0xff] }
 0x2c4   : > { %5036 = vmatpush3.bf16.msra.mxu0 %v5520_v43  ;;  %v1205_v62 = vpack.c.bf16 %v1197_v56, %v1189_v15  ;;  %v5529_v43 = vld [vmem:[#allocation10 + $0x130] sm:$0xff]  }
 0x2c5   : > { %v1443_v25 = vpop.f32.mrb[16].mxu1  ;;  %v1206_v27 = vpack.c.bf16 %v1198_v59, %v1190_v57  ;;  %5037 = vmatprep.subr.bf16.mxu0 %v5521_v13 }
 0x2c6   : > { %5021 = vmatprep.mubr.bf16.mxu0 %v1205_v62  ;;  %v1445_v3 = vpop.f32.mrb[17].mxu1 }
 0x2c7   : > { %5022 = vmatmul.mubr.bf16.gmra.mrb[28].mxu0 %v1206_v27  ;;  %v1447_v5 = vpop.f32.mrb[18].mxu1 }
 0x2c8   : > { %v1581_v1 = vpack.c.bf16 %v1447_v5, %v1443_v25  ;;  %v1449_v2 = vpop.f32.mrb[19].mxu1  ;;  %5038 = vmatpush3.bf16.msra.mxu0 %v5521_v13  ;;  %v434_v13 = vld [vmem:[%s6321_s19 + $0x38] sm:$0xff] }
 0x2c9   : > { %v1582_v21 = vpack.c.bf16 %v1449_v2, %v1445_v3  ;;  %5039 = vmatprep.subr.bf16.mxu0 %v5522_v28 }
 0x2ca   : > { %5041 = vmatprep.mubr.bf16.mxu0 %v1581_v1 }
 0x2cb   : > { %1783 = vmatprep.subr.bf16.mxu1 %v1582_v21 }
 0x2cc   : > { %5040 = vmatpush3.bf16.msra.mxu0 %v5522_v28  ;;  %1784 = vmatpush1.bf16.msra.mxu1 %v1581_v1 }
 0x2cd   : > { %v1486_v19 = vpop.f32.mrb[20].mxu1  ;;  %5057 = vmatprep.subr.bf16.mxu0 %v5523_v22 }
 0x2ce   : > { %v1488_v29 = vpop.f32.mrb[21].mxu1 }
 0x2cf   : > { %v1490_v6 = vpop.f32.mrb[22].mxu1  ;;  %5042 = vmatmul.mubr.bf16.vlgmr.msra.gmra.mrb[16].mxu0 %v1582_v21  ;;  %4675 = vmatmul.mubr.msk.bf16.vlgmr.msra.gmra.mrb[32].mxu1 %vm488_vm0, %v6528_v30 }
 0x2d0   : > { %v1583_v7 = vpack.c.bf16 %v1490_v6, %v1486_v19  ;;  %v1492_v4 = vpop.f32.mrb[23].mxu1  ;;  %1858 = vmatprep.mubr.bf16.mxu1 %v7091_v0  ;;  %5058 = vmatpush3.bf16.msra.mxu0 %v5523_v22 }
 0x2d1   : > { %v1584_v14 = vpack.c.bf16 %v1492_v4, %v1488_v29  ;;  %5059 = vmatprep.subr.bf16.mxu0 %v5524_v20 }
 0x2d2   : > { %5045 = vmatprep.mubr.bf16.mxu0 %v1583_v7 }
 0x2d3   : > { %1826 = vmatprep.subr.bf16.mxu1 %v1584_v14 }
 0x2d4   : > { %1827 = vmatpush1.bf16.msra.mxu1 %v1583_v7  ;;  %5060 = vmatpush3.bf16.msra.mxu0 %v5524_v20 }
 0x2d5   : > { %v1529_v18 = vpop.f32.mrb[24].mxu1  ;;  %5061 = vmatprep.subr.bf16.mxu0 %v5525_v10 }
 0x2d6   : > { %v1531_v23 = vpop.f32.mrb[25].mxu1 }
 0x2d7   : > { %v1533_v31 = vpop.f32.mrb[26].mxu1  ;;  %4676 = vmatmul.mubr.msk.bf16.vlgmr.msra.gmra.mrb[36].mxu1 %vm488_vm0, %v6528_v30  ;;  %5046 = vmatmul.mubr.bf16.gmra.mrb[20].mxu0 %v1584_v14 }
 0x2d8   : > { %v1585_v32 = vpack.c.bf16 %v1533_v31, %v1529_v18  ;;  %v1535_v11 = vpop.f32.mrb[27].mxu1  ;;  %1901 = vmatprep.mubr.bf16.mxu1 %v7091_v0  ;;  %5062 = vmatpush3.bf16.msra.mxu0 %v5525_v10 }
 0x2d9   : > { %v1586_v12 = vpack.c.bf16 %v1535_v11, %v1531_v23  ;;  %5063 = vmatprep.subr.bf16.mxu0 %v5526_v26 }
 0x2da   : > { %5049 = vmatprep.mubr.bf16.mxu0 %v1585_v32 }
 0x2db   : > { %1869 = vmatprep.subr.bf16.mxu1 %v1586_v12 }
 0x2dc   : > { %1870 = vmatpush1.bf16.msra.mxu1 %v1585_v32  ;;  %5064 = vmatpush3.bf16.msra.mxu0 %v5526_v26 }
 0x2dd   : > { %v1572_v9 = vpop.f32.mrb[28].mxu1  ;;  %5065 = vmatprep.subr.bf16.mxu0 %v5527_v8 }
 0x2de   : > { %v1574_v34 = vpop.f32.mrb[29].mxu1 }
 0x2df   : > { %v1576_v38 = vpop.f32.mrb[30].mxu1  ;;  %4677 = vmatmul.mubr.msk.bf16.vlgmr.msra.gmra.mrb[40].mxu1 %vm488_vm0, %v6528_v30  ;;  %5050 = vmatmul.mubr.bf16.gmra.mrb[24].mxu0 %v1586_v12 }
 0x2e0   : > { %v1587_v24 = vpack.c.bf16 %v1576_v38, %v1572_v9  ;;  %v1578_v40 = vpop.f32.mrb[31].mxu1  ;;  %1944 = vmatprep.mubr.bf16.mxu1 %v7091_v0  ;;  %5066 = vmatpush3.bf16.msra.mxu0 %v5527_v8 }
 0x2e1   : > { %v1588_v41 = vpack.c.bf16 %v1578_v40, %v1574_v34  ;;  %5067 = vmatprep.subr.bf16.mxu0 %v5528_v33 }
 0x2e2   : > { %5053 = vmatprep.mubr.bf16.mxu0 %v1587_v24 }
 0x2e3   : > { %1912 = vmatprep.subr.bf16.mxu1 %v1588_v41 }
 0x2e4   : > { %1913 = vmatpush1.bf16.msra.mxu1 %v1587_v24  ;;  %5068 = vmatpush3.bf16.msra.mxu0 %v5528_v33 }
 0x2e5   : > { %5069 = vmatprep.subr.bf16.mxu0 %v5529_v43 }
 0x2e7   : > { %4678 = vmatmul.mubr.msk.bf16.vlgmr.msra.gmra.mrb[44].mxu1 %vm488_vm0, %v6528_v30  ;;  %5054 = vmatmul.mubr.bf16.gmra.mrb[28].mxu0 %v1588_v41  ;;  %v429_v30 = vld [vmem:[%s6321_s19 + $0x10] sm:$0xff] }
 0x2e8   : > { %2445 = vmatprep.mubr.bf16.mxu1 %v7091_v0  ;;  %5070 = vmatpush3.bf16.msra.mxu0 %v5529_v43 }
 0x2e9   : > { %5071 = vmatprep.subr.bf16.mxu0 %v5530_v46  ;;  %4161 = vrot.lane.b32.xlu0 %v429_v30, %s5982_s14 }
 0x2ec   : > { %5072 = vmatpush3.bf16.msra.mxu0 %v5530_v46 }
 0x2ed   : > { %4163 = vrot.lane.b32.xlu0 %v430_v51, %s5982_s14 }
 0x2f1   : > { %4165 = vrot.lane.b32.xlu0 %v431_v54, %s5982_s14 }
 0x2f5   : > { %4167 = vrot.lane.b32.xlu0 %v432_v16, %s5982_s14  ;;  %v6611_v16 = vld [vmem:[#allocation12] ss:$0 sm:$0xff] }
 0x2f9   : > { %4169 = vrot.lane.b32.xlu0 %v433_v17, %s5982_s14 }
 0x2fd   : > { %4171 = vrot.lane.b32.xlu0 %v434_v13, %s5982_s14 }
 0x3a2   : > { %v1817_v15 = vpop.f32.mrb[32].mxu1 }
 0x3a3   : > { %v1955_v56 = vmul.f32 2.0, %v1817_v15  ;;  %v1819_v57 = vpop.f32.mrb[33].mxu1 }
 0x3a4   : > { %v1956_v59 = vmul.f32 2.0, %v1819_v57  ;;  %v1821_v62 = vpop.f32.mrb[34].mxu1 }
 0x3a5   : > { %v1971_v25 = vsub.f32 %v1955_v56, %v6458_v35  ;;  %v1963_v27 = vmul.f32 2.0, %v1821_v62  ;;  %v1823_v28 = vpop.f32.mrb[35].mxu1 }
 0x3a6   : > { %v1972_v3 = vsub.f32 %v1956_v59, %v6460_v36  ;;  %v1964_v5 = vmul.f32 2.0, %v1823_v28 }
 0x3a7   : > { %v1979_v1 = vsub.f32 %v1963_v27, %v6462_v37 }
 0x3a8   : > { %v1980_v2 = vsub.f32 %v1964_v5, %v6468_v39 }
 0x3a9   : > { %v1987_v21 = vpack.c.bf16 %v1979_v1, %v1971_v25 }
 0x3aa   : > { %v1988_v22 = vpack.c.bf16 %v1980_v2, %v1972_v3  ;;  %v1860_v19 = vpop.f32.mrb[36].mxu1 }
 0x3ab   : > { %v1957_v20 = vmul.f32 2.0, %v1860_v19  ;;  %v1862_v29 = vpop.f32.mrb[37].mxu1  ;;  %5073 = vmatprep.mubr.bf16.mxu0 %v1987_v21 }
 0x3ac   : > { %v1958_v6 = vmul.f32 2.0, %v1862_v29  ;;  %v1864_v7 = vpop.f32.mrb[38].mxu1  ;;  %5074 = vmatmul.mubr.bf16.vlgmr.msra.gmra.mrb[16].mxu0 %v1988_v22 }
 0x3ad   : > { %v1973_v35 = vsub.f32 %v1957_v20, %v6474_v42  ;;  %v1965_v4 = vmul.f32 2.0, %v1864_v7  ;;  %v1866_v14 = vpop.f32.mrb[39].mxu1 }
 0x3ae   : > { %v1974_v36 = vsub.f32 %v1958_v6, %v6476_v44  ;;  %v1966_v10 = vmul.f32 2.0, %v1866_v14 }
 0x3af   : > { %v1981_v37 = vsub.f32 %v1965_v4, %v6478_v45 }
 0x3b0   : > { %v1982_v39 = vsub.f32 %v1966_v10, %v6486_v47 }
 0x3b1   : > { %v1989_v18 = vpack.c.bf16 %v1981_v37, %v1973_v35 }
 0x3b2   : > { %v1903_v26 = vpop.f32.mrb[40].mxu1  ;;  %v1990_v23 = vpack.c.bf16 %v1982_v39, %v1974_v36 }
 0x3b3   : > { %v1959_v31 = vmul.f32 2.0, %v1903_v26  ;;  %v1905_v32 = vpop.f32.mrb[41].mxu1  ;;  %5077 = vmatprep.mubr.bf16.mxu0 %v1989_v18 }
 0x3b4   : > { %v1960_v11 = vmul.f32 2.0, %v1905_v32  ;;  %v1907_v12 = vpop.f32.mrb[42].mxu1  ;;  %5078 = vmatmul.mubr.bf16.gmra.mrb[20].mxu0 %v1990_v23 }
 0x3b5   : > { %v1975_v42 = vsub.f32 %v1959_v31, %v6493_v50  ;;  %v1967_v8 = vmul.f32 2.0, %v1907_v12  ;;  %v1909_v9 = vpop.f32.mrb[43].mxu1 }
 0x3b6   : > { %v1976_v44 = vsub.f32 %v1960_v11, %v6495_v52  ;;  %v1968_v33 = vmul.f32 2.0, %v1909_v9 }
 0x3b7   : > { %v1983_v45 = vsub.f32 %v1967_v8, %v6497_v53 }
 0x3b8   : > { %v1984_v47 = vsub.f32 %v1968_v33, %v6503_v55 }
 0x3b9   : > { %v1991_v34 = vpack.c.bf16 %v1983_v45, %v1975_v42 }
 0x3ba   : > { %v1946_v38 = vpop.f32.mrb[44].mxu1  ;;  %v1992_v24 = vpack.c.bf16 %v1984_v47, %v1976_v44 }
 0x3bb   : > { %v1961_v40 = vmul.f32 2.0, %v1946_v38  ;;  %v1948_v41 = vpop.f32.mrb[45].mxu1  ;;  %5081 = vmatprep.mubr.bf16.mxu0 %v1991_v34 }
 0x3bc   : > { %v1962_v43 = vmul.f32 2.0, %v1948_v41  ;;  %v1950_v46 = vpop.f32.mrb[46].mxu1  ;;  %5082 = vmatmul.mubr.bf16.gmra.mrb[24].mxu0 %v1992_v24 }
 0x3bd   : > { %v1977_v50 = vsub.f32 %v1961_v40, %v6508_v58  ;;  %v1969_v48 = vmul.f32 2.0, %v1950_v46  ;;  %v1952_v49 = vpop.f32.mrb[47].mxu1 }
 0x3be   : > { %v1978_v52 = vsub.f32 %v1962_v43, %v6510_v60  ;;  %v1970_v30 = vmul.f32 2.0, %v1952_v49 }
 0x3bf   : > { %v1985_v53 = vsub.f32 %v1969_v48, %v6512_v61 }
 0x3c0   : > { %v1986_v55 = vsub.f32 %v1970_v30, %v6518_v63 }
 0x3c1   : > { %v1993_v51 = vpack.c.bf16 %v1985_v53, %v1977_v50 }
 0x3c2   : > { %v1994_v54 = vpack.c.bf16 %v1986_v55, %v1978_v52 }
 0x3c3   : > { %5085 = vmatprep.mubr.bf16.mxu0 %v1993_v51 }
 0x3c4   : > { %5086 = vmatmul.mubr.bf16.gmra.mrb[28].mxu0 %v1994_v54 }
 0x3c5   : > { %2948 = vmatprep.mubr.bf16.mxu0 %v7091_v0 }
 0x47f   : > { %v5075_v17 = vpop.f32.mrb[16].mxu0 }
 0x480   : > { %v2198_v58 = vadd.f32 %v5075_v17, %v6611_v16  ;;  %v2110_v13 = vpop.f32.mrb[17].mxu0 }
 0x481   : > { %v2196_v15 = vadd.f32 %v6611_v16, %v2110_v13  ;;  %v5076_v60 = vpop.f32.mrb[18].mxu0  ;;  %v5667_v13 = vld [vmem:[#allocation3 + $0x8] sm:$0xff] }
 0x482   : > { %v4690_v56 = vmul.f32 -1.442695, %v2198_v58  ;;  %v2199_v61 = vadd.f32 %v5076_v60, %v6611_v16  ;;  %v2113_v57 = vpop.f32.mrb[19].mxu0 }
 0x483   : > { %v4688_v63 = vmul.f32 -1.442695, %v2196_v15  ;;  %v2197_v59 = vadd.f32 %v6611_v16, %v2113_v57 }
 0x484   : > { %5571 = vpow2.f32 %v4690_v56  ;;  %v4691_v62 = vmul.f32 -1.442695, %v2199_v61  ;;  %v5668_v61 = vld [vmem:[#allocation3] sm:$0xff] }
 0x485   : > { %5573 = vpow2.f32 %v4688_v63  ;;  %v4689_v25 = vmul.f32 -1.442695, %v2197_v59 }
 0x486   : > { %5575 = vpow2.f32 %v4691_v62  ;;  %v5669_v62 = vld [vmem:[#allocation3 + $0x48] sm:$0xff] }
 0x487   : > { %5577 = vpow2.f32 %v4689_v25  ;;  %v5079_v27 = vpop.f32.mrb[20].mxu0 }
 0x488   : > { %v2202_v28 = vadd.f32 %v5079_v27, %v6611_v16  ;;  %v2126_v3 = vpop.f32.mrb[21].mxu0  ;;  %v5670_v27 = vld [vmem:[#allocation3 + $0x40] sm:$0xff] }
 0x489   : > { %v2200_v5 = vadd.f32 %v6611_v16, %v2126_v3  ;;  %v5080_v1 = vpop.f32.mrb[22].mxu0 }
 0x48a   : > { %v4694_v2 = vmul.f32 -1.442695, %v2202_v28  ;;  %v2203_v21 = vadd.f32 %v5080_v1, %v6611_v16  ;;  %v2129_v22 = vpop.f32.mrb[23].mxu0 }
 0x48b   : > { %v4692_v19 = vmul.f32 -1.442695, %v2200_v5  ;;  %v2201_v20 = vadd.f32 %v6611_v16, %v2129_v22 }
 0x48c   : > { %5579 = vpow2.f32 %v4694_v2  ;;  %v4695_v29 = vmul.f32 -1.442695, %v2203_v21 }
 0x48d   : > { %5581 = vpow2.f32 %v4692_v19  ;;  %v4693_v6 = vmul.f32 -1.442695, %v2201_v20 }
 0x48e   : > { %v5572_v7 = vpop.eup %5571  ;;  %5583 = vpow2.f32 %v4695_v29 }
 0x48f   : > { %v5574_v35 = vpop.eup %5573  ;;  %v2262_v4 = vadd.f32 1.0, %v5572_v7  ;;  %5585 = vpow2.f32 %v4693_v6  ;;  %v5083_v14 = vpop.f32.mrb[24].mxu0  ;;  %v5671_v6 = vld [vmem:[#allocation3 + $0x18] sm:$0xff] }
 0x490   : > { %v5576_v36 = vpop.eup %5575  ;;  %v2260_v10 = vadd.f32 1.0, %v5574_v35  ;;  %v2206_v37 = vadd.f32 %v5083_v14, %v6611_v16  ;;  %v2142_v39 = vpop.f32.mrb[25].mxu0 }
 0x491   : > { %v5578_v18 = vpop.eup %5577  ;;  %5587 = vrcp.f32 %v2262_v4  ;;  %v2263_v26 = vadd.f32 1.0, %v5576_v36  ;;  %v2204_v23 = vadd.f32 %v6611_v16, %v2142_v39  ;;  %v5084_v31 = vpop.f32.mrb[26].mxu0  ;;  %v5672_v4 = vld [vmem:[#allocation3 + $0x10] sm:$0xff] }
 0x492   : > { %5589 = vrcp.f32 %v2260_v10  ;;  %v2261_v32 = vadd.f32 1.0, %v5578_v18  ;;  %v4698_v11 = vmul.f32 -1.442695, %v2206_v37  ;;  %v2207_v12 = vadd.f32 %v5084_v31, %v6611_v16  ;;  %v2145_v42 = vpop.f32.mrb[27].mxu0  ;;  %v5673_v10 = vld [vmem:[#allocation3 + $0x58] sm:$0xff]  ;;  %v5674_v18 = vld [vmem:[#allocation3 + $0x50] sm:$0xff] }
 0x493   : > { %5591 = vrcp.f32 %v2263_v26  ;;  %v4696_v8 = vmul.f32 -1.442695, %v2204_v23  ;;  %v2205_v9 = vadd.f32 %v6611_v16, %v2145_v42 }
 0x494   : > { %5593 = vrcp.f32 %v2261_v32  ;;  %v4699_v44 = vmul.f32 -1.442695, %v2207_v12 }
 0x495   : > { %5595 = vpow2.f32 %v4698_v11  ;;  %v4697_v33 = vmul.f32 -1.442695, %v2205_v9 }
 0x496   : > { %v5580_v45 = vpop.eup %5579  ;;  %5597 = vpow2.f32 %v4696_v8 }
 0x497   : > { %v5582_v47 = vpop.eup %5581  ;;  %v2266_v34 = vadd.f32 1.0, %v5580_v45  ;;  %5599 = vpow2.f32 %v4699_v44  ;;  %v5087_v38 = vpop.f32.mrb[28].mxu0 }
 0x498   : > { %v5584_v24 = vpop.eup %5583  ;;  %v2264_v40 = vadd.f32 1.0, %v5582_v47  ;;  %5601 = vpow2.f32 %v4697_v33  ;;  %v2210_v41 = vadd.f32 %v5087_v38, %v6611_v16  ;;  %v2158_v43 = vpop.f32.mrb[29].mxu0 }
 0x499   : > { %v5586_v46 = vpop.eup %5585  ;;  %5603 = vrcp.f32 %v2266_v34  ;;  %v2267_v50 = vadd.f32 1.0, %v5584_v24  ;;  %v2208_v48 = vadd.f32 %v6611_v16, %v2158_v43  ;;  %v5088_v49 = vpop.f32.mrb[30].mxu0 }
 0x49a   : > { %5605 = vrcp.f32 %v2264_v40  ;;  %v2265_v52 = vadd.f32 1.0, %v5586_v46  ;;  %v4702_v30 = vmul.f32 -1.442695, %v2210_v41  ;;  %v2211_v53 = vadd.f32 %v5088_v49, %v6611_v16  ;;  %v2161_v55 = vpop.f32.mrb[31].mxu0  ;;  %v5675_v40 = vld [vmem:[#allocation3 + $0x28] sm:$0xff]  ;;  %v5676_v46 = vld [vmem:[#allocation3 + $0x20] sm:$0xff] }
 0x49b   : > { %v6628_v51 = vpop.eup %5587  ;;  %5607 = vrcp.f32 %v2267_v50  ;;  %v4700_v54 = vmul.f32 -1.442695, %v2208_v48  ;;  %v2209_v17 = vadd.f32 %v6611_v16, %v2161_v55  ;;  %v6687_v48 = vld [vmem:[#allocation9] sm:$0xff]  }
 0x49c   : > { %v6631_v58 = vpop.eup %5589  ;;  %v2329_v15 = vmul.f32 %v5667_v13, %v6628_v51  ;;  %5609 = vrcp.f32 %v2265_v52  ;;  %v4703_v60 = vmul.f32 -1.442695, %v2211_v53  ;;  %v5678_v52 = vld [vmem:[#allocation3 + $0x68] sm:$0xff] }
 0x49d   : > { %v6634_v56 = vpop.eup %5591  ;;  %v2324_v57 = vmul.f32 %v5668_v61, %v6631_v58  ;;  %5611 = vpow2.f32 %v4702_v30  ;;  %v4701_v63 = vmul.f32 -1.442695, %v2209_v17 }
 0x49e   : > { %v6637_v59 = vpop.eup %5593  ;;  %2331 = vst.msk [vmem:[#allocation3 + $0x8] sm:$0xff] %vm2326_vm1, %v2329_v15  ;;  %v2330_v16 = vmul.f32 %v5669_v62, %v6634_v56  ;;  %5613 = vpow2.f32 %v4700_v54  ;;  %v5679_v54 = vld [vmem:[#allocation3 + $0x60] sm:$0xff]  ;;  %v5680_v62 = vld [vmem:[#allocation3 + $0x38] sm:$0xff] }
 0x49f   : > { %v5596_v25 = vpop.eup %5595  ;;  %2327 = vst.msk [vmem:[#allocation3] sm:$0xff] %vm2326_vm1, %v2324_v57  ;;  %v2325_v28 = vmul.f32 %v5670_v27, %v6637_v59  ;;  %5615 = vpow2.f32 %v4703_v60  ;;  %v5681_v27 = vld [vmem:[#allocation3 + $0x30] sm:$0xff] }
 0x4a0   : > { %v5598_v3 = vpop.eup %5597  ;;  %2332 = vst.msk [vmem:[#allocation3 + $0x48] sm:$0xff] %vm2326_vm1, %v2330_v16  ;;  %v2270_v5 = vadd.f32 1.0, %v5596_v25  ;;  %5617 = vpow2.f32 %v4701_v63 }
 0x4a1   : > { %v5600_v1 = vpop.eup %5599  ;;  %2328 = vst.msk [vmem:[#allocation3 + $0x40] sm:$0xff] %vm2326_vm1, %v2325_v28  ;;  %v2268_v2 = vadd.f32 1.0, %v5598_v3 }
 0x4a2   : > { %v5602_v21 = vpop.eup %5601  ;;  %5619 = vrcp.f32 %v2270_v5  ;;  %v2271_v22 = vadd.f32 1.0, %v5600_v1  ;;  %v5682_v5 = vld [vmem:[#allocation3 + $0x78] sm:$0xff] }
 0x4a3   : > { %v6645_v19 = vpop.eup %5603  ;;  %5621 = vrcp.f32 %v2268_v2  ;;  %v2269_v20 = vadd.f32 1.0, %v5602_v21  ;;  %v5683_v2 = vld [vmem:[#allocation3 + $0x70] sm:$0xff] }
 0x4a4   : > { %v6647_v29 = vpop.eup %5605  ;;  %v2337_v7 = vmul.f32 %v5671_v6, %v6645_v19  ;;  %5623 = vrcp.f32 %v2271_v22 }
 0x4a5   : > { %v6650_v35 = vpop.eup %5607  ;;  %v2333_v14 = vmul.f32 %v5672_v4, %v6647_v29  ;;  %5625 = vrcp.f32 %v2269_v20  ;;  %v6659_v23 = vld [vmem:[#allocation3 + $0x8] sm:$0xff] }
 0x4a6   : > { %v6653_v36 = vpop.eup %5609  ;;  %2339 = vst.msk [vmem:[#allocation3 + $0x18] sm:$0xff] %vm2326_vm1, %v2337_v7  ;;  %v2338_v37 = vmul.f32 %v5673_v10, %v6650_v35  ;;  %v6668_v42 = vld [vmem:[#allocation3] sm:$0xff] }
 0x4a7   : > { %v5612_v39 = vpop.eup %5611  ;;  %2335 = vst.msk [vmem:[#allocation3 + $0x10] sm:$0xff] %vm2326_vm1, %v2333_v14  ;;  %v2334_v26 = vmul.f32 %v5674_v18, %v6653_v36  ;;  %v6661_v31 = vld [vmem:[#allocation3 + $0x48] sm:$0xff] }
 0x4a8   : > { %v5614_v32 = vpop.eup %5613  ;;  %2340 = vst.msk [vmem:[#allocation3 + $0x58] sm:$0xff] %vm2326_vm1, %v2338_v37  ;;  %v2274_v11 = vadd.f32 1.0, %v5612_v39  ;;  %v6666_v12 = vpack.c.bf16 %v6661_v31, %v6659_v23  ;;  %v6670_v8 = vld [vmem:[#allocation3 + $0x40] sm:$0xff] }
 0x4a9   : > { %v5616_v9 = vpop.eup %5615  ;;  %2336 = vst.msk [vmem:[#allocation3 + $0x50] sm:$0xff] %vm2326_vm1, %v2334_v26  ;;  %v2272_v44 = vadd.f32 1.0, %v5614_v32  ;;  %v6675_v33 = vpack.c.bf16 %v6670_v8, %v6668_v42  ;;  %v5531_v32 = vld [vmem:[#allocation13 + $0x40] sm:$0xff]  }
 0x4aa   : > { %v5618_v45 = vpop.eup %5617  ;;  %5627 = vrcp.f32 %v2274_v11  ;;  %v2275_v47 = vadd.f32 1.0, %v5616_v9  ;;  %2413 = vmatprep.subr.bf16.mxu1 %v6666_v12  ;;  %v5532_v9 = vld [vmem:[#allocation13 + $0x48] sm:$0xff]  }
 0x4ab   : > { %5629 = vrcp.f32 %v2272_v44  ;;  %v2273_v34 = vadd.f32 1.0, %v5618_v45  ;;  %2414 = vmatpush1.bf16.msra.mxu1 %v6675_v33  ;;  %v5533_v44 = vld [vmem:[#allocation13 + $0x50] sm:$0xff]   ;;  %v5534_v45 = vld [vmem:[#allocation13 + $0x58] sm:$0xff]  }
 0x4ac   : > { %v6679_v38 = vpop.eup %5619  ;;  %5631 = vrcp.f32 %v2275_v47  ;;  %v5535_v47 = vld [vmem:[#allocation13 + $0x60] sm:$0xff]  }
 0x4ad   : > { %v6681_v24 = vpop.eup %5621  ;;  %v2345_v41 = vmul.f32 %v5675_v40, %v6679_v38  ;;  %5633 = vrcp.f32 %v2273_v34  ;;  %v6695_v53 = vld [vmem:[#allocation3 + $0x18] sm:$0xff]  ;;  %v5537_v40 = vld [vmem:[#allocation13 + $0x70] sm:$0xff]  }
 0x4ae   : > { %v6684_v43 = vpop.eup %5623  ;;  %v2341_v50 = vmul.f32 %v5676_v46, %v6681_v24  ;;  %4704 = vmatmul.mubr.msk.bf16.vlgmr.msra.gmra.mrb[48].mxu1 %vm488_vm0, %v6687_v48  ;;  %v6706_v15 = vld [vmem:[#allocation3 + $0x10] sm:$0xff]  ;;  %v5536_v34 = vld [vmem:[#allocation13 + $0x68] sm:$0xff]  }
 0x4af   : > { %7130 = vst [vmem:[#allocation23_spill] sm:$0xff] %v6684_v43  ;;  %v6691_v49 = vpop.eup %5625  ;;  %2347 = vst.msk [vmem:[#allocation3 + $0x28] sm:$0xff] %vm2326_vm1, %v2345_v41  ;;  %v2346_v30 = vmul.f32 %v5678_v52, %v6684_v43  ;;  %v6697_v55 = vld [vmem:[#allocation3 + $0x58] sm:$0xff]  ;;  %2488 = vmatprep.mubr.bf16.mxu1 %v7091_v0  ;;  %v5538_v41 = vld [vmem:[#allocation13 + $0x78] sm:$0xff]  }
 0x4b0   : > { %7131 = vst [vmem:[#allocation24_spill] sm:$0xff] %v6691_v49  ;;  %2343 = vst.msk [vmem:[#allocation3 + $0x20] sm:$0xff] %vm2326_vm1, %v2341_v50  ;;  %v2342_v17 = vmul.f32 %v5679_v54, %v6691_v49  ;;  %v6704_v13 = vpack.c.bf16 %v6697_v55, %v6695_v53  ;;  %v6708_v60 = vld [vmem:[#allocation3 + $0x50] sm:$0xff] }
 0x4b1   : > { %2348 = vst.msk [vmem:[#allocation3 + $0x68] sm:$0xff] %vm2326_vm1, %v2346_v30  ;;  %v6713_v61 = vpack.c.bf16 %v6708_v60, %v6706_v15  ;;  %v5539_v46 = vld [vmem:[#allocation13] sm:$0xff]   ;;  %v5546_v43 = vld [vmem:[#allocation13 + $0x38] sm:$0xff]  }
 0x4b2   : > { %2344 = vst.msk [vmem:[#allocation3 + $0x60] sm:$0xff] %vm2326_vm1, %v2342_v17  ;;  %2456 = vmatprep.subr.bf16.mxu1 %v6704_v13  ;;  %v5547_v49 = vld [vmem:[#allocation13 + $0x80] sm:$0xff]  }
 0x4b3   : > { %2457 = vmatpush1.bf16.msra.mxu1 %v6713_v61 }
 0x4b4   : > { %v6718_v57 = vpop.eup %5627 }
 0x4b5   : > { %7132 = vst [vmem:[#allocation25_spill] sm:$0xff] %v6718_v57  ;;  %v6720_v63 = vpop.eup %5629  ;;  %v2353_v16 = vmul.f32 %v5680_v62, %v6718_v57  ;;  %v7136_v57 = vmov 0  }
 0x4b6   : > { %7133 = vst [vmem:[#allocation26_spill] sm:$0xff] %v6720_v63  ;;  %v6723_v25 = vpop.eup %5631  ;;  %v2349_v28 = vmul.f32 %v5681_v27, %v6720_v63  ;;  %4705 = vmatmul.mubr.msk.bf16.vlgmr.msra.gmra.mrb[52].mxu1 %vm488_vm0, %v6687_v48  ;;  %v6735_v22 = vld [vmem:[#allocation3 + $0x28] sm:$0xff] }
 0x4b7   : > { %7134 = vst [vmem:[#allocation27_spill] sm:$0xff] %v6723_v25  ;;  %v6728_v3 = vpop.eup %5633  ;;  %2355 = vst.msk [vmem:[#allocation3 + $0x38] sm:$0xff] %vm2326_vm1, %v2353_v16  ;;  %v2354_v1 = vmul.f32 %v5682_v5, %v6723_v25  ;;  %2531 = vmatprep.mubr.bf16.mxu1 %v7091_v0  ;;  %v6744_v7 = vld [vmem:[#allocation3 + $0x20] sm:$0xff] }
 0x4b8   : > { %7135 = vst [vmem:[#allocation28_spill] sm:$0xff] %v6728_v3  ;;  %2351 = vst.msk [vmem:[#allocation3 + $0x30] sm:$0xff] %vm2326_vm1, %v2349_v28  ;;  %v2350_v21 = vmul.f32 %v5683_v2, %v6728_v3  ;;  %v6737_v20 = vld [vmem:[#allocation3 + $0x68] sm:$0xff]  ;;  %v5540_v16 = vld [vmem:[#allocation13 + $0x8] sm:$0xff]  }
 0x4b9   : > { %2356 = vst.msk [vmem:[#allocation3 + $0x78] sm:$0xff] %vm2326_vm1, %v2354_v1  ;;  %v6742_v6 = vpack.c.bf16 %v6737_v20, %v6735_v22  ;;  %v6746_v4 = vld [vmem:[#allocation3 + $0x60] sm:$0xff] }
 0x4ba   : > { %2352 = vst.msk [vmem:[#allocation3 + $0x70] sm:$0xff] %vm2326_vm1, %v2350_v21  ;;  %v6751_v14 = vpack.c.bf16 %v6746_v4, %v6744_v7  ;;  %v5541_v28 = vld [vmem:[#allocation13 + $0x10] sm:$0xff]  }
 0x4bb   : > { %2499 = vmatprep.subr.bf16.mxu1 %v6742_v6 }
 0x4bc   : > { %2500 = vmatpush1.bf16.msra.mxu1 %v6751_v14 }
 0x4be   : > { %v6757_v10 = vld [vmem:[#allocation3 + $0x38] sm:$0xff] }
 0x4bf   : > { %4706 = vmatmul.mubr.msk.bf16.vlgmr.msra.gmra.mrb[56].mxu1 %vm488_vm0, %v6687_v48  ;;  %v6766_v18 = vld [vmem:[#allocation3 + $0x30] sm:$0xff] }
 0x4c0   : > { %v6759_v37 = vld [vmem:[#allocation3 + $0x78] sm:$0xff]  ;;  %2574 = vmatprep.mubr.bf16.mxu1 %v7091_v0 }
 0x4c1   : > { %v6764_v39 = vpack.c.bf16 %v6759_v37, %v6757_v10  ;;  %v6768_v26 = vld [vmem:[#allocation3 + $0x70] sm:$0xff] }
 0x4c2   : > { %v6772_v11 = vpack.c.bf16 %v6768_v26, %v6766_v18 }
 0x4c3   : > { %2542 = vmatprep.subr.bf16.mxu1 %v6764_v39 }
 0x4c4   : > { %2543 = vmatpush1.bf16.msra.mxu1 %v6772_v11 }
 0x4c5   : > { %5089 = vmatprep.subr.bf16.mxu1 %v5531_v32 }
 0x4c7   : > { %4707 = vmatmul.mubr.msk.bf16.vlgmr.msra.gmra.mrb[60].mxu1 %vm488_vm0, %v6687_v48 }
 0x4c8   : > { %5090 = vmatpush3.bf16.msra.mxu1 %v5531_v32 }
 0x4c9   : > { %5091 = vmatprep.subr.bf16.mxu1 %v5532_v9 }
 0x4cc   : > { %5092 = vmatpush3.bf16.msra.mxu1 %v5532_v9  ;;  %v5542_v9 = vld [vmem:[#allocation13 + $0x18] sm:$0xff]  }
 0x4cd   : > { %5093 = vmatprep.subr.bf16.mxu1 %v5533_v44 }
 0x4d0   : > { %5094 = vmatpush3.bf16.msra.mxu1 %v5533_v44  ;;  %v5543_v44 = vld [vmem:[#allocation13 + $0x20] sm:$0xff]  }
 0x4d1   : > { %5095 = vmatprep.subr.bf16.mxu1 %v5534_v45 }
 0x4d4   : > { %5096 = vmatpush3.bf16.msra.mxu1 %v5534_v45 }
 0x4d5   : > { %5097 = vmatprep.subr.bf16.mxu1 %v5535_v47 }
 0x4d8   : > { %5098 = vmatpush3.bf16.msra.mxu1 %v5535_v47 }
 0x4d9   : > { %5099 = vmatprep.subr.bf16.mxu1 %v5536_v34 }
 0x4dc   : > { %5100 = vmatpush3.bf16.msra.mxu1 %v5536_v34 }
 0x4dd   : > { %5101 = vmatprep.subr.bf16.mxu1 %v5537_v40 }
 0x4e0   : > { %5102 = vmatpush3.bf16.msra.mxu1 %v5537_v40 }
 0x4e1   : > { %5103 = vmatprep.subr.bf16.mxu1 %v5538_v41 }
 0x4e4   : > { %5104 = vmatpush3.bf16.msra.mxu1 %v5538_v41 }
 0x4e5   : > { %5121 = vmatprep.subr.bf16.mxu1 %v5539_v46 }
 0x581   : > { %v6778_v50 = vpop.f32.mrb[48].mxu1 }
 0x582   : > { %v6780_v52 = vpop.f32.mrb[49].mxu1 }
 0x583   : > { %v6782_v30 = vpop.f32.mrb[50].mxu1 }
 0x584   : > { %v6786_v54 = vpack.c.bf16 %v6782_v30, %v6778_v50  ;;  %v6788_v17 = vpop.f32.mrb[51].mxu1 }
 0x585   : > { %v2586_v62 = vpack.c.bf16 %v6788_v17, %v6780_v52 }
 0x586   : > { %5105 = vmatprep.mubr.bf16.mxu1 %v6786_v54 }
 0x587   : > { %5106 = vmatmul.mubr.bf16.vlgmr.msra.gmra.mrb[64].mxu1 %v2586_v62  ;;  %2916 = vmatprep.subr.bf16.mxu0 %v2586_v62 }
 0x588   : > { %5122 = vmatpush3.bf16.msra.mxu1 %v5539_v46  ;;  %2917 = vmatpush1.bf16.msra.mxu0 %v6786_v54 }
 0x589   : > { %v6794_v27 = vpop.f32.mrb[52].mxu1  ;;  %5123 = vmatprep.subr.bf16.mxu1 %v5540_v16 }
 0x58a   : > { %v6796_v5 = vpop.f32.mrb[53].mxu1 }
 0x58b   : > { %v6798_v1 = vpop.f32.mrb[54].mxu1  ;;  %4724 = vmatmul.mubr.msk.bf16.vlgmr.msra.gmra.mrb[32].mxu0 %vm488_vm0, %v6687_v48 }
 0x58c   : > { %v6804_v2 = vpack.c.bf16 %v6798_v1, %v6794_v27  ;;  %v6806_v21 = vpop.f32.mrb[55].mxu1  ;;  %5124 = vmatpush3.bf16.msra.mxu1 %v5540_v16  ;;  %2991 = vmatprep.mubr.bf16.mxu0 %v7091_v0  ;;  %v5544_v16 = vld [vmem:[#allocation13 + $0x28] sm:$0xff]  }
 0x58d   : > { %v2588_v32 = vpack.c.bf16 %v6806_v21, %v6796_v5  ;;  %5125 = vmatprep.subr.bf16.mxu1 %v5541_v28 }
 0x58e   : > { %5109 = vmatprep.mubr.bf16.mxu1 %v6804_v2 }
 0x58f   : > { %5110 = vmatmul.mubr.bf16.gmra.mrb[68].mxu1 %v2588_v32  ;;  %2959 = vmatprep.subr.bf16.mxu0 %v2588_v32 }
 0x590   : > { %5126 = vmatpush3.bf16.msra.mxu1 %v5541_v28  ;;  %2960 = vmatpush1.bf16.msra.mxu0 %v6804_v2 }
 0x591   : > { %5127 = vmatprep.subr.bf16.mxu1 %v5542_v9 }
 0x592   : > { %v6813_v45 = vpop.f32.mrb[56].mxu1 }
 0x593   : > { %v6815_v47 = vpop.f32.mrb[57].mxu1  ;;  %4725 = vmatmul.mubr.msk.bf16.vlgmr.msra.gmra.mrb[36].mxu0 %vm488_vm0, %v6687_v48 }
 0x594   : > { %v6819_v34 = vpop.f32.mrb[58].mxu1  ;;  %5128 = vmatpush3.bf16.msra.mxu1 %v5542_v9  ;;  %3034 = vmatprep.mubr.bf16.mxu0 %v7091_v0  ;;  %v5545_v9 = vld [vmem:[#allocation13 + $0x30] sm:$0xff]  }
 0x595   : > { %v2589_v40 = vpack.c.bf16 %v6819_v34, %v6813_v45  ;;  %v6824_v41 = vpop.f32.mrb[59].mxu1  ;;  %5129 = vmatprep.subr.bf16.mxu1 %v5543_v44 }
 0x596   : > { %v2590_v46 = vpack.c.bf16 %v6824_v41, %v6815_v47 }
 0x597   : > { %5113 = vmatprep.mubr.bf16.mxu1 %v2589_v40 }
 0x598   : > { %5114 = vmatmul.mubr.bf16.gmra.mrb[72].mxu1 %v2590_v46  ;;  %3002 = vmatprep.subr.bf16.mxu0 %v2590_v46 }
 0x599   : > { %5130 = vmatpush3.bf16.msra.mxu1 %v5543_v44  ;;  %3003 = vmatpush1.bf16.msra.mxu0 %v2589_v40 }
 0x59a   : > { %v6828_v28 = vpop.f32.mrb[60].mxu1  ;;  %5131 = vmatprep.subr.bf16.mxu1 %v5544_v16 }
 0x59b   : > { %v6830_v0 = vpop.f32.mrb[61].mxu1 }
 0x59c   : > { %v6832_v25 = vpop.f32.mrb[62].mxu1  ;;  %4726 = vmatmul.mubr.msk.bf16.vlgmr.msra.gmra.mrb[40].mxu0 %vm488_vm0, %v6687_v48 }
 0x59d   : > { %v2591_v3 = vpack.c.bf16 %v6832_v25, %v6828_v28  ;;  %v6838_v63 = vpop.f32.mrb[63].mxu1  ;;  %5132 = vmatpush3.bf16.msra.mxu1 %v5544_v16  ;;  %3077 = vmatprep.mubr.bf16.mxu0 %v7136_v57  ;;  %v5548_v16 = vld [vmem:[#allocation13 + $0x88] sm:$0xff]  }
 0x59e   : > { %v2592_v44 = vpack.c.bf16 %v6838_v63, %v6830_v0  ;;  %5133 = vmatprep.subr.bf16.mxu1 %v5545_v9 }
 0x59f   : > { %5117 = vmatprep.mubr.bf16.mxu1 %v2591_v3 }
 0x5a0   : > { %5118 = vmatmul.mubr.bf16.gmra.mrb[76].mxu1 %v2592_v44  ;;  %3045 = vmatprep.subr.bf16.mxu0 %v2592_v44 }
 0x5a1   : > { %5134 = vmatpush3.bf16.msra.mxu1 %v5545_v9  ;;  %5137 = vmatprep.mubr.bf16.mxu1 %v6675_v33  ;;  %v5549_v33 = vld [vmem:[#allocation13 + $0x90] sm:$0xff]  }
 0x5a2   : > { %3046 = vmatpush1.bf16.msra.mxu0 %v2591_v3  ;;  %5135 = vmatprep.subr.bf16.mxu1 %v5546_v43 }
 0x5a3   : > { %3322 = vmatprep.subr.bf16.mxu0 %v2586_v62  ;;  %v6850_v62 = vld [vmem:[#allocation9 + $0x8] sm:$0xff]  }
 0x5a5   : > { %4727 = vmatmul.mubr.msk.bf16.vlgmr.msra.gmra.mrb[44].mxu0 %vm488_vm0, %v6687_v48  ;;  %5136 = vmatpush3.bf16.msra.mxu1 %v5546_v43  ;;  %v5550_v43 = vld [vmem:[#allocation13 + $0x98] sm:$0xff]   ;;  %v5552_v48 = vld [vmem:[#allocation13 + $0xa8] sm:$0xff]  }
 0x5a6   : > { %3323 = vmatpush1.bf16.msra.mxu0 %v6786_v54  ;;  %3354 = vmatprep.mubr.bf16.mxu0 %v7136_v57 }
 0x5a7   : > { %3365 = vmatprep.subr.bf16.mxu0 %v2588_v32  ;;  %5153 = vmatprep.subr.bf16.mxu1 %v5547_v49 }
 0x5a8   : > { %5138 = vmatmul.mubr.bf16.vlgmr.msra.gmra.mrb[64].mxu1 %v6666_v12  ;;  %v5551_v12 = vld [vmem:[#allocation13 + $0xa0] sm:$0xff]  }
 0x5a9   : > { %5141 = vmatprep.mubr.bf16.mxu1 %v6713_v61  ;;  %5154 = vmatpush3.bf16.msra.mxu1 %v5547_v49  ;;  %v5553_v49 = vld [vmem:[#allocation13 + $0xb0] sm:$0xff]   ;;  %v5555_v61 = vld [vmem:[#allocation13 + $0xc0] sm:$0xff]  }
 0x5aa   : > { %5155 = vmatprep.subr.bf16.mxu1 %v5548_v16 }
 0x5ad   : > { %4736 = vmatmul.mubr.msk.bf16.vlgmr.msra.gmra.mrb[48].mxu0 %vm488_vm0, %v6850_v62  ;;  %5156 = vmatpush3.bf16.msra.mxu1 %v5548_v16 }
 0x5ae   : > { %3366 = vmatpush1.bf16.msra.mxu0 %v6804_v2  ;;  %3397 = vmatprep.mubr.bf16.mxu0 %v7136_v57 }
 0x5af   : > { %3408 = vmatprep.subr.bf16.mxu0 %v2590_v46  ;;  %5157 = vmatprep.subr.bf16.mxu1 %v5549_v33 }
 0x5b0   : > { %5142 = vmatmul.mubr.bf16.gmra.mrb[68].mxu1 %v6704_v13  ;;  %v5554_v13 = vld [vmem:[#allocation13 + $0xb8] sm:$0xff]  }
 0x5b1   : > { %5145 = vmatprep.mubr.bf16.mxu1 %v6751_v14  ;;  %5158 = vmatpush3.bf16.msra.mxu1 %v5549_v33 }
 0x5b2   : > { %5159 = vmatprep.subr.bf16.mxu1 %v5550_v43 }
 0x5b5   : > { %4737 = vmatmul.mubr.msk.bf16.vlgmr.msra.gmra.mrb[52].mxu0 %vm488_vm0, %v6850_v62  ;;  %5160 = vmatpush3.bf16.msra.mxu1 %v5550_v43 }
 0x5b6   : > { %3409 = vmatpush1.bf16.msra.mxu0 %v2589_v40  ;;  %3440 = vmatprep.mubr.bf16.mxu0 %v7136_v57 }
 0x5b7   : > { %3451 = vmatprep.subr.bf16.mxu0 %v2592_v44  ;;  %5161 = vmatprep.subr.bf16.mxu1 %v5551_v12 }
 0x5b8   : > { %5146 = vmatmul.mubr.bf16.gmra.mrb[72].mxu1 %v6742_v6 }
 0x5b9   : > { %5149 = vmatprep.mubr.bf16.mxu1 %v6772_v11  ;;  %5162 = vmatpush3.bf16.msra.mxu1 %v5551_v12  ;;  %v5556_v12 = vld [vmem:[#allocation13 + $0xc8] sm:$0xff]  }
 0x5ba   : > { %5163 = vmatprep.subr.bf16.mxu1 %v5552_v48 }
 0x5bd   : > { %4738 = vmatmul.mubr.msk.bf16.vlgmr.msra.gmra.mrb[56].mxu0 %vm488_vm0, %v6850_v62  ;;  %5164 = vmatpush3.bf16.msra.mxu1 %v5552_v48 }
 0x5be   : > { %3452 = vmatpush1.bf16.msra.mxu0 %v2591_v3  ;;  %3483 = vmatprep.mubr.bf16.mxu0 %v7136_v57 }
 0x5bf   : > { %5165 = vmatprep.subr.bf16.mxu1 %v5553_v49 }
 0x5c0   : > { %5150 = vmatmul.mubr.bf16.gmra.mrb[76].mxu1 %v6764_v39 }
 0x5c1   : > { %5166 = vmatpush3.bf16.msra.mxu1 %v5553_v49 }
 0x5c2   : > { %5167 = vmatprep.subr.bf16.mxu1 %v5554_v13 }
 0x5c5   : > { %4739 = vmatmul.mubr.msk.bf16.vlgmr.msra.gmra.mrb[60].mxu0 %vm488_vm0, %v6850_v62  ;;  %5168 = vmatpush3.bf16.msra.mxu1 %v5554_v13 }
 0x5c6   : > { %3728 = vmatprep.mubr.bf16.mxu0 %v7136_v57  ;;  %5185 = vmatprep.subr.bf16.mxu1 %v5555_v61 }
 0x65e   : > { %v2950_v6 = vpop.f32.mrb[32].mxu0 }
 0x65f   : > { %v3088_v14 = vmul.f32 2.0, %v2950_v6  ;;  %v2952_v3 = vpop.f32.mrb[33].mxu0 }
 0x660   : > { %v3089_v11 = vmul.f32 2.0, %v2952_v3  ;;  %v2954_v54 = vpop.f32.mrb[34].mxu0 }
 0x661   : > { %v3096_v2 = vmul.f32 2.0, %v2954_v54  ;;  %v2956_v39 = vpop.f32.mrb[35].mxu0  ;;  %v3104_v40 = vsub.f32 %v3088_v14, %v6668_v42 }
 0x662   : > { %v3097_v32 = vmul.f32 2.0, %v2956_v39  ;;  %v3105_v9 = vsub.f32 %v3089_v11, %v6659_v23 }
 0x663   : > { %v3112_v46 = vsub.f32 %v3096_v2, %v6670_v8  ;;  %v5557_v8 = vld [vmem:[#allocation13 + $0xd0] sm:$0xff]  }
 0x664   : > { %v3113_v44 = vsub.f32 %v3097_v32, %v6661_v31  ;;  %v5558_v32 = vld [vmem:[#allocation13 + $0xd8] sm:$0xff]  }
 0x665   : > { %v3120_v16 = vpack.c.bf16 %v3112_v46, %v3104_v40 }
 0x666   : > { %v3121_v33 = vpack.c.bf16 %v3113_v44, %v3105_v9  ;;  %v2993_v43 = vpop.f32.mrb[36].mxu0 }
 0x667   : > { %v3090_v48 = vmul.f32 2.0, %v2993_v43  ;;  %v2995_v49 = vpop.f32.mrb[37].mxu0  ;;  %5169 = vmatprep.mubr.bf16.mxu1 %v3120_v16 }
 0x668   : > { %v3091_v13 = vmul.f32 2.0, %v2995_v49  ;;  %v2997_v6 = vpop.f32.mrb[38].mxu0  ;;  %5170 = vmatmul.mubr.bf16.vlgmr.msra.gmra.mrb[64].mxu1 %v3121_v33 }
 0x669   : > { %v3098_v3 = vmul.f32 2.0, %v2997_v6  ;;  %v2999_v54 = vpop.f32.mrb[39].mxu0  ;;  %5186 = vmatpush3.bf16.msra.mxu1 %v5555_v61  ;;  %v3106_v23 = vsub.f32 %v3090_v48, %v6706_v15 }
 0x66a   : > { %v3099_v42 = vmul.f32 2.0, %v2999_v54  ;;  %5187 = vmatprep.subr.bf16.mxu1 %v5556_v12  ;;  %v3107_v14 = vsub.f32 %v3091_v13, %v6695_v53  ;;  %v5560_v13 = vld [vmem:[#allocation13 + $0xe8] sm:$0xff]  }
 0x66b   : > { %v3114_v31 = vsub.f32 %v3098_v3, %v6708_v60  ;;  %v5559_v60 = vld [vmem:[#allocation13 + $0xe0] sm:$0xff]  }
 0x66c   : > { %v3115_v11 = vsub.f32 %v3099_v42, %v6697_v55 }
 0x66d   : > { %v3122_v2 = vpack.c.bf16 %v3114_v31, %v3106_v23  ;;  %5188 = vmatpush3.bf16.msra.mxu1 %v5556_v12 }
 0x66e   : > { %v3123_v39 = vpack.c.bf16 %v3115_v11, %v3107_v14  ;;  %5189 = vmatprep.subr.bf16.mxu1 %v5557_v8 }
 0x66f   : > { %v3036_v40 = vpop.f32.mrb[40].mxu0  ;;  %5173 = vmatprep.mubr.bf16.mxu1 %v3122_v2 }
 0x670   : > { %v3092_v46 = vmul.f32 2.0, %v3036_v40  ;;  %v3038_v61 = vpop.f32.mrb[41].mxu0  ;;  %5174 = vmatmul.mubr.bf16.gmra.mrb[68].mxu1 %v3123_v39  ;;  %v5562_v40 = vld [vmem:[#allocation13 + $0xf8] sm:$0xff]  }
 0x671   : > { %v3093_v9 = vmul.f32 2.0, %v3038_v61  ;;  %v3040_v44 = vpop.f32.mrb[42].mxu0  ;;  %5190 = vmatpush3.bf16.msra.mxu1 %v5557_v8 }
 0x672   : > { %v3100_v15 = vmul.f32 2.0, %v3040_v44  ;;  %v3042_v16 = vpop.f32.mrb[43].mxu0  ;;  %5191 = vmatprep.subr.bf16.mxu1 %v5558_v32  ;;  %v3108_v55 = vsub.f32 %v3092_v46, %v6744_v7 }
 0x673   : > { %v3101_v53 = vmul.f32 2.0, %v3042_v16  ;;  %v3109_v43 = vsub.f32 %v3093_v9, %v6735_v22 }
 0x674   : > { %v3116_v33 = vsub.f32 %v3100_v15, %v6746_v4  ;;  %v5561_v4 = vld [vmem:[#allocation13 + $0xf0] sm:$0xff]  }
 0x675   : > { %v3117_v12 = vsub.f32 %v3101_v53, %v6737_v20  ;;  %5192 = vmatpush3.bf16.msra.mxu1 %v5558_v32 }
 0x676   : > { %v3124_v48 = vpack.c.bf16 %v3116_v33, %v3108_v55  ;;  %5193 = vmatprep.subr.bf16.mxu1 %v5559_v60  ;;  %v5565_v33 = vld [vmem:[#allocation13 + $0x110] sm:$0xff]  }
 0x677   : > { %v3125_v49 = vpack.c.bf16 %v3117_v12, %v3109_v43  ;;  %v5566_v12 = vld [vmem:[#allocation13 + $0x118] sm:$0xff]  }
 0x678   : > { %v3079_v6 = vpop.f32.mrb[44].mxu0  ;;  %5177 = vmatprep.mubr.bf16.mxu1 %v3124_v48 }
 0x679   : > { %v3094_v3 = vmul.f32 2.0, %v3079_v6  ;;  %v3081_v54 = vpop.f32.mrb[45].mxu0  ;;  %5178 = vmatmul.mubr.bf16.gmra.mrb[72].mxu1 %v3125_v49 }
 0x67a   : > { %v3095_v42 = vmul.f32 2.0, %v3081_v54  ;;  %v3083_v8 = vpop.f32.mrb[46].mxu0  ;;  %5194 = vmatpush3.bf16.msra.mxu1 %v5559_v60  ;;  %v5567_v54 = vld [vmem:[#allocation13 + $0x120] sm:$0xff]  }
 0x67b   : > { %v3102_v7 = vmul.f32 2.0, %v3083_v8  ;;  %v3085_v23 = vpop.f32.mrb[47].mxu0  ;;  %5195 = vmatprep.subr.bf16.mxu1 %v5560_v13  ;;  %v3110_v20 = vsub.f32 %v3094_v3, %v6766_v18  ;;  %v5568_v8 = vld [vmem:[#allocation13 + $0x128] sm:$0xff]  }
 0x67c   : > { %v3103_v22 = vmul.f32 2.0, %v3085_v23  ;;  %v3111_v14 = vsub.f32 %v3095_v42, %v6757_v10 }
 0x67d   : > { %v3118_v31 = vsub.f32 %v3102_v7, %v6768_v26  ;;  %v5563_v26 = vld [vmem:[#allocation13 + $0x100] sm:$0xff]  }
 0x67e   : > { %v3119_v11 = vsub.f32 %v3103_v22, %v6759_v37  ;;  %5196 = vmatpush3.bf16.msra.mxu1 %v5560_v13  ;;  %v5564_v37 = vld [vmem:[#allocation13 + $0x108] sm:$0xff]  }
 0x67f   : > { %v3126_v2 = vpack.c.bf16 %v3118_v31, %v3110_v20  ;;  %5197 = vmatprep.subr.bf16.mxu1 %v5561_v4  ;;  %v5569_v31 = vld [vmem:[#allocation13 + $0x130] sm:$0xff]  }
 0x680   : > { %v3356_v39 = vpop.f32.mrb[48].mxu0  ;;  %v3127_v32 = vpack.c.bf16 %v3119_v11, %v3111_v14  ;;  %v5570_v14 = vld [vmem:[#allocation13 + $0x138] sm:$0xff]  }
 0x681   : > { %5181 = vmatprep.mubr.bf16.mxu1 %v3126_v2  ;;  %v3358_v46 = vpop.f32.mrb[49].mxu0 }
 0x682   : > { %5182 = vmatmul.mubr.bf16.gmra.mrb[76].mxu1 %v3127_v32  ;;  %v3360_v61 = vpop.f32.mrb[50].mxu0 }
 0x683   : > { %v3494_v9 = vpack.c.bf16 %v3360_v61, %v3356_v39  ;;  %v3362_v44 = vpop.f32.mrb[51].mxu0  ;;  %5198 = vmatpush3.bf16.msra.mxu1 %v5561_v4 }
 0x684   : > { %v3495_v18 = vpack.c.bf16 %v3362_v44, %v3358_v46  ;;  %5199 = vmatprep.subr.bf16.mxu1 %v5562_v40 }
 0x685   : > { %5201 = vmatprep.mubr.bf16.mxu1 %v3494_v9 }
 0x686   : > { %3696 = vmatprep.subr.bf16.mxu0 %v3495_v18 }
 0x687   : > { %3697 = vmatpush1.bf16.msra.mxu0 %v3494_v9  ;;  %5200 = vmatpush3.bf16.msra.mxu1 %v5562_v40 }
 0x688   : > { %v3399_v10 = vpop.f32.mrb[52].mxu0  ;;  %5217 = vmatprep.subr.bf16.mxu1 %v5563_v26 }
 0x689   : > { %v3401_v15 = vpop.f32.mrb[53].mxu0 }
 0x68a   : > { %v3403_v16 = vpop.f32.mrb[54].mxu0  ;;  %4748 = vmatmul.mubr.msk.bf16.vlgmr.msra.gmra.mrb[64].mxu0 %vm488_vm0, %v6850_v62  ;;  %5202 = vmatmul.mubr.bf16.vlgmr.msra.gmra.mrb[64].mxu1 %v3495_v18 }
 0x68b   : > { %v3496_v60 = vpack.c.bf16 %v3403_v16, %v3399_v10  ;;  %v3405_v53 = vpop.f32.mrb[55].mxu0  ;;  %3771 = vmatprep.mubr.bf16.mxu0 %v7136_v57  ;;  %5218 = vmatpush3.bf16.msra.mxu1 %v5563_v26 }
 0x68c   : > { %v3497_v55 = vpack.c.bf16 %v3405_v53, %v3401_v15  ;;  %5219 = vmatprep.subr.bf16.mxu1 %v5564_v37 }
 0x68d   : > { %5205 = vmatprep.mubr.bf16.mxu1 %v3496_v60 }
 0x68e   : > { %3739 = vmatprep.subr.bf16.mxu0 %v3497_v55 }
 0x68f   : > { %3740 = vmatpush1.bf16.msra.mxu0 %v3496_v60  ;;  %5220 = vmatpush3.bf16.msra.mxu1 %v5564_v37 }
 0x690   : > { %v3442_v43 = vpop.f32.mrb[56].mxu0  ;;  %5221 = vmatprep.subr.bf16.mxu1 %v5565_v33 }
 0x691   : > { %v3444_v48 = vpop.f32.mrb[57].mxu0 }
 0x692   : > { %v3446_v49 = vpop.f32.mrb[58].mxu0  ;;  %4749 = vmatmul.mubr.msk.bf16.vlgmr.msra.gmra.mrb[68].mxu0 %vm488_vm0, %v6850_v62  ;;  %5206 = vmatmul.mubr.bf16.gmra.mrb[68].mxu1 %v3497_v55 }
 0x693   : > { %v3498_v13 = vpack.c.bf16 %v3446_v49, %v3442_v43  ;;  %v3448_v6 = vpop.f32.mrb[59].mxu0  ;;  %3814 = vmatprep.mubr.bf16.mxu0 %v7136_v57  ;;  %5222 = vmatpush3.bf16.msra.mxu1 %v5565_v33 }
 0x694   : > { %v3499_v3 = vpack.c.bf16 %v3448_v6, %v3444_v48  ;;  %5223 = vmatprep.subr.bf16.mxu1 %v5566_v12 }
 0x695   : > { %5209 = vmatprep.mubr.bf16.mxu1 %v3498_v13 }
 0x696   : > { %3782 = vmatprep.subr.bf16.mxu0 %v3499_v3 }
 0x697   : > { %3783 = vmatpush1.bf16.msra.mxu0 %v3498_v13  ;;  %5224 = vmatpush3.bf16.msra.mxu1 %v5566_v12 }
 0x698   : > { %v3485_v42 = vpop.f32.mrb[60].mxu0  ;;  %5225 = vmatprep.subr.bf16.mxu1 %v5567_v54 }
 0x699   : > { %v3487_v7 = vpop.f32.mrb[61].mxu0 }
 0x69a   : > { %v3489_v23 = vpop.f32.mrb[62].mxu0  ;;  %4750 = vmatmul.mubr.msk.bf16.vlgmr.msra.gmra.mrb[72].mxu0 %vm488_vm0, %v6850_v62  ;;  %5210 = vmatmul.mubr.bf16.gmra.mrb[72].mxu1 %v3499_v3 }
 0x69b   : > { %v3500_v4 = vpack.c.bf16 %v3489_v23, %v3485_v42  ;;  %v3491_v22 = vpop.f32.mrb[63].mxu0  ;;  %3857 = vmatprep.mubr.bf16.mxu0 %v7136_v57  ;;  %5226 = vmatpush3.bf16.msra.mxu1 %v5567_v54 }
 0x69c   : > { %v3501_v20 = vpack.c.bf16 %v3491_v22, %v3487_v7  ;;  %5227 = vmatprep.subr.bf16.mxu1 %v5568_v8 }
 0x69d   : > { %5213 = vmatprep.mubr.bf16.mxu1 %v3500_v4 }
 0x69e   : > { %3825 = vmatprep.subr.bf16.mxu0 %v3501_v20 }
 0x69f   : > { %3826 = vmatpush1.bf16.msra.mxu0 %v3500_v4  ;;  %5228 = vmatpush3.bf16.msra.mxu1 %v5568_v8 }
 0x6a0   : > { %5229 = vmatprep.subr.bf16.mxu1 %v5569_v31 }
 0x6a2   : > { %4751 = vmatmul.mubr.msk.bf16.vlgmr.msra.gmra.mrb[76].mxu0 %vm488_vm0, %v6850_v62  ;;  %5214 = vmatmul.mubr.bf16.gmra.mrb[76].mxu1 %v3501_v20 }
 0x6a3   : > { %5230 = vmatpush3.bf16.msra.mxu1 %v5569_v31 }
 0x6a4   : > { %5231 = vmatprep.subr.bf16.mxu1 %v5570_v14 }
 0x6a7   : > { %5232 = vmatpush3.bf16.msra.mxu1 %v5570_v14 }
 0x75d   : > { %v3730_v11 = vpop.f32.mrb[64].mxu0 }
 0x75e   : > { %v3868_v2 = vmul.f32 2.0, %v3730_v11  ;;  %v3732_v57 = vpop.f32.mrb[65].mxu0 }
 0x75f   : > { %v3869_v39 = vmul.f32 2.0, %v3732_v57  ;;  %v3734_v32 = vpop.f32.mrb[66].mxu0 }
 0x760   : > { %v3884_v40 = vsub.f32 %v3868_v2, %v6778_v50  ;;  %v3876_v46 = vmul.f32 2.0, %v3734_v32  ;;  %v3736_v61 = vpop.f32.mrb[67].mxu0 }
 0x761   : > { %v3885_v9 = vsub.f32 %v3869_v39, %v6780_v52  ;;  %v3877_v44 = vmul.f32 2.0, %v3736_v61 }
 0x762   : > { %v3892_v62 = vsub.f32 %v3876_v46, %v6782_v30  ;;  %v6913_v46 = vld [vmem:[#allocation15] ss:$0 sm:$0xff] }
 0x763   : > { %v3893_v18 = vsub.f32 %v3877_v44, %v6788_v17 }
 0x764   : > { %v3900_v26 = vpack.c.bf16 %v3892_v62, %v3884_v40 }
 0x765   : > { %v3901_v10 = vpack.c.bf16 %v3893_v18, %v3885_v9  ;;  %v3773_v37 = vpop.f32.mrb[68].mxu0 }
 0x766   : > { %v3870_v15 = vmul.f32 2.0, %v3773_v37  ;;  %v3775_v16 = vpop.f32.mrb[69].mxu0  ;;  %5233 = vmatprep.mubr.bf16.mxu1 %v3900_v26 }
 0x767   : > { %v3871_v60 = vmul.f32 2.0, %v3775_v16  ;;  %v3777_v53 = vpop.f32.mrb[70].mxu0  ;;  %5234 = vmatmul.mubr.bf16.vlgmr.msra.gmra.mrb[64].mxu1 %v3901_v10 }
 0x768   : > { %v3886_v50 = vsub.f32 %v3870_v15, %v6794_v27  ;;  %v3878_v55 = vmul.f32 2.0, %v3777_v53  ;;  %v3779_v33 = vpop.f32.mrb[71].mxu0 }
 0x769   : > { %v3887_v52 = vsub.f32 %v3871_v60, %v6796_v5  ;;  %v3879_v43 = vmul.f32 2.0, %v3779_v33 }
 0x76a   : > { %v3894_v30 = vsub.f32 %v3878_v55, %v6798_v1  ;;  %v435_v55 = vld [vmem:[%s6321_s19 + $0x40] sm:$0xff] }
 0x76b   : > { %v3895_v17 = vsub.f32 %v3879_v43, %v6806_v21 }
 0x76c   : > { %v3902_v12 = vpack.c.bf16 %v3894_v30, %v3886_v50 }
 0x76d   : > { %v3816_v48 = vpop.f32.mrb[72].mxu0  ;;  %v3903_v49 = vpack.c.bf16 %v3895_v17, %v3887_v52 }
 0x76e   : > { %v3872_v13 = vmul.f32 2.0, %v3816_v48  ;;  %v3818_v6 = vpop.f32.mrb[73].mxu0  ;;  %5237 = vmatprep.mubr.bf16.mxu1 %v3902_v12  ;;  %v436_v12 = vld [vmem:[%s6321_s19 + $0x48] sm:$0xff] }
 0x76f   : > { %v3873_v3 = vmul.f32 2.0, %v3818_v6  ;;  %v3820_v54 = vpop.f32.mrb[74].mxu0  ;;  %5238 = vmatmul.mubr.bf16.gmra.mrb[68].mxu1 %v3903_v49  ;;  %v437_v6 = vld [vmem:[%s6321_s19 + $0x50] sm:$0xff] }
 0x770   : > { %v3888_v27 = vsub.f32 %v3872_v13, %v6813_v45  ;;  %v3880_v42 = vmul.f32 2.0, %v3820_v54  ;;  %v3822_v8 = vpop.f32.mrb[75].mxu0 }
 0x771   : > { %v3889_v5 = vsub.f32 %v3873_v3, %v6815_v47  ;;  %v3881_v7 = vmul.f32 2.0, %v3822_v8 }
 0x772   : > { %v3896_v1 = vsub.f32 %v3880_v42, %v6819_v34 }
 0x773   : > { %v3897_v21 = vsub.f32 %v3881_v7, %v6824_v41 }
 0x774   : > { %v3904_v23 = vpack.c.bf16 %v3896_v1, %v3888_v27 }
 0x775   : > { %v3859_v4 = vpop.f32.mrb[76].mxu0  ;;  %v3905_v22 = vpack.c.bf16 %v3897_v21, %v3889_v5  ;;  %v438_v5 = vld [vmem:[%s6321_s19 + $0x58] sm:$0xff]  ;;  %v439_v21 = vld [vmem:[%s6321_s19 + $0x60] sm:$0xff] }
 0x776   : > { %v3874_v20 = vmul.f32 2.0, %v3859_v4  ;;  %v3861_v31 = vpop.f32.mrb[77].mxu0  ;;  %5241 = vmatprep.mubr.bf16.mxu1 %v3904_v23 }
 0x777   : > { %v3875_v14 = vmul.f32 2.0, %v3861_v31  ;;  %v3863_v11 = vpop.f32.mrb[78].mxu0  ;;  %5242 = vmatmul.mubr.bf16.gmra.mrb[72].mxu1 %v3905_v22  ;;  %v440_v22 = vld [vmem:[%s6321_s19 + $0x68] sm:$0xff] }
 0x778   : > { %v3890_v45 = vsub.f32 %v3874_v20, %v6828_v28  ;;  %v3882_v2 = vmul.f32 2.0, %v3863_v11  ;;  %v3865_v57 = vpop.f32.mrb[79].mxu0 }
 0x779   : > { %v3891_v47 = vsub.f32 %v3875_v14, %v6830_v0  ;;  %v3883_v39 = vmul.f32 2.0, %v3865_v57  ;;  %v441_v14 = vld [vmem:[%s6321_s19 + $0x70] sm:$0xff] }
 0x77a   : > { %v3898_v34 = vsub.f32 %v3882_v2, %v6832_v25  ;;  %v442_v2 = vld [vmem:[%s6321_s19 + $0x78] sm:$0xff] }
 0x77b   : > { %v3899_v41 = vsub.f32 %v3883_v39, %v6838_v63 }
 0x77c   : > { %v3906_v32 = vpack.c.bf16 %v3898_v34, %v3890_v45 }
 0x77d   : > { %v3907_v40 = vpack.c.bf16 %v3899_v41, %v3891_v47 }
 0x77e   : > { %5245 = vmatprep.mubr.bf16.mxu1 %v3906_v32 }
 0x77f   : > { %5246 = vmatmul.mubr.bf16.gmra.mrb[76].mxu1 %v3907_v40 }
 0x83a   : > { %v5235_v61 = vpop.f32.mrb[64].mxu1 }
 0x83b   : > { %v4111_v9 = vadd.f32 %v5235_v61, %v6913_v46  ;;  %v4023_v44 = vpop.f32.mrb[65].mxu1 }
 0x83c   : > { %v4109_v28 = vadd.f32 %v6913_v46, %v4023_v44  ;;  %v5236_v62 = vpop.f32.mrb[66].mxu1 }
 0x83d   : > { %5635 = vtanh.f32 %v4111_v9  ;;  %v4112_v0 = vadd.f32 %v5236_v62, %v6913_v46  ;;  %v4026_v18 = vpop.f32.mrb[67].mxu1 }
 0x83e   : > { %5637 = vtanh.f32 %v4109_v28  ;;  %v4110_v63 = vadd.f32 %v6913_v46, %v4026_v18  ;;  %v4158_v28 = vpop.permute.xlu0 %4157 }
 0x83f   : > { %5639 = vtanh.f32 %v4112_v0 }
 0x840   : > { %5641 = vtanh.f32 %v4110_v63 }
 0x842   : > { %v5239_v25 = vpop.f32.mrb[68].mxu1  ;;  %v4162_v62 = vpop.permute.xlu0 %4161 }
 0x843   : > { %v4039_v26 = vpop.f32.mrb[69].mxu1  ;;  %v4115_v37 = vadd.f32 %v5239_v25, %v6913_v46  ;;  %v4160_v25 = vpop.permute.xlu1 %4159 }
 0x844   : > { %v5240_v10 = vpop.f32.mrb[70].mxu1  ;;  %v4113_v53 = vadd.f32 %v6913_v46, %v4039_v26 }
 0x845   : > { %v4042_v15 = vpop.f32.mrb[71].mxu1  ;;  %5643 = vtanh.f32 %v4115_v37  ;;  %v4116_v30 = vadd.f32 %v5240_v10, %v6913_v46  ;;  %v4223_v10 = vsub.f32 1.0, %v6628_v51 }
 0x846   : > { %5645 = vtanh.f32 %v4113_v53  ;;  %v4114_v49 = vadd.f32 %v6913_v46, %v4042_v15  ;;  %v4164_v0 = vpop.permute.xlu0 %4163  ;;  %v4207_v15 = vmul.f32 %v6628_v51, %v4162_v62  ;;  %v4224_v51 = vsub.f32 1.0, %v6634_v56 }
 0x847   : > { %v5636_v16 = vpop.eup %5635  ;;  %5647 = vtanh.f32 %v4116_v30 }
 0x848   : > { %v5638_v60 = vpop.eup %5637  ;;  %4257 = vrot.lane.b32.xlu1 %v5636_v16, %s5982_s14  ;;  %5649 = vtanh.f32 %v4114_v49 }
 0x849   : > { %4253 = vrot.lane.b32.xlu0 %v5638_v60, %s5982_s14  ;;  %v5640_v33 = vpop.eup %5639  ;;  %v4221_v60 = vsub.f32 1.0, %v6631_v58 }
 0x84a   : > { %v5243_v50 = vpop.f32.mrb[72].mxu1  ;;  %v5642_v48 = vpop.eup %5641 }
 0x84b   : > { %v4055_v52 = vpop.f32.mrb[73].mxu1  ;;  %v4119_v42 = vadd.f32 %v5243_v50, %v6913_v46  ;;  %v4166_v18 = vpop.permute.xlu0 %4165 }
 0x84c   : > { %4259 = vrot.lane.b32.xlu1 %v5640_v33, %s5982_s14  ;;  %v5244_v43 = vpop.f32.mrb[74].mxu1  ;;  %v4117_v1 = vadd.f32 %v6913_v46, %v4055_v52  ;;  %v4205_v52 = vmul.f32 %v6631_v58, %v4158_v28 }
 0x84d   : > { %4173 = vrot.lane.b32.xlu0 %v435_v55, %s5982_s14  ;;  %v4058_v17 = vpop.f32.mrb[75].mxu1  ;;  %5651 = vtanh.f32 %v4119_v42  ;;  %v4120_v4 = vadd.f32 %v5244_v43, %v6913_v46 }
 0x84e   : > { %5653 = vtanh.f32 %v4117_v1  ;;  %v4118_v31 = vadd.f32 %v6913_v46, %v4058_v17  ;;  %v4222_v17 = vsub.f32 1.0, %v6637_v59 }
 0x84f   : > { %v5644_v3 = vpop.eup %5643  ;;  %5655 = vtanh.f32 %v4120_v4  ;;  %v4168_v63 = vpop.permute.xlu0 %4167 }
 0x850   : > { %4255 = vrot.lane.b32.xlu1 %v5642_v48, %s5982_s14  ;;  %v5646_v7 = vpop.eup %5645  ;;  %5657 = vtanh.f32 %v4118_v31  ;;  %v4206_v48 = vmul.f32 %v6637_v59, %v4160_v25  ;;  %v7138_v25 = vld [vmem:[#allocation23_spill] sm:$0xff] }
 0x851   : > { %4175 = vrot.lane.b32.xlu0 %v436_v12, %s5982_s14  ;;  %v5648_v23 = vpop.eup %5647 }
 0x852   : > { %v5247_v13 = vpop.f32.mrb[76].mxu1  ;;  %v5650_v20 = vpop.eup %5649 }
 0x853   : > { %v4071_v54 = vpop.f32.mrb[77].mxu1  ;;  %v4123_v45 = vadd.f32 %v5247_v13, %v6913_v46 }
 0x854   : > { %4265 = vrot.lane.b32.xlu1 %v5644_v3, %s5982_s14  ;;  %v5248_v27 = vpop.f32.mrb[78].mxu1  ;;  %v4121_v47 = vadd.f32 %v6913_v46, %v4071_v54  ;;  %v4227_v3 = vsub.f32 1.0, %v6645_v19 }
 0x855   : > { %4177 = vrot.lane.b32.xlu0 %v437_v6, %s5982_s14  ;;  %v4074_v8 = vpop.f32.mrb[79].mxu1  ;;  %5659 = vtanh.f32 %v4123_v45  ;;  %v4124_v32 = vadd.f32 %v5248_v27, %v6913_v46  ;;  %v4208_v27 = vmul.f32 %v6634_v56, %v4164_v0 }
 0x856   : > { %5661 = vtanh.f32 %v4121_v47  ;;  %v4122_v34 = vadd.f32 %v6913_v46, %v4074_v8  ;;  %v4170_v46 = vpop.permute.xlu0 %4169 }
 0x857   : > { %v5652_v11 = vpop.eup %5651  ;;  %v4211_v42 = vmul.f32 %v6645_v19, %v4170_v46  ;;  %v4226_v19 = vsub.f32 1.0, %v6653_v36 }
 0x858   : > { %4261 = vrot.lane.b32.xlu1 %v5646_v7, %s5982_s14  ;;  %v5654_v57 = vpop.eup %5653  ;;  %5663 = vtanh.f32 %v4122_v34  ;;  %v4225_v7 = vsub.f32 1.0, %v6647_v29 }
 0x859   : > { %4179 = vrot.lane.b32.xlu0 %v438_v5, %s5982_s14  ;;  %v5656_v39 = vpop.eup %5655  ;;  %5665 = vtanh.f32 %v4124_v32 }
 0x85a   : > { %v5658_v41 = vpop.eup %5657  ;;  %v4172_v26 = vpop.permute.xlu0 %4171 }
 0x85c   : > { %4267 = vrot.lane.b32.xlu1 %v5648_v23, %s5982_s14 }
 0x85d   : > { %4181 = vrot.lane.b32.xlu0 %v439_v21, %s5982_s14  ;;  %v4209_v21 = vmul.f32 %v6647_v29, %v4166_v18 }
 0x85f   : > { %v5660_v40 = vpop.eup %5659 }
 0x860   : > { %4263 = vrot.lane.b32.xlu1 %v5650_v20, %s5982_s14  ;;  %v5662_v61 = vpop.eup %5661 }
 0x861   : > { %4183 = vrot.lane.b32.xlu0 %v440_v22, %s5982_s14 }
 0x862   : > { %v5664_v9 = vpop.eup %5663 }
 0x863   : > { %v5666_v44 = vpop.eup %5665 }
 0x864   : > { %4273 = vrot.lane.b32.xlu1 %v5652_v11, %s5982_s14  ;;  %v4228_v11 = vsub.f32 1.0, %v6650_v35 }
 0x865   : > { %4185 = vrot.lane.b32.xlu0 %v441_v14, %s5982_s14  ;;  %v4210_v14 = vmul.f32 %v6653_v36, %v4168_v63  ;;  %v4229_v36 = vsub.f32 1.0, %v6681_v24 }
 0x868   : > { %4269 = vrot.lane.b32.xlu1 %v5654_v57, %s5982_s14  ;;  %v4231_v57 = vsub.f32 1.0, %v6679_v38 }
 0x869   : > { %4187 = vrot.lane.b32.xlu0 %v442_v2, %s5982_s14 }
 0x86c   : > { %4275 = vrot.lane.b32.xlu1 %v5656_v39, %s5982_s14  ;;  %v4212_v39 = vmul.f32 %v6650_v35, %v4172_v26  ;;  %v4232_v26 = vsub.f32 1.0, %v7138_v25 }
 0x870   : > { %4271 = vrot.lane.b32.xlu1 %v5658_v41, %s5982_s14 }
 0x874   : > { %4281 = vrot.lane.b32.xlu1 %v5660_v40, %s5982_s14 }
 0x878   : > { %4277 = vrot.lane.b32.xlu1 %v5662_v61, %s5982_s14 }
 0x87c   : > { %4279 = vrot.lane.b32.xlu1 %v5664_v9, %s5982_s14 }
 0x880   : > { %4283 = vrot.lane.b32.xlu1 %v5666_v44, %s5982_s14 }
 0x8ba   : > { %v4258_v37 = vpop.permute.xlu1 %4257 }
 0x8bb   : > { %v4303_v16 = vmul.f32 %v4258_v37, %v4223_v10  ;;  %v4254_v53 = vpop.permute.xlu0 %4253 }
 0x8bc   : > { %v4301_v55 = vmul.f32 %v4254_v53, %v4221_v60 }
 0x8bd   : > { %v4319_v50 = vadd.f32 %v4303_v16, %v4207_v15  ;;  %v7139_v16 = vld [vmem:[#allocation25_spill] sm:$0xff] }
 0x8be   : > { %v4260_v33 = vpop.permute.xlu1 %4259  ;;  %v4317_v30 = vadd.f32 %v4301_v55, %v4205_v52  ;;  %v4235_v60 = vsub.f32 1.0, %v7139_v16 }
 0x8bf   : > { %4353 = vrot.lane.b32.xlu0 %v4319_v50, %s5983_s16  ;;  %v4174_v43 = vpop.permute.xlu0 %4173  ;;  %v4304_v13 = vmul.f32 %v4260_v33, %v4224_v51 }
 0x8c0   : > { %v4213_v44 = vmul.f32 %v6681_v24, %v4174_v43 }
 0x8c1   : > { %v4320_v5 = vadd.f32 %v4304_v13, %v4208_v27  ;;  %v7141_v13 = vld [vmem:[#allocation28_spill] sm:$0xff] }
 0x8c2   : > { %v4256_v12 = vpop.permute.xlu1 %4255 }
 0x8c3   : > { %v4302_v49 = vmul.f32 %v4256_v12, %v4222_v17  ;;  %4349 = vrot.lane.b32.xlu0 %v4317_v30, %s5983_s16  ;;  %v4176_v58 = vpop.permute.xlu0 %4175  ;;  %v7140_v30 = vld [vmem:[#allocation26_spill] sm:$0xff] }
 0x8c4   : > { %v4233_v17 = vsub.f32 1.0, %v7140_v30 }
 0x8c5   : > { %v4318_v6 = vadd.f32 %v4302_v49, %v4206_v48 }
 0x8c6   : > { %v4266_v54 = vpop.permute.xlu1 %4265 }
 0x8c7   : > { %v4307_v8 = vmul.f32 %v4266_v54, %v4227_v3  ;;  %4351 = vrot.lane.b32.xlu1 %v4318_v6, %s5983_s16  ;;  %v4178_v4 = vpop.permute.xlu0 %4177  ;;  %v4234_v6 = vsub.f32 1.0, %v7141_v13 }
 0x8c8   : > { %v4215_v34 = vmul.f32 %v6679_v38, %v4178_v4  ;;  %v7137_v38 = vld [vmem:[#allocation24_spill] sm:$0xff] }
 0x8c9   : > { %v4323_v59 = vadd.f32 %v4307_v8, %v4211_v42  ;;  %v4230_v18 = vsub.f32 1.0, %v7137_v38  ;;  %v4214_v46 = vmul.f32 %v7137_v38, %v4176_v58  ;;  %v7142_v8 = vld [vmem:[#allocation27_spill] sm:$0xff] }
 0x8ca   : > { %v4262_v1 = vpop.permute.xlu1 %4261 }
 0x8cb   : > { %v4305_v23 = vmul.f32 %v4262_v1, %v4225_v7  ;;  %4361 = vrot.lane.b32.xlu0 %v4323_v59, %s5983_s16  ;;  %4355 = vrot.lane.b32.xlu1 %v4320_v5, %s5983_s16  ;;  %v4180_v20 = vpop.permute.xlu0 %4179  ;;  %v4236_v5 = vsub.f32 1.0, %v7142_v8 }
 0x8cc   : > { %v4216_v50 = vmul.f32 %v7138_v25, %v4180_v20 }
 0x8cd   : > { %v4321_v22 = vadd.f32 %v4305_v23, %v4209_v21 }
 0x8ce   : > { %v4268_v56 = vpop.permute.xlu1 %4267 }
 0x8cf   : > { %4357 = vrot.lane.b32.xlu0 %v4321_v22, %s5983_s16  ;;  %v4308_v29 = vmul.f32 %v4268_v56, %v4228_v11  ;;  %v4182_v32 = vpop.permute.xlu0 %4181 }
 0x8d0   : > { %v4217_v48 = vmul.f32 %v7140_v30, %v4182_v32 }
 0x8d1   : > { %v4324_v40 = vadd.f32 %v4308_v29, %v4212_v39 }
 0x8d2   : > { %v4264_v31 = vpop.permute.xlu1 %4263 }
 0x8d3   : > { %v4306_v45 = vmul.f32 %v4264_v31, %v4226_v19  ;;  %v4184_v35 = vpop.permute.xlu0 %4183 }
 0x8d4   : > { %v4218_v58 = vmul.f32 %v7141_v13, %v4184_v35 }
 0x8d5   : > { %v4322_v2 = vadd.f32 %v4306_v45, %v4210_v14 }
 0x8d6   : > { %v4274_v47 = vpop.permute.xlu1 %4273 }
 0x8d7   : > { %v4311_v41 = vmul.f32 %v4274_v47, %v4231_v57  ;;  %4359 = vrot.lane.b32.xlu1 %v4322_v2, %s5983_s16  ;;  %v4186_v37 = vpop.permute.xlu0 %4185 }
 0x8d8   : > { %v4219_v55 = vmul.f32 %v7139_v16, %v4186_v37 }
 0x8d9   : > { %v4327_v61 = vadd.f32 %v4311_v41, %v4215_v34 }
 0x8da   : > { %v4270_v9 = vpop.permute.xlu1 %4269 }
 0x8db   : > { %v4309_v28 = vmul.f32 %v4270_v9, %v4229_v36  ;;  %4369 = vrot.lane.b32.xlu0 %v4327_v61, %s5983_s16  ;;  %4363 = vrot.lane.b32.xlu1 %v4324_v40, %s5983_s16  ;;  %v4188_v27 = vpop.permute.xlu0 %4187 }
 0x8dc   : > { %v4220_v7 = vmul.f32 %v7142_v8, %v4188_v27 }
 0x8dd   : > { %v4325_v62 = vadd.f32 %v4309_v28, %v4213_v44 }
 0x8de   : > { %v4276_v0 = vpop.permute.xlu1 %4275 }
 0x8df   : > { %4365 = vrot.lane.b32.xlu0 %v4325_v62, %s5983_s16  ;;  %v4312_v24 = vmul.f32 %v4276_v0, %v4232_v26 }
 0x8e1   : > { %v4328_v52 = vadd.f32 %v4312_v24, %v4216_v50 }
 0x8e2   : > { %v4272_v63 = vpop.permute.xlu1 %4271 }
 0x8e3   : > { %v4310_v10 = vmul.f32 %v4272_v63, %v4230_v18 }
 0x8e5   : > { %v4326_v15 = vadd.f32 %v4310_v10, %v4214_v46 }
 0x8e6   : > { %v4282_v53 = vpop.permute.xlu1 %4281 }
 0x8e7   : > { %v4315_v33 = vmul.f32 %v4282_v53, %v4235_v60  ;;  %4367 = vrot.lane.b32.xlu1 %v4326_v15, %s5983_s16 }
 0x8e9   : > { %v4331_v43 = vadd.f32 %v4315_v33, %v4219_v55 }
 0x8ea   : > { %v4278_v12 = vpop.permute.xlu1 %4277 }
 0x8eb   : > { %v4313_v51 = vmul.f32 %v4278_v12, %v4233_v17  ;;  %4377 = vrot.lane.b32.xlu0 %v4331_v43, %s5983_s16  ;;  %4371 = vrot.lane.b32.xlu1 %v4328_v52, %s5983_s16 }
 0x8ed   : > { %v4329_v49 = vadd.f32 %v4313_v51, %v4217_v48 }
 0x8ee   : > { %v4280_v3 = vpop.permute.xlu1 %4279 }
 0x8ef   : > { %v4314_v54 = vmul.f32 %v4280_v3, %v4234_v6  ;;  %4373 = vrot.lane.b32.xlu0 %v4329_v49, %s5983_s16 }
 0x8f1   : > { %v4330_v42 = vadd.f32 %v4314_v54, %v4218_v58 }
 0x8f2   : > { %v4284_v59 = vpop.permute.xlu1 %4283 }
 0x8f3   : > { %v4316_v1 = vmul.f32 %v4284_v59, %v4236_v5  ;;  %4375 = vrot.lane.b32.xlu1 %v4330_v42, %s5983_s16 }
 0x8f5   : > { %v4332_v21 = vadd.f32 %v4316_v1, %v4220_v7 }
 0x8f7   : > { %4379 = vrot.lane.b32.xlu1 %v4332_v21, %s5983_s16 }
 0x931   : > { %v4354_v23 = vpop.permute.xlu0 %4353 }
 0x932   : > { %v4399_v31 = vsel %vm2326_vm1, %v4354_v23, 0.0 }
 0x935   : > { %v4350_v4 = vpop.permute.xlu0 %4349 }
 0x936   : > { %v4397_v22 = vsel %vm2326_vm1, %v4350_v4, 0.0 }
 0x937   : > { %4413 = vxpose.xlu0.b32.start [1/16] (narrow) %v4397_v22, 32 }
 0x939   : > { %v4352_v56 = vpop.permute.xlu1 %4351 }
 0x93a   : > { %v4398_v19 = vsel %vm2326_vm1, %v4352_v56, 0.0 }
 0x93b   : > { %4414 = vxpose.xlu0.b32.cont [2/16] (narrow) %v4398_v19, 32 }
 0x93d   : > { %v4362_v20 = vpop.permute.xlu0 %4361  ;;  %v4356_v14 = vpop.permute.xlu1 %4355 }
 0x93e   : > { %v4400_v11 = vsel %vm2326_vm1, %v4356_v14, 0.0  ;;  %v4403_v39 = vsel %vm2326_vm1, %v4362_v20, 0.0 }
 0x93f   : > { %4415 = vxpose.xlu0.b32.cont [3/16] (narrow) %v4399_v31, 32 }
 0x941   : > { %v4358_v45 = vpop.permute.xlu0 %4357 }
 0x942   : > { %v4401_v29 = vsel %vm2326_vm1, %v4358_v45, 0.0 }
 0x943   : > { %4416 = vxpose.xlu0.b32.cont [4/16] (narrow) %v4400_v11, 32 }
 0x947   : > { %4417 = vxpose.xlu0.b32.cont [5/16] (narrow) %v4401_v29, 32 }
 0x949   : > { %v4360_v2 = vpop.permute.xlu1 %4359 }
 0x94a   : > { %v4402_v57 = vsel %vm2326_vm1, %v4360_v2, 0.0 }
 0x94b   : > { %4418 = vxpose.xlu0.b32.cont [6/16] (narrow) %v4402_v57, 32 }
 0x94d   : > { %v4370_v47 = vpop.permute.xlu0 %4369  ;;  %v4364_v34 = vpop.permute.xlu1 %4363 }
 0x94e   : > { %v4404_v41 = vsel %vm2326_vm1, %v4364_v34, 0.0  ;;  %v4407_v44 = vsel %vm2326_vm1, %v4370_v47, 0.0 }
 0x94f   : > { %4419 = vxpose.xlu0.b32.cont [7/16] (narrow) %v4403_v39, 32 }
 0x951   : > { %v4366_v32 = vpop.permute.xlu0 %4365 }
 0x952   : > { %v4405_v40 = vsel %vm2326_vm1, %v4366_v32, 0.0 }
 0x953   : > { %4420 = vxpose.xlu0.b32.cont [8/16] (narrow) %v4404_v41, 32 }
 0x957   : > { %4421 = vxpose.xlu0.b32.cont [9/16] (narrow) %v4405_v40, 32 }
 0x959   : > { %v4368_v61 = vpop.permute.xlu1 %4367 }
 0x95a   : > { %v4406_v36 = vsel %vm2326_vm1, %v4368_v61, 0.0 }
 0x95b   : > { %4422 = vxpose.xlu0.b32.cont [10/16] (narrow) %v4406_v36, 32 }
 0x95d   : > { %v4378_v9 = vpop.permute.xlu0 %4377  ;;  %v4372_v28 = vpop.permute.xlu1 %4371 }
 0x95e   : > { %v4408_v62 = vsel %vm2326_vm1, %v4372_v28, 0.0  ;;  %v4411_v63 = vsel %vm2326_vm1, %v4378_v9, 0.0 }
 0x95f   : > { %4423 = vxpose.xlu0.b32.cont [11/16] (narrow) %v4407_v44, 32 }
 0x961   : > { %v4374_v35 = vpop.permute.xlu0 %4373 }
 0x962   : > { %v4409_v0 = vsel %vm2326_vm1, %v4374_v35, 0.0 }
 0x963   : > { %4424 = vxpose.xlu0.b32.cont [12/16] (narrow) %v4408_v62, 32 }
 0x965   : > { %v4376_v38 = vpop.permute.xlu1 %4375 }
 0x966   : > { %v4410_v18 = vsel %vm2326_vm1, %v4376_v38, 0.0 }
 0x967   : > { %4425 = vxpose.xlu0.b32.cont [13/16] (narrow) %v4409_v0, 32 }
 0x969   : > { %v4380_v46 = vpop.permute.xlu1 %4379 }
 0x96a   : > { %v4412_v25 = vsel %vm2326_vm1, %v4380_v46, 0.0 }
 0x96b   : > { %4426 = vxpose.xlu0.b32.cont [14/16] (narrow) %v4410_v18, 32 }
 0x96f   : > { %4427 = vxpose.xlu0.b32.cont [15/16] (narrow) %v4411_v63, 32 }
 0x973   : > { %4428 = vxpose.xlu0.b32.end [16/16] (narrow) %v4412_v25, 32 }
 0x9b7   : > { %v4429_v26 = vpop.trf.xlu0 }
 0x9b8   : > { %4445 = vst [vmem:[%s404_s29] sm:$0xff] %v4429_v26 }
 0x9bb   : > { %v4430_v10 = vpop.trf.xlu0 }
 0x9bc   : > { %4446 = vst [vmem:[%s404_s29 + $0x8] sm:$0xff] %v4430_v10 }
 0x9bf   : > { %v4431_v37 = vpop.trf.xlu0 }
 0x9c0   : > { %4447 = vst [vmem:[%s404_s29 + $0x10] sm:$0xff] %v4431_v37 }
 0x9c3   : > { %v4432_v24 = vpop.trf.xlu0 }
 0x9c4   : > { %4448 = vst [vmem:[%s404_s29 + $0x18] sm:$0xff] %v4432_v24 }
 0x9c5   : > { %5898 = shalt.err (!%p5895_p8)
}
 0x9c6   : > { %s5899_s28 = scalar_lea.hbm %s7034_s13, 512  ;;  %s5903_s19 = scalar_lea.hbm %s7085_s7, 1024 }
 0x9c7   : > { %p5900_p11 = scmp.ne.s32.totalorder %s7034_s13, %s5899_s28  ;;  %p5904_p13 = scmp.lt.u32.totalorder %s7034_s13, %s7085_s7 }
 0x9c8   : > { %p5905_p1 = scmp.lt.u32.totalorder %s5903_s19, %s5899_s28  ;;  %p5907_p7 = scmp.lt.u32.totalorder %s5899_s28, %s7034_s13 }
 0x9c9   : > { %p5901_p0 = pnand %p5900_p11, %p7143_p2 }
 0x9ca   : > { %p5906_p3 = por %p5905_p1, %p5904_p13 }
 0x9cb   : > { %p5902_p12 = pneg %p5901_p0 }
 0x9cc   : > { %p5908_p6 = por %p5907_p7, %p5906_p3 }
 0x9ce   : > { %p5909_p10 = pnand %p5908_p6, %p5902_p12 }
 0x9d0   : > { %5912 = shalt.err (!%p5909_p10)
}
 0x9d1   : > { %s5985_s23 = smov 128   ;;  %s5986_s29 = smov 8  }
 0x9d2   : > { %5401 = dma.vmem_to_hbm [thread:$0]  (%p7143_p2), %s7029_s20, 512, %s7034_s13, %s4450_s4, %s5985_s23, %s5985_s23, %s5986_s29  }
 0x9d3 PF: > { %s4478_s2 = sand.u32 1, %s5955_s24   ;;  %p7144_p5 = scmp.ne.s32.totalorder %s7118_s17, 0 }
 0x9d4   : > { %p7145_p9 = scmp.ge.s32.totalorder %s5967_s27, 2  ;;  %s4479_s18 = scalar_lea.sflag [#allocation6], %s4478_s2 }
 0x9d6   : > { %p5427_p4 = pnand %p7145_p9, %p7144_p5 }
 0x9d8   : > { %5950 = dma.done.wait (!%p5427_p4), %s4479_s18, 512  }
 0x9d9   : > { %5952 = vsyncadd (!%p5427_p4), %s4479_s18, 4294966784  ;;  %p25_p8 = scmp.ge.s32.totalorder %s6194_s11, 4   ;;  %s7146_s24 = smov %s5959_s25 }
 0x9da   : > { %s7147_s25 = smov %s5963_s26  ;;  %s7148_s26 = smov %s6206_s12 }
 0x9db   : > { %s7149_s27 = smov %s6194_s11  ;;  %27 = sbr.rel (!%p25_p8) target bundleno = 14 (0xe), region = 135 }
 0x9e2   :  { %4484 = vsyncpa [#allocation5], 1 }
 0x9e3   :  { %4486 = vsyncpa [#allocation5 + $0x1], 1 }
 0x9e4   :  { %4487 = vsyncpa [#allocation8], 1 }
 0x9e5   :  { %4489 = vsyncpa [#allocation8 + $0x1], 1 }
 0x9e6   :  { %4490 = vsyncpa [#allocation11], 1 }
 0x9e7   :  { %4491 = vsyncpa [#allocation14], 1 }
 0x9e8   :  { %4492 = vsyncpa [#allocation6], 1 }
 0x9e9   :  { %4494 = vsyncpa [#allocation6 + $0x1], 1 }

</bundles_post_ra>
